<compile_context>
chip_gen: v6e
topology: v6e:2x2x1
jax: 0.10.0
libtpu: 0.0.40
codegen_flags: <defaults>
</compile_context>

<pallas_src>
import jax
import jax.numpy as jnp
from jax.experimental import pallas as pl
from jax.experimental.pallas import tpu as pltpu

EPS = 1e-5

_VMEM_LIMIT = None


def _vmem_limit_bytes():
    """~75% of physical per-core VMEM (96 MiB on v5e/v6e, 48 MiB on v7x)."""
    global _VMEM_LIMIT
    if _VMEM_LIMIT is None:
        limit = 48 * 1024 * 1024                      # safe everywhere (v7x has 64 MiB)
        try:
            cap = int(pltpu.get_tpu_info().vmem_capacity_bytes)
            limit = min(96 * 1024 * 1024, (cap * 3) // 4)
        except Exception:
            pass
        _VMEM_LIMIT = limit
    return _VMEM_LIMIT


def _round_up(x, m):
    return (x + m - 1) // m * m


def _compiler_params(n_axes):
    return pltpu.CompilerParams(
        dimension_semantics=("parallel",) * n_axes,
        vmem_limit_bytes=_vmem_limit_bytes(),
    )


# ----------------------------- Pallas kernels ------------------------------ #

def _conv_body(xin, w_ref, y_ref, stats_ref, xpad_ref):
    """3x3 conv (stride 1, pad 1) for one image + per-channel sum / sum-of-squares.

    xin:       (H, W, Cp)        f32 value, already pre-processed (BN+ReLU for conv2)
    w_ref:     (3, 3*Cp, Cp)     bf16 ref, tap-stacked weights (rows = kx*Cp + cin)
    y_ref:     (H*W, Cp)         bf16 pre-BN conv output
    stats_ref: (2, Cp)           f32 [sum(y), sum(y*y)] over the H*W rows of this image
    xpad_ref:  (H+2, W+2, Cp)    f32 VMEM scratch; data at rows [1:H+1], cols [0:W]
    """
    h, wd, cp = xin.shape
    hw = h * wd

    # Fill the spatially padded slab.  Interior and border regions are disjoint; the
    # scratch persists across grid steps, so the (tiny) border is re-zeroed every step
    # (safe under megacore 'parallel' partitioning).
    xpad_ref[1:h + 1, 0:wd, :] = xin
    zrow = jnp.zeros((1, wd + 2, cp), jnp.float32)
    xpad_ref[0:1, :, :] = zrow
    xpad_ref[h + 1:h + 2, :, :] = zrow
    xpad_ref[:, wd:wd + 2, :] = jnp.zeros((h + 2, 2, cp), jnp.float32)
    xpad = xpad_ref[...]

    # Column (kx) shifts via XLU rolls; wrapped elements land in the zero border, so the
    # subsequent sublane slices start at 0 (aligned, no relayout copies).
    rolled = (
        pltpu.roll(xpad, shift=1, axis=1),        # kx = 0 -> needs column j-1
        xpad,                                     # kx = 1
        pltpu.roll(xpad, shift=wd + 1, axis=1),   # kx = 2 -> needs column j+1 (== roll -1)
    )

    acc = None
    for ky in range(3):
        # Stack the 3 kx taps along the contraction dim: one K = 3*Cp MXU dot per ky
        # (fills the 256-wide MXU on v6e/v7x; only 2 chained f32 adds total).
        lhs = jnp.concatenate(
            [rolled[kx][ky:ky + h, 0:wd, :].reshape(hw, cp) for kx in range(3)],
            axis=-1,
        ).astype(jnp.bfloat16)
        d = jnp.dot(lhs, w_ref[ky], preferred_element_type=jnp.float32)
        acc = d if acc is None else acc + d

    y_ref[...] = acc.astype(y_ref.dtype)
    stats_ref[...] = jnp.concatenate(
        [jnp.sum(acc, axis=0, keepdims=True),
         jnp.sum(acc * acc, axis=0, keepdims=True)], axis=0)


def conv1_kernel(x_ref, w_ref, y_ref, stats_ref, xpad_ref):
    _conv_body(x_ref[...].astype(jnp.float32), w_ref, y_ref, stats_ref, xpad_ref)


def conv2_bn_kernel(x_ref, w_ref, scale_ref, shift_ref, y_ref, stats_ref, xpad_ref):
    """conv2 with bn1 + ReLU fused into the prologue (scale/shift precomputed in f32)."""
    h, wd, cp = x_ref.shape
    xin = jnp.maximum(
        x_ref[...].reshape(h * wd, cp).astype(jnp.float32) * scale_ref[...]
        + shift_ref[...], 0.0).reshape(h, wd, cp)
    _conv_body(xin, w_ref, y_ref, stats_ref, xpad_ref)


def bn_add_relu_kernel(y_ref, res_ref, scale_ref, shift_ref, o_ref):
    """o = relu(y * scale + shift + residual); y/res are bf16, math in f32."""
    o_ref[...] = jnp.maximum(
        y_ref[...].astype(jnp.float32) * scale_ref[...] + shift_ref[...]
        + res_ref[...].astype(jnp.float32), 0.0).astype(o_ref.dtype)


# ------------------------------ pallas_call wrappers ------------------------ #

def conv3x3_with_stats(x, w, scale=None, shift=None):
    """x: (N, H, W, Cp) bf16;  w: (3, 3*Cp, Cp) bf16; optional fused BN+ReLU on the input.
       -> y: (N, H*W, Cp) bf16,  stats: (N, 2, Cp) f32 (per-image partial sums)."""
    n, h, wd, cp = x.shape
    hw = h * wd
    fused = scale is not None
    kernel = conv2_bn_kernel if fused else conv1_kernel

    in_specs = [
        pl.BlockSpec((None, h, wd, cp), lambda i: (i, 0, 0, 0)),
        pl.BlockSpec((3, 3 * cp, cp), lambda i: (0, 0, 0)),
    ]
    args = [x, w]
    if fused:
        in_specs += [pl.BlockSpec((1, cp), lambda i: (0, 0)),
                     pl.BlockSpec((1, cp), lambda i: (0, 0))]
        args += [scale, shift]

    flops = 2 * n * hw * 9 * cp * cp
    bytes_accessed = x.size * 2 + w.size * 2 + n * hw * cp * 2 + n * 2 * cp * 4
    # TODO(synk): for very large H*W (or N==1 on v7x's 2 TensorCores) add a second grid
    # axis over H row-blocks with a 2-row halo; one image per step is enough here.
    return pl.pallas_call(
        kernel,
        out_shape=(jax.ShapeDtypeStruct((n, hw, cp), jnp.bfloat16),
                   jax.ShapeDtypeStruct((n, 2, cp), jnp.float32)),
        grid=(n,),
        in_specs=in_specs,
        out_specs=(pl.BlockSpec((None, hw, cp), lambda i: (i, 0, 0)),
                   pl.BlockSpec((None, 2, cp), lambda i: (i, 0, 0))),
        scratch_shapes=[pltpu.VMEM((h + 2, wd + 2, cp), jnp.float32)],
        compiler_params=_compiler_params(1),
        cost_estimate=pl.CostEstimate(flops=flops, transcendentals=0,
                                      bytes_accessed=bytes_accessed),
    )(*args)


def bn_add_relu(y_flat, res_flat, scale, shift):
    m, cp = y_flat.shape
    tm = m if m <= 1024 else 1024            # large lane-dense tiles; cdiv handles the tail
    return pl.pallas_call(
        bn_add_relu_kernel,
        out_shape=jax.ShapeDtypeStruct((m, cp), jnp.float32),
        grid=(pl.cdiv(m, tm),),
        in_specs=[
            pl.BlockSpec((tm, cp), lambda i: (i, 0)),
            pl.BlockSpec((tm, cp), lambda i: (i, 0)),
            pl.BlockSpec((1, cp), lambda i: (0, 0)),
            pl.BlockSpec((1, cp), lambda i: (0, 0)),
        ],
        out_specs=pl.BlockSpec((tm, cp), lambda i: (i, 0)),
        compiler_params=_compiler_params(1),
    )(y_flat, res_flat, scale, shift)


# ------------------------------ layout / BN glue ---------------------------- #

def _pad_channels(v, cp):
    return jnp.pad(v.astype(jnp.float32), (0, cp - v.shape[0]))


def _weight_stack(w_oihw, cp):
    """PyTorch (Cout, Cin, 3, 3) -> (3, 3*Cp, Cp) bf16; rows of axis 1 = kx*Cp + cin."""
    cout, cin = w_oihw.shape[0], w_oihw.shape[1]
    w = jnp.transpose(w_oihw, (2, 3, 1, 0))                  # (ky, kx, cin, cout)
    w = jnp.pad(w, ((0, 0), (0, 0), (0, cp - cin), (0, cp - cout)))
    return w.reshape(3, 3 * cp, cp).astype(jnp.bfloat16)


def _bn_scale_shift(stats, m, gamma, beta):
    """stats: (N, 2, Cp) partial (sum, sumsq) -> per-channel (scale, shift), shape (1, Cp)."""
    s = jnp.sum(stats, axis=0)                               # (2, Cp)
    mean = s[0] / m
    # TODO(synk): E[x^2]-E[x]^2 can cancel for |mean| >> std; switch to Welford partials
    # if tolerances tighten.
    var = jnp.maximum(s[1] / m - mean * mean, 0.0)
    scale = gamma * jax.lax.rsqrt(var + EPS)
    shift = beta - mean * scale
    return scale[None, :], shift[None, :]


def init_params(key, in_planes, planes):
    k1, k2, k3, k4 = jax.random.split(key, 4)
    return {
        "w1": jax.random.normal(k1, (planes, in_planes, 3, 3), jnp.float32) * 0.1,
        "b1": jax.random.normal(k2, (planes,), jnp.float32) * 0.1,
        "g1": jnp.ones((planes,), jnp.float32),
        "be1": jnp.zeros((planes,), jnp.float32),
        "w2": jax.random.normal(k3, (planes, planes, 3, 3), jnp.float32) * 0.1,
        "b2": jax.random.normal(k4, (planes,), jnp.float32) * 0.1,
        "g2": jnp.ones((planes,), jnp.float32),
        "be2": jnp.zeros((planes,), jnp.float32),
    }


def basic_block_forward(x_nchw, params):
    """Pallas implementation of BasicBlock.forward (PyTorch training-mode BN)."""
    n, c, h, w = x_nchw.shape
    planes = params["w1"].shape[0]
    assert planes == c, "BasicBlock residual add requires in_planes == planes"
    assert w % 8 == 0, "width must be a multiple of 8 (ideally 16) for aligned tiling"
    cp = _round_up(planes, 128)                              # lane-dense channel dim
    m = n * h * w

    # Single fused producer: NCHW -> NHWC, bf16 cast, channel zero-pad to Cp.
    x_in = jnp.pad(jnp.transpose(x_nchw, (0, 2, 3, 1)).astype(jnp.bfloat16),
                   ((0, 0), (0, 0), (0, 0), (0, cp - c)))
    res_flat = x_in.reshape(m, cp)                           # bf16 residual (view of x_in)

    g1 = _pad_channels(params["g1"], cp)
    b1 = _pad_channels(params["be1"], cp)
    g2 = _pad_channels(params["g2"], cp)
    b2 = _pad_channels(params["be2"], cp)
    # NOTE: conv biases (params["b1"], params["b2"]) are intentionally unused: a per-channel
    # constant added before training-mode BatchNorm is cancelled exactly by the mean
    # subtraction.

    w1 = _weight_stack(params["w1"], cp)
    w2 = _weight_stack(params["w2"], cp)

    # conv1 (+ per-image batch-stat partials)
    y1, st1 = conv3x3_with_stats(x_in, w1)
    scale1, shift1 = _bn_scale_shift(st1, m, g1, b1)

    # conv2 with bn1+relu fused in its prologue: y1 (bf16) is read straight back, no
    # separate normalize pass and no jnp.pad round-trip through HBM.
    y2, st2 = conv3x3_with_stats(y1.reshape(n, h, w, cp), w2, scale1, shift1)
    scale2, shift2 = _bn_scale_shift(st2, m, g2, b2)

    # bn2 + residual + relu
    out_flat = bn_add_relu(y2.reshape(m, cp), res_flat, scale2, shift2)

    out = out_flat.reshape(n, h, w, cp)[..., :c]
    return jnp.transpose(out, (0, 3, 1, 2))

# TODO(synk): PyTorch training-mode BN also updates running_mean/running_var as a side
# effect; that state update does not affect the forward output and is not modeled.


# ---------------------------- pure-JAX reference ---------------------------- #

def reference_forward(x, params):
    def conv(h, w, b):
        y = jax.lax.conv_general_dilated(
            h, w, window_strides=(1, 1), padding=((1, 1), (1, 1)),
            dimension_numbers=("NCHW", "OIHW", "NCHW"))
        return y + b[None, :, None, None]

    def bn(y, g, beta):
        mean = jnp.mean(y, axis=(0, 2, 3), keepdims=True)
        var = jnp.mean(jnp.square(y - mean), axis=(0, 2, 3), keepdims=True)
        yhat = (y - mean) * jax.lax.rsqrt(var + EPS)
        return yhat * g[None, :, None, None] + beta[None, :, None, None]

    out = jax.nn.relu(bn(conv(x, params["w1"], params["b1"]), params["g1"], params["be1"]))
    out = bn(conv(out, params["w2"], params["b2"]), params["g2"], params["be2"])
    return jax.nn.relu(out + x)


if __name__ == "__main__":
    key = jax.random.PRNGKey(0)
    kx_, kp_ = jax.random.split(key)

    N, C, H, W = 2, 4, 16, 16            # in_planes == planes (required by `out += x`)
    x = jax.random.normal(kx_, (N, C, H, W), jnp.float32)
    params = init_params(kp_, in_planes=C, planes=C)

    fwd = jax.jit(basic_block_forward)
    out = jax.block_until_ready(fwd(x, params))
    ref = jax.block_until_ready(reference_forward(x, params))

    assert out.shape == (N, C, H, W)
    rel_l2 = float(jnp.linalg.norm(out - ref) / jnp.linalg.norm(ref))
    max_abs = float(jnp.max(jnp.abs(out - ref)))
    # bf16 MXU operands + bf16 intermediates vs. the f32 reference: ~1e-3 relative error.
    assert rel_l2 < 3e-2 and max_abs < 0.15, (rel_l2, max_abs)

    print("KERNEL_OK")
</pallas_src>

<mosaic_0001>
module attributes {stable_mosaic.version = 11 : i64} {
  func.func @conv1_kernel(%arg0: i32, %arg1: memref<1x16x16x128xbf16, #tpu.memory_space<vmem>>, %arg2: memref<3x384x128xbf16, #tpu.memory_space<vmem>>, %arg3: memref<1x256x128xbf16, #tpu.memory_space<vmem>>, %arg4: memref<1x2x128xf32, #tpu.memory_space<vmem>>, %arg5: memref<18x18x128xf32, #tpu.memory_space<vmem>>) attributes {dimension_semantics = [#tpu.dimension_semantics<parallel>], iteration_bounds = array<i64: 2>, scalar_prefetch = 0 : i64, scratch_operands = 1 : i64, tpu.core_type = #tpu.core_type<tc>, window_params = [{transform_indices = @transform_0, window_bounds = array<i64: 1, 16, 16, 128>}, {pipeline_mode = #tpu.pipeline_mode<synchronous>, transform_indices = @transform_1, window_bounds = array<i64: 3, 384, 128>}, {transform_indices = @transform_2, window_bounds = array<i64: 1, 256, 128>}, {transform_indices = @transform_3, window_bounds = array<i64: 1, 2, 128>}]} {
    %c0 = arith.constant 0 : index
    %c0_0 = arith.constant 0 : index
    %c0_1 = arith.constant 0 : index
    %c0_2 = arith.constant 0 : index
    %0 = vector.load %arg1[%c0, %c0_0, %c0_1, %c0_2] : memref<1x16x16x128xbf16, #tpu.memory_space<vmem>>, vector<1x16x16x128xbf16>
    %1 = vector.shape_cast %0 : vector<1x16x16x128xbf16> to vector<16x16x128xbf16>
    %2 = arith.extf %1 : vector<16x16x128xbf16> to vector<16x16x128xf32>
    %c1 = arith.constant 1 : index
    %c0_3 = arith.constant 0 : index
    %c0_4 = arith.constant 0 : index
    %3 = vector.load %arg5[%c1, %c0_3, %c0_4] : memref<18x18x128xf32, #tpu.memory_space<vmem>>, vector<16x16x128xf32>
    tpu.vector_store %arg5[%c1, %c0_3, %c0_4], %2 {strides = array<i32>} : memref<18x18x128xf32, #tpu.memory_space<vmem>>, vector<16x16x128xf32>,
    %cst = arith.constant 0.000000e+00 : f32
    %4 = vector.broadcast %cst : f32 to vector<1x18x128xf32>
    %c0_5 = arith.constant 0 : index
    %c0_6 = arith.constant 0 : index
    %c0_7 = arith.constant 0 : index
    %5 = vector.load %arg5[%c0_5, %c0_6, %c0_7] : memref<18x18x128xf32, #tpu.memory_space<vmem>>, vector<1x18x128xf32>
    tpu.vector_store %arg5[%c0_5, %c0_6, %c0_7], %4 {strides = array<i32>} : memref<18x18x128xf32, #tpu.memory_space<vmem>>, vector<1x18x128xf32>,
    %c17 = arith.constant 17 : index
    %c0_8 = arith.constant 0 : index
    %c0_9 = arith.constant 0 : index
    %6 = vector.load %arg5[%c17, %c0_8, %c0_9] : memref<18x18x128xf32, #tpu.memory_space<vmem>>, vector<1x18x128xf32>
    tpu.vector_store %arg5[%c17, %c0_8, %c0_9], %4 {strides = array<i32>} : memref<18x18x128xf32, #tpu.memory_space<vmem>>, vector<1x18x128xf32>,
    %cst_10 = arith.constant 0.000000e+00 : f32
    %7 = vector.broadcast %cst_10 : f32 to vector<18x2x128xf32>
    %c0_11 = arith.constant 0 : index
    %c16 = arith.constant 16 : index
    %c0_12 = arith.constant 0 : index
    %8 = vector.load %arg5[%c0_11, %c16, %c0_12] : memref<18x18x128xf32, #tpu.memory_space<vmem>>, vector<18x2x128xf32>
    tpu.vector_store %arg5[%c0_11, %c16, %c0_12], %7 {strides = array<i32>} : memref<18x18x128xf32, #tpu.memory_space<vmem>>, vector<18x2x128xf32>,
    %c0_13 = arith.constant 0 : index
    %c0_14 = arith.constant 0 : index
    %c0_15 = arith.constant 0 : index
    %9 = vector.load %arg5[%c0_13, %c0_14, %c0_15] : memref<18x18x128xf32, #tpu.memory_space<vmem>>, vector<18x18x128xf32>
    %c1_i32 = arith.constant 1 : i32
    %10 = tpu.dynamic_rotate %9 by %c1_i32 dim 1 : vector<18x18x128xf32>, i32 -> vector<18x18x128xf32>
    %c17_i32 = arith.constant 17 : i32
    %11 = tpu.dynamic_rotate %9 by %c17_i32 dim 1 : vector<18x18x128xf32>, i32 -> vector<18x18x128xf32>
    %12 = vector.extract_strided_slice %10 {offsets = [0, 0, 0], sizes = [16, 16, 128], strides = [1, 1, 1]} : vector<18x18x128xf32> to vector<16x16x128xf32>
    %13 = vector.shape_cast %12 : vector<16x16x128xf32> to vector<256x128xf32>
    %14 = vector.extract_strided_slice %9 {offsets = [0, 0, 0], sizes = [16, 16, 128], strides = [1, 1, 1]} : vector<18x18x128xf32> to vector<16x16x128xf32>
    %15 = vector.shape_cast %14 : vector<16x16x128xf32> to vector<256x128xf32>
    %16 = vector.extract_strided_slice %11 {offsets = [0, 0, 0], sizes = [16, 16, 128], strides = [1, 1, 1]} : vector<18x18x128xf32> to vector<16x16x128xf32>
    %17 = vector.shape_cast %16 : vector<16x16x128xf32> to vector<256x128xf32>
    %18 = tpu.concatenate %13, %15, %17 in 1 : vector<256x128xf32>, vector<256x128xf32>, vector<256x128xf32> -> vector<256x384xf32>
    %19 = arith.truncf %18 : vector<256x384xf32> to vector<256x384xbf16>
    %c0_16 = arith.constant 0 : index
    %c0_17 = arith.constant 0 : index
    %c0_18 = arith.constant 0 : index
    %20 = vector.load %arg2[%c0_16, %c0_17, %c0_18] : memref<3x384x128xbf16, #tpu.memory_space<vmem>>, vector<1x384x128xbf16>
    %21 = vector.shape_cast %20 : vector<1x384x128xbf16> to vector<384x128xbf16>
    %cst_19 = arith.constant dense<0.000000e+00> : vector<256x128xf32>
    %22 = tpu.matmul %19, %21, %cst_19 {dimension_numbers = #tpu.dot_dimension_numbers<[1], [0], [0], [1], [0, 0, 1, 1], [], []>} : vector<256x384xbf16>, vector<384x128xbf16>, vector<256x128xf32> -> vector<256x128xf32>
    %23 = vector.extract_strided_slice %10 {offsets = [1, 0, 0], sizes = [16, 16, 128], strides = [1, 1, 1]} : vector<18x18x128xf32> to vector<16x16x128xf32>
    %24 = vector.shape_cast %23 : vector<16x16x128xf32> to vector<256x128xf32>
    %25 = vector.extract_strided_slice %9 {offsets = [1, 0, 0], sizes = [16, 16, 128], strides = [1, 1, 1]} : vector<18x18x128xf32> to vector<16x16x128xf32>
    %26 = vector.shape_cast %25 : vector<16x16x128xf32> to vector<256x128xf32>
    %27 = vector.extract_strided_slice %11 {offsets = [1, 0, 0], sizes = [16, 16, 128], strides = [1, 1, 1]} : vector<18x18x128xf32> to vector<16x16x128xf32>
    %28 = vector.shape_cast %27 : vector<16x16x128xf32> to vector<256x128xf32>
    %29 = tpu.concatenate %24, %26, %28 in 1 : vector<256x128xf32>, vector<256x128xf32>, vector<256x128xf32> -> vector<256x384xf32>
    %30 = arith.truncf %29 : vector<256x384xf32> to vector<256x384xbf16>
    %c1_20 = arith.constant 1 : index
    %c0_21 = arith.constant 0 : index
    %c0_22 = arith.constant 0 : index
    %31 = vector.load %arg2[%c1_20, %c0_21, %c0_22] : memref<3x384x128xbf16, #tpu.memory_space<vmem>>, vector<1x384x128xbf16>
    %32 = vector.shape_cast %31 : vector<1x384x128xbf16> to vector<384x128xbf16>
    %cst_23 = arith.constant dense<0.000000e+00> : vector<256x128xf32>
    %33 = tpu.matmul %30, %32, %cst_23 {dimension_numbers = #tpu.dot_dimension_numbers<[1], [0], [0], [1], [0, 0, 1, 1], [], []>} : vector<256x384xbf16>, vector<384x128xbf16>, vector<256x128xf32> -> vector<256x128xf32>
    %34 = arith.addf %22, %33 : vector<256x128xf32>
    %35 = vector.extract_strided_slice %10 {offsets = [2, 0, 0], sizes = [16, 16, 128], strides = [1, 1, 1]} : vector<18x18x128xf32> to vector<16x16x128xf32>
    %36 = vector.shape_cast %35 : vector<16x16x128xf32> to vector<256x128xf32>
    %37 = vector.extract_strided_slice %9 {offsets = [2, 0, 0], sizes = [16, 16, 128], strides = [1, 1, 1]} : vector<18x18x128xf32> to vector<16x16x128xf32>
    %38 = vector.shape_cast %37 : vector<16x16x128xf32> to vector<256x128xf32>
    %39 = vector.extract_strided_slice %11 {offsets = [2, 0, 0], sizes = [16, 16, 128], strides = [1, 1, 1]} : vector<18x18x128xf32> to vector<16x16x128xf32>
    %40 = vector.shape_cast %39 : vector<16x16x128xf32> to vector<256x128xf32>
    %41 = tpu.concatenate %36, %38, %40 in 1 : vector<256x128xf32>, vector<256x128xf32>, vector<256x128xf32> -> vector<256x384xf32>
    %42 = arith.truncf %41 : vector<256x384xf32> to vector<256x384xbf16>
    %c2 = arith.constant 2 : index
    %c0_24 = arith.constant 0 : index
    %c0_25 = arith.constant 0 : index
    %43 = vector.load %arg2[%c2, %c0_24, %c0_25] : memref<3x384x128xbf16, #tpu.memory_space<vmem>>, vector<1x384x128xbf16>
    %44 = vector.shape_cast %43 : vector<1x384x128xbf16> to vector<384x128xbf16>
    %cst_26 = arith.constant dense<0.000000e+00> : vector<256x128xf32>
    %45 = tpu.matmul %42, %44, %cst_26 {dimension_numbers = #tpu.dot_dimension_numbers<[1], [0], [0], [1], [0, 0, 1, 1], [], []>} : vector<256x384xbf16>, vector<384x128xbf16>, vector<256x128xf32> -> vector<256x128xf32>
    %46 = arith.addf %34, %45 : vector<256x128xf32>
    %47 = arith.truncf %46 : vector<256x128xf32> to vector<256x128xbf16>
    %c0_27 = arith.constant 0 : index
    %c0_28 = arith.constant 0 : index
    %c0_29 = arith.constant 0 : index
    %48 = vector.load %arg3[%c0_27, %c0_28, %c0_29] : memref<1x256x128xbf16, #tpu.memory_space<vmem>>, vector<1x256x128xbf16>
    %49 = vector.shape_cast %48 : vector<1x256x128xbf16> to vector<256x128xbf16>
    %50 = vector.shape_cast %47 : vector<256x128xbf16> to vector<1x256x128xbf16>
    tpu.vector_store %arg3[%c0_27, %c0_28, %c0_29], %50 {strides = array<i32>} : memref<1x256x128xbf16, #tpu.memory_space<vmem>>, vector<1x256x128xbf16>,
    %cst_30 = arith.constant dense<0.000000e+00> : vector<128xf32>
    %51 = vector.multi_reduction <add>, %46, %cst_30 [0] : vector<256x128xf32> to vector<128xf32>
    %52 = vector.shape_cast %51 : vector<128xf32> to vector<1x128xf32>
    %53 = arith.mulf %46, %46 : vector<256x128xf32>
    %cst_31 = arith.constant dense<0.000000e+00> : vector<128xf32>
    %54 = vector.multi_reduction <add>, %53, %cst_31 [0] : vector<256x128xf32> to vector<128xf32>
    %55 = vector.shape_cast %54 : vector<128xf32> to vector<1x128xf32>
    %56 = tpu.concatenate %52, %55 in 0 : vector<1x128xf32>, vector<1x128xf32> -> vector<2x128xf32>
    %c0_32 = arith.constant 0 : index
    %c0_33 = arith.constant 0 : index
    %c0_34 = arith.constant 0 : index
    %57 = vector.load %arg4[%c0_32, %c0_33, %c0_34] : memref<1x2x128xf32, #tpu.memory_space<vmem>>, vector<1x2x128xf32>
    %58 = vector.shape_cast %57 : vector<1x2x128xf32> to vector<2x128xf32>
    %59 = vector.shape_cast %56 : vector<2x128xf32> to vector<1x2x128xf32>
    tpu.vector_store %arg4[%c0_32, %c0_33, %c0_34], %59 {strides = array<i32>} : memref<1x2x128xf32, #tpu.memory_space<vmem>>, vector<1x2x128xf32>,
    return
  }
  func.func @transform_0(%arg0: i32) -> (i32, i32, i32, i32) {
    %c0_i32 = arith.constant 0 : i32
    %c0_i32_0 = arith.constant 0 : i32
    %c0_i32_1 = arith.constant 0 : i32
    %c0_i32_2 = arith.constant 0 : i32
    return %arg0, %c0_i32, %c0_i32_0, %c0_i32_1 : i32, i32, i32, i32
  }
  func.func @transform_1(%arg0: i32) -> (i32, i32, i32) {
    %c0_i32 = arith.constant 0 : i32
    %c0_i32_0 = arith.constant 0 : i32
    %c0_i32_1 = arith.constant 0 : i32
    %c0_i32_2 = arith.constant 0 : i32
    return %c0_i32, %c0_i32_0, %c0_i32_1 : i32, i32, i32
  }
  func.func @transform_2(%arg0: i32) -> (i32, i32, i32) {
    %c0_i32 = arith.constant 0 : i32
    %c0_i32_0 = arith.constant 0 : i32
    %c0_i32_1 = arith.constant 0 : i32
    return %arg0, %c0_i32, %c0_i32_0 : i32, i32, i32
  }
  func.func @transform_3(%arg0: i32) -> (i32, i32, i32) {
    %c0_i32 = arith.constant 0 : i32
    %c0_i32_0 = arith.constant 0 : i32
    %c0_i32_1 = arith.constant 0 : i32
    return %arg0, %c0_i32, %c0_i32_0 : i32, i32, i32
  }
}

module attributes {stable_mosaic.version = 11 : i64} {
  func.func @bn_add_relu_kernel(%arg0: i32, %arg1: memref<512x128xbf16, #tpu.memory_space<vmem>>, %arg2: memref<512x128xbf16, #tpu.memory_space<vmem>>, %arg3: memref<1x128xf32, #tpu.memory_space<vmem>>, %arg4: memref<1x128xf32, #tpu.memory_space<vmem>>, %arg5: memref<512x128xf32, #tpu.memory_space<vmem>>) attributes {dimension_semantics = [#tpu.dimension_semantics<parallel>], iteration_bounds = array<i64: 1>, scalar_prefetch = 0 : i64, scratch_operands = 0 : i64, tpu.core_type = #tpu.core_type<tc>, window_params = [{transform_indices = @transform_0, window_bounds = array<i64: 512, 128>}, {transform_indices = @transform_1, window_bounds = array<i64: 512, 128>}, {pipeline_mode = #tpu.pipeline_mode<synchronous>, transform_indices = @transform_2, window_bounds = array<i64: 1, 128>}, {pipeline_mode = #tpu.pipeline_mode<synchronous>, transform_indices = @transform_3, window_bounds = array<i64: 1, 128>}, {transform_indices = @transform_4, window_bounds = array<i64: 512, 128>}]} {
    %c0 = arith.constant 0 : index
    %c0_0 = arith.constant 0 : index
    %0 = vector.load %arg1[%c0, %c0_0] : memref<512x128xbf16, #tpu.memory_space<vmem>>, vector<512x128xbf16>
    %1 = arith.extf %0 : vector<512x128xbf16> to vector<512x128xf32>
    %c0_1 = arith.constant 0 : index
    %c0_2 = arith.constant 0 : index
    %2 = vector.load %arg3[%c0_1, %c0_2] : memref<1x128xf32, #tpu.memory_space<vmem>>, vector<1x128xf32>
    %3 = vector.broadcast %2 : vector<1x128xf32> to vector<512x128xf32>
    %4 = arith.mulf %1, %3 : vector<512x128xf32>
    %c0_3 = arith.constant 0 : index
    %c0_4 = arith.constant 0 : index
    %5 = vector.load %arg4[%c0_3, %c0_4] : memref<1x128xf32, #tpu.memory_space<vmem>>, vector<1x128xf32>
    %6 = vector.broadcast %5 : vector<1x128xf32> to vector<512x128xf32>
    %7 = arith.addf %4, %6 : vector<512x128xf32>
    %c0_5 = arith.constant 0 : index
    %c0_6 = arith.constant 0 : index
    %8 = vector.load %arg2[%c0_5, %c0_6] : memref<512x128xbf16, #tpu.memory_space<vmem>>, vector<512x128xbf16>
    %9 = arith.extf %8 : vector<512x128xbf16> to vector<512x128xf32>
    %10 = arith.addf %7, %9 : vector<512x128xf32>
    %cst = arith.constant 0.000000e+00 : f32
    %11 = vector.broadcast %cst : f32 to vector<512x128xf32>
    %12 = arith.maximumf %10, %11 : vector<512x128xf32>
    %c0_7 = arith.constant 0 : index
    %c0_8 = arith.constant 0 : index
    %13 = vector.load %arg5[%c0_7, %c0_8] : memref<512x128xf32, #tpu.memory_space<vmem>>, vector<512x128xf32>
    tpu.vector_store %arg5[%c0_7, %c0_8], %12 {strides = array<i32>} : memref<512x128xf32, #tpu.memory_space<vmem>>, vector<512x128xf32>,
    return
  }
  func.func @transform_0(%arg0: i32) -> (i32, i32) {
    %c0_i32 = arith.constant 0 : i32
    %c0_i32_0 = arith.constant 0 : i32
    return %arg0, %c0_i32 : i32, i32
  }
  func.func @transform_1(%arg0: i32) -> (i32, i32) {
    %c0_i32 = arith.constant 0 : i32
    %c0_i32_0 = arith.constant 0 : i32
    return %arg0, %c0_i32 : i32, i32
  }
  func.func @transform_2(%arg0: i32) -> (i32, i32) {
    %c0_i32 = arith.constant 0 : i32
    %c0_i32_0 = arith.constant 0 : i32
    %c0_i32_1 = arith.constant 0 : i32
    return %c0_i32, %c0_i32_0 : i32, i32
  }
  func.func @transform_3(%arg0: i32) -> (i32, i32) {
    %c0_i32 = arith.constant 0 : i32
    %c0_i32_0 = arith.constant 0 : i32
    %c0_i32_1 = arith.constant 0 : i32
    return %c0_i32, %c0_i32_0 : i32, i32
  }
  func.func @transform_4(%arg0: i32) -> (i32, i32) {
    %c0_i32 = arith.constant 0 : i32
    %c0_i32_0 = arith.constant 0 : i32
    return %arg0, %c0_i32 : i32, i32
  }
}

module attributes {stable_mosaic.version = 11 : i64} {
  func.func @conv2_bn_kernel(%arg0: i32, %arg1: memref<1x16x16x128xbf16, #tpu.memory_space<vmem>>, %arg2: memref<3x384x128xbf16, #tpu.memory_space<vmem>>, %arg3: memref<1x128xf32, #tpu.memory_space<vmem>>, %arg4: memref<1x128xf32, #tpu.memory_space<vmem>>, %arg5: memref<1x256x128xbf16, #tpu.memory_space<vmem>>, %arg6: memref<1x2x128xf32, #tpu.memory_space<vmem>>, %arg7: memref<18x18x128xf32, #tpu.memory_space<vmem>>) attributes {dimension_semantics = [#tpu.dimension_semantics<parallel>], iteration_bounds = array<i64: 2>, scalar_prefetch = 0 : i64, scratch_operands = 1 : i64, tpu.core_type = #tpu.core_type<tc>, window_params = [{transform_indices = @transform_0, window_bounds = array<i64: 1, 16, 16, 128>}, {pipeline_mode = #tpu.pipeline_mode<synchronous>, transform_indices = @transform_1, window_bounds = array<i64: 3, 384, 128>}, {pipeline_mode = #tpu.pipeline_mode<synchronous>, transform_indices = @transform_2, window_bounds = array<i64: 1, 128>}, {pipeline_mode = #tpu.pipeline_mode<synchronous>, transform_indices = @transform_3, window_bounds = array<i64: 1, 128>}, {transform_indices = @transform_4, window_bounds = array<i64: 1, 256, 128>}, {transform_indices = @transform_5, window_bounds = array<i64: 1, 2, 128>}]} {
    %c0 = arith.constant 0 : index
    %c0_0 = arith.constant 0 : index
    %c0_1 = arith.constant 0 : index
    %c0_2 = arith.constant 0 : index
    %0 = vector.load %arg1[%c0, %c0_0, %c0_1, %c0_2] : memref<1x16x16x128xbf16, #tpu.memory_space<vmem>>, vector<1x16x16x128xbf16>
    %1 = vector.shape_cast %0 : vector<1x16x16x128xbf16> to vector<16x16x128xbf16>
    %2 = vector.shape_cast %1 : vector<16x16x128xbf16> to vector<256x128xbf16>
    %3 = arith.extf %2 : vector<256x128xbf16> to vector<256x128xf32>
    %c0_3 = arith.constant 0 : index
    %c0_4 = arith.constant 0 : index
    %4 = vector.load %arg3[%c0_3, %c0_4] : memref<1x128xf32, #tpu.memory_space<vmem>>, vector<1x128xf32>
    %5 = vector.broadcast %4 : vector<1x128xf32> to vector<256x128xf32>
    %6 = arith.mulf %3, %5 : vector<256x128xf32>
    %c0_5 = arith.constant 0 : index
    %c0_6 = arith.constant 0 : index
    %7 = vector.load %arg4[%c0_5, %c0_6] : memref<1x128xf32, #tpu.memory_space<vmem>>, vector<1x128xf32>
    %8 = vector.broadcast %7 : vector<1x128xf32> to vector<256x128xf32>
    %9 = arith.addf %6, %8 : vector<256x128xf32>
    %cst = arith.constant 0.000000e+00 : f32
    %10 = vector.broadcast %cst : f32 to vector<256x128xf32>
    %11 = arith.maximumf %9, %10 : vector<256x128xf32>
    %12 = vector.shape_cast %11 : vector<256x128xf32> to vector<16x16x128xf32>
    %c1 = arith.constant 1 : index
    %c0_7 = arith.constant 0 : index
    %c0_8 = arith.constant 0 : index
    %13 = vector.load %arg7[%c1, %c0_7, %c0_8] : memref<18x18x128xf32, #tpu.memory_space<vmem>>, vector<16x16x128xf32>
    tpu.vector_store %arg7[%c1, %c0_7, %c0_8], %12 {strides = array<i32>} : memref<18x18x128xf32, #tpu.memory_space<vmem>>, vector<16x16x128xf32>,
    %cst_9 = arith.constant 0.000000e+00 : f32
    %14 = vector.broadcast %cst_9 : f32 to vector<1x18x128xf32>
    %c0_10 = arith.constant 0 : index
    %c0_11 = arith.constant 0 : index
    %c0_12 = arith.constant 0 : index
    %15 = vector.load %arg7[%c0_10, %c0_11, %c0_12] : memref<18x18x128xf32, #tpu.memory_space<vmem>>, vector<1x18x128xf32>
    tpu.vector_store %arg7[%c0_10, %c0_11, %c0_12], %14 {strides = array<i32>} : memref<18x18x128xf32, #tpu.memory_space<vmem>>, vector<1x18x128xf32>,
    %c17 = arith.constant 17 : index
    %c0_13 = arith.constant 0 : index
    %c0_14 = arith.constant 0 : index
    %16 = vector.load %arg7[%c17, %c0_13, %c0_14] : memref<18x18x128xf32, #tpu.memory_space<vmem>>, vector<1x18x128xf32>
    tpu.vector_store %arg7[%c17, %c0_13, %c0_14], %14 {strides = array<i32>} : memref<18x18x128xf32, #tpu.memory_space<vmem>>, vector<1x18x128xf32>,
    %cst_15 = arith.constant 0.000000e+00 : f32
    %17 = vector.broadcast %cst_15 : f32 to vector<18x2x128xf32>
    %c0_16 = arith.constant 0 : index
    %c16 = arith.constant 16 : index
    %c0_17 = arith.constant 0 : index
    %18 = vector.load %arg7[%c0_16, %c16, %c0_17] : memref<18x18x128xf32, #tpu.memory_space<vmem>>, vector<18x2x128xf32>
    tpu.vector_store %arg7[%c0_16, %c16, %c0_17], %17 {strides = array<i32>} : memref<18x18x128xf32, #tpu.memory_space<vmem>>, vector<18x2x128xf32>,
    %c0_18 = arith.constant 0 : index
    %c0_19 = arith.constant 0 : index
    %c0_20 = arith.constant 0 : index
    %19 = vector.load %arg7[%c0_18, %c0_19, %c0_20] : memref<18x18x128xf32, #tpu.memory_space<vmem>>, vector<18x18x128xf32>
    %c1_i32 = arith.constant 1 : i32
    %20 = tpu.dynamic_rotate %19 by %c1_i32 dim 1 : vector<18x18x128xf32>, i32 -> vector<18x18x128xf32>
    %c17_i32 = arith.constant 17 : i32
    %21 = tpu.dynamic_rotate %19 by %c17_i32 dim 1 : vector<18x18x128xf32>, i32 -> vector<18x18x128xf32>
    %22 = vector.extract_strided_slice %20 {offsets = [0, 0, 0], sizes = [16, 16, 128], strides = [1, 1, 1]} : vector<18x18x128xf32> to vector<16x16x128xf32>
    %23 = vector.shape_cast %22 : vector<16x16x128xf32> to vector<256x128xf32>
    %24 = vector.extract_strided_slice %19 {offsets = [0, 0, 0], sizes = [16, 16, 128], strides = [1, 1, 1]} : vector<18x18x128xf32> to vector<16x16x128xf32>
    %25 = vector.shape_cast %24 : vector<16x16x128xf32> to vector<256x128xf32>
    %26 = vector.extract_strided_slice %21 {offsets = [0, 0, 0], sizes = [16, 16, 128], strides = [1, 1, 1]} : vector<18x18x128xf32> to vector<16x16x128xf32>
    %27 = vector.shape_cast %26 : vector<16x16x128xf32> to vector<256x128xf32>
    %28 = tpu.concatenate %23, %25, %27 in 1 : vector<256x128xf32>, vector<256x128xf32>, vector<256x128xf32> -> vector<256x384xf32>
    %29 = arith.truncf %28 : vector<256x384xf32> to vector<256x384xbf16>
    %c0_21 = arith.constant 0 : index
    %c0_22 = arith.constant 0 : index
    %c0_23 = arith.constant 0 : index
    %30 = vector.load %arg2[%c0_21, %c0_22, %c0_23] : memref<3x384x128xbf16, #tpu.memory_space<vmem>>, vector<1x384x128xbf16>
    %31 = vector.shape_cast %30 : vector<1x384x128xbf16> to vector<384x128xbf16>
    %cst_24 = arith.constant dense<0.000000e+00> : vector<256x128xf32>
    %32 = tpu.matmul %29, %31, %cst_24 {dimension_numbers = #tpu.dot_dimension_numbers<[1], [0], [0], [1], [0, 0, 1, 1], [], []>} : vector<256x384xbf16>, vector<384x128xbf16>, vector<256x128xf32> -> vector<256x128xf32>
    %33 = vector.extract_strided_slice %20 {offsets = [1, 0, 0], sizes = [16, 16, 128], strides = [1, 1, 1]} : vector<18x18x128xf32> to vector<16x16x128xf32>
    %34 = vector.shape_cast %33 : vector<16x16x128xf32> to vector<256x128xf32>
    %35 = vector.extract_strided_slice %19 {offsets = [1, 0, 0], sizes = [16, 16, 128], strides = [1, 1, 1]} : vector<18x18x128xf32> to vector<16x16x128xf32>
    %36 = vector.shape_cast %35 : vector<16x16x128xf32> to vector<256x128xf32>
    %37 = vector.extract_strided_slice %21 {offsets = [1, 0, 0], sizes = [16, 16, 128], strides = [1, 1, 1]} : vector<18x18x128xf32> to vector<16x16x128xf32>
    %38 = vector.shape_cast %37 : vector<16x16x128xf32> to vector<256x128xf32>
    %39 = tpu.concatenate %34, %36, %38 in 1 : vector<256x128xf32>, vector<256x128xf32>, vector<256x128xf32> -> vector<256x384xf32>
    %40 = arith.truncf %39 : vector<256x384xf32> to vector<256x384xbf16>
    %c1_25 = arith.constant 1 : index
    %c0_26 = arith.constant 0 : index
    %c0_27 = arith.constant 0 : index
    %41 = vector.load %arg2[%c1_25, %c0_26, %c0_27] : memref<3x384x128xbf16, #tpu.memory_space<vmem>>, vector<1x384x128xbf16>
    %42 = vector.shape_cast %41 : vector<1x384x128xbf16> to vector<384x128xbf16>
    %cst_28 = arith.constant dense<0.000000e+00> : vector<256x128xf32>
    %43 = tpu.matmul %40, %42, %cst_28 {dimension_numbers = #tpu.dot_dimension_numbers<[1], [0], [0], [1], [0, 0, 1, 1], [], []>} : vector<256x384xbf16>, vector<384x128xbf16>, vector<256x128xf32> -> vector<256x128xf32>
    %44 = arith.addf %32, %43 : vector<256x128xf32>
    %45 = vector.extract_strided_slice %20 {offsets = [2, 0, 0], sizes = [16, 16, 128], strides = [1, 1, 1]} : vector<18x18x128xf32> to vector<16x16x128xf32>
    %46 = vector.shape_cast %45 : vector<16x16x128xf32> to vector<256x128xf32>
    %47 = vector.extract_strided_slice %19 {offsets = [2, 0, 0], sizes = [16, 16, 128], strides = [1, 1, 1]} : vector<18x18x128xf32> to vector<16x16x128xf32>
    %48 = vector.shape_cast %47 : vector<16x16x128xf32> to vector<256x128xf32>
    %49 = vector.extract_strided_slice %21 {offsets = [2, 0, 0], sizes = [16, 16, 128], strides = [1, 1, 1]} : vector<18x18x128xf32> to vector<16x16x128xf32>
    %50 = vector.shape_cast %49 : vector<16x16x128xf32> to vector<256x128xf32>
    %51 = tpu.concatenate %46, %48, %50 in 1 : vector<256x128xf32>, vector<256x128xf32>, vector<256x128xf32> -> vector<256x384xf32>
    %52 = arith.truncf %51 : vector<256x384xf32> to vector<256x384xbf16>
    %c2 = arith.constant 2 : index
    %c0_29 = arith.constant 0 : index
    %c0_30 = arith.constant 0 : index
    %53 = vector.load %arg2[%c2, %c0_29, %c0_30] : memref<3x384x128xbf16, #tpu.memory_space<vmem>>, vector<1x384x128xbf16>
    %54 = vector.shape_cast %53 : vector<1x384x128xbf16> to vector<384x128xbf16>
    %cst_31 = arith.constant dense<0.000000e+00> : vector<256x128xf32>
    %55 = tpu.matmul %52, %54, %cst_31 {dimension_numbers = #tpu.dot_dimension_numbers<[1], [0], [0], [1], [0, 0, 1, 1], [], []>} : vector<256x384xbf16>, vector<384x128xbf16>, vector<256x128xf32> -> vector<256x128xf32>
    %56 = arith.addf %44, %55 : vector<256x128xf32>
    %57 = arith.truncf %56 : vector<256x128xf32> to vector<256x128xbf16>
    %c0_32 = arith.constant 0 : index
    %c0_33 = arith.constant 0 : index
    %c0_34 = arith.constant 0 : index
    %58 = vector.load %arg5[%c0_32, %c0_33, %c0_34] : memref<1x256x128xbf16, #tpu.memory_space<vmem>>, vector<1x256x128xbf16>
    %59 = vector.shape_cast %58 : vector<1x256x128xbf16> to vector<256x128xbf16>
    %60 = vector.shape_cast %57 : vector<256x128xbf16> to vector<1x256x128xbf16>
    tpu.vector_store %arg5[%c0_32, %c0_33, %c0_34], %60 {strides = array<i32>} : memref<1x256x128xbf16, #tpu.memory_space<vmem>>, vector<1x256x128xbf16>,
    %cst_35 = arith.constant dense<0.000000e+00> : vector<128xf32>
    %61 = vector.multi_reduction <add>, %56, %cst_35 [0] : vector<256x128xf32> to vector<128xf32>
    %62 = vector.shape_cast %61 : vector<128xf32> to vector<1x128xf32>
    %63 = arith.mulf %56, %56 : vector<256x128xf32>
    %cst_36 = arith.constant dense<0.000000e+00> : vector<128xf32>
    %64 = vector.multi_reduction <add>, %63, %cst_36 [0] : vector<256x128xf32> to vector<128xf32>
    %65 = vector.shape_cast %64 : vector<128xf32> to vector<1x128xf32>
    %66 = tpu.concatenate %62, %65 in 0 : vector<1x128xf32>, vector<1x128xf32> -> vector<2x128xf32>
    %c0_37 = arith.constant 0 : index
    %c0_38 = arith.constant 0 : index
    %c0_39 = arith.constant 0 : index
    %67 = vector.load %arg6[%c0_37, %c0_38, %c0_39] : memref<1x2x128xf32, #tpu.memory_space<vmem>>, vector<1x2x128xf32>
    %68 = vector.shape_cast %67 : vector<1x2x128xf32> to vector<2x128xf32>
    %69 = vector.shape_cast %66 : vector<2x128xf32> to vector<1x2x128xf32>
    tpu.vector_store %arg6[%c0_37, %c0_38, %c0_39], %69 {strides = array<i32>} : memref<1x2x128xf32, #tpu.memory_space<vmem>>, vector<1x2x128xf32>,
    return
  }
  func.func @transform_0(%arg0: i32) -> (i32, i32, i32, i32) {
    %c0_i32 = arith.constant 0 : i32
    %c0_i32_0 = arith.constant 0 : i32
    %c0_i32_1 = arith.constant 0 : i32
    %c0_i32_2 = arith.constant 0 : i32
    return %arg0, %c0_i32, %c0_i32_0, %c0_i32_1 : i32, i32, i32, i32
  }
  func.func @transform_1(%arg0: i32) -> (i32, i32, i32) {
    %c0_i32 = arith.constant 0 : i32
    %c0_i32_0 = arith.constant 0 : i32
    %c0_i32_1 = arith.constant 0 : i32
    %c0_i32_2 = arith.constant 0 : i32
    return %c0_i32, %c0_i32_0, %c0_i32_1 : i32, i32, i32
  }
  func.func @transform_2(%arg0: i32) -> (i32, i32) {
    %c0_i32 = arith.constant 0 : i32
    %c0_i32_0 = arith.constant 0 : i32
    %c0_i32_1 = arith.constant 0 : i32
    return %c0_i32, %c0_i32_0 : i32, i32
  }
  func.func @transform_3(%arg0: i32) -> (i32, i32) {
    %c0_i32 = arith.constant 0 : i32
    %c0_i32_0 = arith.constant 0 : i32
    %c0_i32_1 = arith.constant 0 : i32
    return %c0_i32, %c0_i32_0 : i32, i32
  }
  func.func @transform_4(%arg0: i32) -> (i32, i32, i32) {
    %c0_i32 = arith.constant 0 : i32
    %c0_i32_0 = arith.constant 0 : i32
    %c0_i32_1 = arith.constant 0 : i32
    return %arg0, %c0_i32, %c0_i32_0 : i32, i32, i32
  }
  func.func @transform_5(%arg0: i32) -> (i32, i32, i32) {
    %c0_i32 = arith.constant 0 : i32
    %c0_i32_0 = arith.constant 0 : i32
    %c0_i32_1 = arith.constant 0 : i32
    return %arg0, %c0_i32, %c0_i32_0 : i32, i32, i32
  }
}

</mosaic_0001>

<bundles_post_ra>
// kernel: basic_block_forward.5
= control target key start
LH: loop header
LB: loop body
LE: loop exit
PB: predicated region body
PF: predicated region fallthrough
CT: control target
= control target key end

     0   :  { %s1478_s0 = inlined_call_operand.vmem [shape: bf16[512,128], index: 0, kind: input, shape index: {}]   ;;  %s1479_s1 = inlined_call_operand.vmem [shape: bf16[512,128], index: 1, kind: input, shape index: {}]   ;;  %s1480_s2 = inlined_call_operand.vmem [shape: f32[1,128], index: 2, kind: input, shape index: {}]   ;;  %s1481_s3 = inlined_call_operand.vmem [shape: f32[1,128], index: 3, kind: input, shape index: {}]   ;;  %s1482_s4 = inlined_call_operand.vmem [shape: f32[512,128], index: 4, kind: output, shape index: {}]  }
   0x1   :  { %v614_v0 = vld [vmem:[%s1478_s0] sm:$0xff]   ;;  %v869_v5 = vld [vmem:[%s1478_s0 + $0x8] sm:$0xff]   ;;  %v870_v12 = vld [vmem:[%s1478_s0 + $0x10] sm:$0xff]  }
   0x2   :  { %v962_v1 = vld [vmem:[%s1480_s2] ss:$0 sm:$0xff]  ;;  %v615_v2 = vunpack.c.l.bf16 %v614_v0  ;;  %v616_v4 = vunpack.c.h.bf16 %v614_v0  ;;  %v900_v6 = vld [vmem:[%s1479_s1 + $0x8] sm:$0xff]   ;;  %v619_v10 = vunpack.c.l.bf16 %v869_v5  ;;  %v901_v13 = vld [vmem:[%s1479_s1 + $0x10] sm:$0xff]   ;;  %v620_v16 = vunpack.c.h.bf16 %v869_v5 }
   0x3   :  { %v742_v3 = vld [vmem:[%s1479_s1] sm:$0xff]   ;;  %v747_v11 = vunpack.c.l.bf16 %v900_v6  ;;  %v748_v17 = vunpack.c.h.bf16 %v900_v6  ;;  %v871_v18 = vld [vmem:[%s1478_s0 + $0x18] sm:$0xff]   ;;  %v623_v20 = vunpack.c.l.bf16 %v870_v12  ;;  %v751_v21 = vunpack.c.l.bf16 %v901_v13  ;;  %v873_v54 = vld [vmem:[%s1478_s0 + $0x28] sm:$0xff]  }
   0x4   :  { %v976_v7 = vld [vmem:[%s1481_s3] ss:$0 sm:$0xff]  ;;  %v743_v8 = vunpack.c.l.bf16 %v742_v3  ;;  %v744_v9 = vunpack.c.h.bf16 %v742_v3  ;;  %v152_v14 = vmul.f32 %v615_v2, %v962_v1  ;;  %v153_v15 = vmul.f32 %v616_v4, %v962_v1  ;;  %v902_v23 = vld [vmem:[%s1479_s1 + $0x18] sm:$0xff]   ;;  %v904_v55 = vld [vmem:[%s1479_s1 + $0x28] sm:$0xff]  }
   0x5   :  { %v154_v19 = vmul.f32 %v619_v10, %v962_v1  ;;  %v624_v22 = vunpack.c.h.bf16 %v870_v12  ;;  %v155_v26 = vmul.f32 %v620_v16, %v962_v1  ;;  %v752_v27 = vunpack.c.h.bf16 %v901_v13  ;;  %v872_v40 = vld [vmem:[%s1478_s0 + $0x20] sm:$0xff]   ;;  %v874_v0 = vld [vmem:[%s1478_s0 + $0x30] sm:$0xff]   ;;  %v875_v16 = vld [vmem:[%s1478_s0 + $0x38] sm:$0xff]  }
   0x6   :  { %v223_v24 = vadd.f32 %v976_v7, %v152_v14  ;;  %v224_v25 = vadd.f32 %v976_v7, %v153_v15  ;;  %v156_v29 = vmul.f32 %v623_v20, %v962_v1  ;;  %v627_v31 = vunpack.c.l.bf16 %v871_v18  ;;  %v903_v45 = vld [vmem:[%s1479_s1 + $0x20] sm:$0xff]   ;;  %v905_v2 = vld [vmem:[%s1479_s1 + $0x30] sm:$0xff]  }
   0x7   :  { %v225_v28 = vadd.f32 %v976_v7, %v154_v19  ;;  %v157_v30 = vmul.f32 %v624_v22, %v962_v1  ;;  %v226_v34 = vadd.f32 %v976_v7, %v155_v26  ;;  %v755_v35 = vunpack.c.l.bf16 %v902_v23 }
   0x8   :  { %v415_v32 = vadd.f32 %v743_v8, %v223_v24  ;;  %v416_v33 = vadd.f32 %v744_v9, %v224_v25  ;;  %v227_v37 = vadd.f32 %v976_v7, %v156_v29  ;;  %v158_v39 = vmul.f32 %v627_v31, %v962_v1 }
   0x9   :  { %v417_v36 = vadd.f32 %v747_v11, %v225_v28  ;;  %v228_v38 = vadd.f32 %v976_v7, %v157_v30  ;;  %v418_v43 = vadd.f32 %v748_v17, %v226_v34  ;;  %v628_v44 = vunpack.c.h.bf16 %v871_v18  ;;  %v876_v34 = vld [vmem:[%s1478_s0 + $0x40] sm:$0xff]  }
   0xa   :  { %v479_v41 = vmax.f32 %v415_v32, 0.0  ;;  %v480_v42 = vmax.f32 %v416_v33, 0.0  ;;  %v419_v47 = vadd.f32 %v751_v21, %v227_v37  ;;  %v229_v49 = vadd.f32 %v976_v7, %v158_v39  ;;  %v906_v21 = vld [vmem:[%s1479_s1 + $0x38] sm:$0xff]   ;;  %v907_v39 = vld [vmem:[%s1479_s1 + $0x40] sm:$0xff]  }
   0xb   :  { %v481_v46 = vmax.f32 %v417_v36, 0.0  ;;  %v420_v48 = vadd.f32 %v752_v27, %v228_v38  ;;  %v482_v50 = vmax.f32 %v418_v43, 0.0  ;;  %v159_v51 = vmul.f32 %v628_v44, %v962_v1 }
   0xc   :  { %543 = vst [vmem:[%s1482_s4] sm:$0xff] %v479_v41  ;;  %544 = vst [vmem:[%s1482_s4 + $0x8] sm:$0xff] %v480_v42  ;;  %v756_v52 = vunpack.c.h.bf16 %v902_v23  ;;  %v631_v53 = vunpack.c.l.bf16 %v872_v40  ;;  %v483_v56 = vmax.f32 %v419_v47, 0.0  ;;  %v421_v58 = vadd.f32 %v755_v35, %v229_v49  ;;  %v908_v49 = vld [vmem:[%s1479_s1 + $0x48] sm:$0xff]  }
   0xd   :  { %545 = vst [vmem:[%s1482_s4 + $0x10] sm:$0xff] %v481_v46  ;;  %v484_v57 = vmax.f32 %v420_v48, 0.0  ;;  %v759_v59 = vunpack.c.l.bf16 %v903_v45  ;;  %546 = vst [vmem:[%s1482_s4 + $0x18] sm:$0xff] %v482_v50  ;;  %v230_v60 = vadd.f32 %v976_v7, %v159_v51  ;;  %v632_v62 = vunpack.c.h.bf16 %v872_v40  ;;  %v877_v48 = vld [vmem:[%s1478_s0 + $0x48] sm:$0xff]  }
   0xe   :  { %v160_v61 = vmul.f32 %v631_v53, %v962_v1  ;;  %v760_v63 = vunpack.c.h.bf16 %v903_v45  ;;  %547 = vst [vmem:[%s1482_s4 + $0x20] sm:$0xff] %v483_v56  ;;  %v485_v3 = vmax.f32 %v421_v58, 0.0  ;;  %v635_v4 = vunpack.c.l.bf16 %v873_v54  ;;  %v878_v58 = vld [vmem:[%s1478_s0 + $0x50] sm:$0xff]  }
   0xf   :  { %548 = vst [vmem:[%s1482_s4 + $0x28] sm:$0xff] %v484_v57  ;;  %v763_v5 = vunpack.c.l.bf16 %v904_v55  ;;  %v636_v6 = vunpack.c.h.bf16 %v873_v54  ;;  %v422_v8 = vadd.f32 %v756_v52, %v230_v60  ;;  %v161_v10 = vmul.f32 %v632_v62, %v962_v1 }
  0x10   :  { %v231_v9 = vadd.f32 %v976_v7, %v160_v61  ;;  %v764_v11 = vunpack.c.h.bf16 %v904_v55  ;;  %549 = vst [vmem:[%s1482_s4 + $0x30] sm:$0xff] %v485_v3  ;;  %v162_v12 = vmul.f32 %v635_v4, %v962_v1  ;;  %v639_v14 = vunpack.c.l.bf16 %v874_v0 }
  0x11   :  { %v163_v13 = vmul.f32 %v636_v6, %v962_v1  ;;  %v767_v15 = vunpack.c.l.bf16 %v905_v2  ;;  %v486_v17 = vmax.f32 %v422_v8, 0.0  ;;  %v232_v19 = vadd.f32 %v976_v7, %v161_v10  ;;  %v879_v10 = vld [vmem:[%s1478_s0 + $0x58] sm:$0xff]  }
  0x12   :  { %v423_v18 = vadd.f32 %v759_v59, %v231_v9  ;;  %v640_v20 = vunpack.c.h.bf16 %v874_v0  ;;  %v233_v22 = vadd.f32 %v976_v7, %v162_v12  ;;  %v164_v24 = vmul.f32 %v639_v14, %v962_v1 }
  0x13   :  { %v234_v23 = vadd.f32 %v976_v7, %v163_v13  ;;  %v768_v25 = vunpack.c.h.bf16 %v905_v2  ;;  %550 = vst [vmem:[%s1482_s4 + $0x38] sm:$0xff] %v486_v17  ;;  %v424_v27 = vadd.f32 %v760_v63, %v232_v19  ;;  %v643_v29 = vunpack.c.l.bf16 %v875_v16  ;;  %v909_v63 = vld [vmem:[%s1479_s1 + $0x50] sm:$0xff]   ;;  %v910_v19 = vld [vmem:[%s1479_s1 + $0x58] sm:$0xff]  }
  0x14   :  { %v487_v26 = vmax.f32 %v423_v18, 0.0  ;;  %v165_v28 = vmul.f32 %v640_v20, %v962_v1  ;;  %v425_v30 = vadd.f32 %v763_v5, %v233_v22  ;;  %v235_v32 = vadd.f32 %v976_v7, %v164_v24 }
  0x15   :  { %v426_v31 = vadd.f32 %v764_v11, %v234_v23  ;;  %v771_v33 = vunpack.c.l.bf16 %v906_v21  ;;  %v488_v35 = vmax.f32 %v424_v27, 0.0  ;;  %v166_v37 = vmul.f32 %v643_v29, %v962_v1 }
  0x16   :  { %551 = vst [vmem:[%s1482_s4 + $0x40] sm:$0xff] %v487_v26  ;;  %v236_v36 = vadd.f32 %v976_v7, %v165_v28  ;;  %v644_v38 = vunpack.c.h.bf16 %v875_v16  ;;  %v489_v40 = vmax.f32 %v425_v30, 0.0  ;;  %v427_v42 = vadd.f32 %v767_v15, %v235_v32  ;;  %v880_v28 = vld [vmem:[%s1478_s0 + $0x60] sm:$0xff]  }
  0x17   :  { %v490_v41 = vmax.f32 %v426_v31, 0.0  ;;  %v772_v43 = vunpack.c.h.bf16 %v906_v21  ;;  %552 = vst [vmem:[%s1482_s4 + $0x48] sm:$0xff] %v488_v35  ;;  %v237_v45 = vadd.f32 %v976_v7, %v166_v37  ;;  %v647_v47 = vunpack.c.l.bf16 %v876_v34 }
  0x18   :  { %v428_v44 = vadd.f32 %v768_v25, %v236_v36  ;;  %v167_v46 = vmul.f32 %v644_v38, %v962_v1  ;;  %553 = vst [vmem:[%s1482_s4 + $0x50] sm:$0xff] %v489_v40  ;;  %v491_v50 = vmax.f32 %v427_v42, 0.0  ;;  %v775_v51 = vunpack.c.l.bf16 %v907_v39  ;;  %v881_v42 = vld [vmem:[%s1478_s0 + $0x68] sm:$0xff]  }
  0x19   :  { %554 = vst [vmem:[%s1482_s4 + $0x58] sm:$0xff] %v490_v41  ;;  %v648_v52 = vunpack.c.h.bf16 %v876_v34  ;;  %v776_v53 = vunpack.c.h.bf16 %v907_v39  ;;  %v429_v55 = vadd.f32 %v771_v33, %v237_v45  ;;  %v168_v57 = vmul.f32 %v647_v47, %v962_v1  ;;  %v911_v33 = vld [vmem:[%s1479_s1 + $0x60] sm:$0xff]  }
  0x1a   :  { %v492_v54 = vmax.f32 %v428_v44, 0.0  ;;  %v238_v56 = vadd.f32 %v976_v7, %v167_v46  ;;  %555 = vst [vmem:[%s1482_s4 + $0x60] sm:$0xff] %v491_v50  ;;  %v651_v60 = vunpack.c.l.bf16 %v877_v48  ;;  %v779_v61 = vunpack.c.l.bf16 %v908_v49 }
  0x1b   :  { %v169_v59 = vmul.f32 %v648_v52, %v962_v1  ;;  %v652_v62 = vunpack.c.h.bf16 %v877_v48  ;;  %v493_v0 = vmax.f32 %v429_v55, 0.0  ;;  %v239_v3 = vadd.f32 %v976_v7, %v168_v57  ;;  %v882_v52 = vld [vmem:[%s1478_s0 + $0x70] sm:$0xff]  }
  0x1c   :  { %556 = vst [vmem:[%s1482_s4 + $0x68] sm:$0xff] %v492_v54  ;;  %v430_v2 = vadd.f32 %v772_v43, %v238_v56  ;;  %v780_v4 = vunpack.c.h.bf16 %v908_v49  ;;  %v170_v6 = vmul.f32 %v651_v60, %v962_v1  ;;  %v655_v9 = vunpack.c.l.bf16 %v878_v58  ;;  %v912_v43 = vld [vmem:[%s1479_s1 + $0x68] sm:$0xff]   ;;  %v913_v57 = vld [vmem:[%s1479_s1 + $0x70] sm:$0xff]  }
  0x1d   :  { %v240_v5 = vadd.f32 %v976_v7, %v169_v59  ;;  %v171_v8 = vmul.f32 %v652_v62, %v962_v1  ;;  %557 = vst [vmem:[%s1482_s4 + $0x70] sm:$0xff] %v493_v0  ;;  %v431_v12 = vadd.f32 %v775_v51, %v239_v3  ;;  %v783_v13 = vunpack.c.l.bf16 %v909_v63  ;;  %v883_v3 = vld [vmem:[%s1478_s0 + $0x78] sm:$0xff]  }
  0x1e   :  { %v494_v11 = vmax.f32 %v430_v2, 0.0  ;;  %v656_v14 = vunpack.c.h.bf16 %v878_v58  ;;  %v241_v16 = vadd.f32 %v976_v7, %v170_v6  ;;  %v172_v18 = vmul.f32 %v655_v9, %v962_v1 }
  0x1f   :  { %v432_v15 = vadd.f32 %v776_v53, %v240_v5  ;;  %v242_v17 = vadd.f32 %v976_v7, %v171_v8  ;;  %v495_v20 = vmax.f32 %v431_v12, 0.0  ;;  %v784_v22 = vunpack.c.h.bf16 %v909_v63 }
  0x20   :  { %558 = vst [vmem:[%s1482_s4 + $0x78] sm:$0xff] %v494_v11  ;;  %v173_v21 = vmul.f32 %v656_v14, %v962_v1  ;;  %v659_v23 = vunpack.c.l.bf16 %v879_v10  ;;  %v433_v25 = vadd.f32 %v779_v61, %v241_v16  ;;  %v243_v27 = vadd.f32 %v976_v7, %v172_v18 }
  0x21   :  { %v496_v24 = vmax.f32 %v432_v15, 0.0  ;;  %v434_v26 = vadd.f32 %v780_v4, %v242_v17  ;;  %559 = vst [vmem:[%s1482_s4 + $0x80] sm:$0xff] %v495_v20  ;;  %v787_v31 = vunpack.c.l.bf16 %v910_v19  ;;  %v660_v32 = vunpack.c.h.bf16 %v879_v10 }
  0x22   :  { %v244_v29 = vadd.f32 %v976_v7, %v173_v21  ;;  %v174_v30 = vmul.f32 %v659_v23, %v962_v1  ;;  %v497_v34 = vmax.f32 %v433_v25, 0.0  ;;  %v435_v36 = vadd.f32 %v783_v13, %v243_v27  ;;  %v914_v13 = vld [vmem:[%s1479_s1 + $0x78] sm:$0xff]   ;;  %v915_v27 = vld [vmem:[%s1479_s1 + $0x80] sm:$0xff]  }
  0x23   :  { %560 = vst [vmem:[%s1482_s4 + $0x88] sm:$0xff] %v496_v24  ;;  %v498_v35 = vmax.f32 %v434_v26, 0.0  ;;  %v788_v37 = vunpack.c.h.bf16 %v910_v19  ;;  %v175_v40 = vmul.f32 %v660_v32, %v962_v1  ;;  %v663_v41 = vunpack.c.l.bf16 %v880_v28 }
  0x24   :  { %v436_v38 = vadd.f32 %v784_v22, %v244_v29  ;;  %v245_v39 = vadd.f32 %v976_v7, %v174_v30  ;;  %561 = vst [vmem:[%s1482_s4 + $0x90] sm:$0xff] %v497_v34  ;;  %v499_v44 = vmax.f32 %v435_v36, 0.0  ;;  %v791_v45 = vunpack.c.l.bf16 %v911_v33  ;;  %v884_v22 = vld [vmem:[%s1478_s0 + $0x80] sm:$0xff]   ;;  %v885_v36 = vld [vmem:[%s1478_s0 + $0x88] sm:$0xff]  }
  0x25   :  { %562 = vst [vmem:[%s1482_s4 + $0x98] sm:$0xff] %v498_v35  ;;  %v664_v46 = vunpack.c.h.bf16 %v880_v28  ;;  %v792_v47 = vunpack.c.h.bf16 %v911_v33  ;;  %v246_v50 = vadd.f32 %v976_v7, %v175_v40  ;;  %v176_v51 = vmul.f32 %v663_v41, %v962_v1 }
  0x26   :  { %v500_v48 = vmax.f32 %v436_v38, 0.0  ;;  %v437_v49 = vadd.f32 %v787_v31, %v245_v39  ;;  %563 = vst [vmem:[%s1482_s4 + $0xa0] sm:$0xff] %v499_v44  ;;  %v667_v54 = vunpack.c.l.bf16 %v881_v42  ;;  %v795_v55 = vunpack.c.l.bf16 %v912_v43 }
  0x27   :  { %v177_v53 = vmul.f32 %v664_v46, %v962_v1  ;;  %v668_v56 = vunpack.c.h.bf16 %v881_v42  ;;  %v438_v59 = vadd.f32 %v788_v37, %v246_v50  ;;  %v247_v60 = vadd.f32 %v976_v7, %v176_v51  ;;  %v916_v37 = vld [vmem:[%s1479_s1 + $0x88] sm:$0xff]   ;;  %v886_v46 = vld [vmem:[%s1478_s0 + $0x90] sm:$0xff]  }
  0x28   :  { %564 = vst [vmem:[%s1482_s4 + $0xa8] sm:$0xff] %v500_v48  ;;  %v501_v58 = vmax.f32 %v437_v49, 0.0  ;;  %v796_v61 = vunpack.c.h.bf16 %v912_v43  ;;  %v178_v63 = vmul.f32 %v667_v54, %v962_v1  ;;  %v671_v2 = vunpack.c.l.bf16 %v882_v52  ;;  %v917_v51 = vld [vmem:[%s1479_s1 + $0x90] sm:$0xff]  }
  0x29   :  { %v248_v62 = vadd.f32 %v976_v7, %v177_v53  ;;  %v179_v0 = vmul.f32 %v668_v56, %v962_v1  ;;  %v502_v4 = vmax.f32 %v438_v59, 0.0  ;;  %v439_v5 = vadd.f32 %v791_v45, %v247_v60  ;;  %v887_v60 = vld [vmem:[%s1478_s0 + $0x98] sm:$0xff]  }
  0x2a   :  { %565 = vst [vmem:[%s1482_s4 + $0xb0] sm:$0xff] %v501_v58  ;;  %v799_v6 = vunpack.c.l.bf16 %v913_v57  ;;  %v672_v8 = vunpack.c.h.bf16 %v882_v52  ;;  %v249_v10 = vadd.f32 %v976_v7, %v178_v63  ;;  %v180_v12 = vmul.f32 %v671_v2, %v962_v1 }
  0x2b   :  { %v440_v9 = vadd.f32 %v792_v47, %v248_v62  ;;  %v250_v11 = vadd.f32 %v976_v7, %v179_v0  ;;  %566 = vst [vmem:[%s1482_s4 + $0xb8] sm:$0xff] %v502_v4  ;;  %v503_v14 = vmax.f32 %v439_v5, 0.0  ;;  %v800_v16 = vunpack.c.h.bf16 %v913_v57 }
  0x2c   :  { %v181_v15 = vmul.f32 %v672_v8, %v962_v1  ;;  %v675_v17 = vunpack.c.l.bf16 %v883_v3  ;;  %v441_v19 = vadd.f32 %v795_v55, %v249_v10  ;;  %v251_v21 = vadd.f32 %v976_v7, %v180_v12 }
  0x2d   :  { %v504_v18 = vmax.f32 %v440_v9, 0.0  ;;  %v442_v20 = vadd.f32 %v796_v61, %v250_v11  ;;  %567 = vst [vmem:[%s1482_s4 + $0xc0] sm:$0xff] %v503_v14  ;;  %v803_v25 = vunpack.c.l.bf16 %v914_v13  ;;  %v676_v26 = vunpack.c.h.bf16 %v883_v3 }
  0x2e   :  { %v252_v23 = vadd.f32 %v976_v7, %v181_v15  ;;  %v182_v24 = vmul.f32 %v675_v17, %v962_v1  ;;  %v505_v28 = vmax.f32 %v441_v19, 0.0  ;;  %v443_v30 = vadd.f32 %v799_v6, %v251_v21  ;;  %v918_v6 = vld [vmem:[%s1479_s1 + $0x98] sm:$0xff]   ;;  %v919_v21 = vld [vmem:[%s1479_s1 + $0xa0] sm:$0xff]  }
  0x2f   :  { %568 = vst [vmem:[%s1482_s4 + $0xc8] sm:$0xff] %v504_v18  ;;  %v506_v29 = vmax.f32 %v442_v20, 0.0  ;;  %v804_v31 = vunpack.c.h.bf16 %v914_v13  ;;  %v183_v34 = vmul.f32 %v676_v26, %v962_v1  ;;  %v679_v35 = vunpack.c.l.bf16 %v884_v22 }
  0x30   :  { %v444_v32 = vadd.f32 %v800_v16, %v252_v23  ;;  %v253_v33 = vadd.f32 %v976_v7, %v182_v24  ;;  %569 = vst [vmem:[%s1482_s4 + $0xd0] sm:$0xff] %v505_v28  ;;  %v507_v38 = vmax.f32 %v443_v30, 0.0  ;;  %v807_v39 = vunpack.c.l.bf16 %v915_v27  ;;  %v888_v16 = vld [vmem:[%s1478_s0 + $0xa0] sm:$0xff]   ;;  %v889_v30 = vld [vmem:[%s1478_s0 + $0xa8] sm:$0xff]  }
  0x31   :  { %570 = vst [vmem:[%s1482_s4 + $0xd8] sm:$0xff] %v506_v29  ;;  %v680_v40 = vunpack.c.h.bf16 %v884_v22  ;;  %v808_v41 = vunpack.c.h.bf16 %v915_v27  ;;  %v254_v44 = vadd.f32 %v976_v7, %v183_v34  ;;  %v184_v45 = vmul.f32 %v679_v35, %v962_v1 }
  0x32   :  { %v508_v42 = vmax.f32 %v444_v32, 0.0  ;;  %v445_v43 = vadd.f32 %v803_v25, %v253_v33  ;;  %571 = vst [vmem:[%s1482_s4 + $0xe0] sm:$0xff] %v507_v38  ;;  %v683_v48 = vunpack.c.l.bf16 %v885_v36  ;;  %v811_v49 = vunpack.c.l.bf16 %v916_v37 }
  0x33   :  { %v185_v47 = vmul.f32 %v680_v40, %v962_v1  ;;  %v684_v50 = vunpack.c.h.bf16 %v885_v36  ;;  %v446_v53 = vadd.f32 %v804_v31, %v254_v44  ;;  %v255_v54 = vadd.f32 %v976_v7, %v184_v45  ;;  %v920_v31 = vld [vmem:[%s1479_s1 + $0xa8] sm:$0xff]   ;;  %v890_v40 = vld [vmem:[%s1478_s0 + $0xb0] sm:$0xff]  }
  0x34   :  { %572 = vst [vmem:[%s1482_s4 + $0xe8] sm:$0xff] %v508_v42  ;;  %v509_v52 = vmax.f32 %v445_v43, 0.0  ;;  %v812_v55 = vunpack.c.h.bf16 %v916_v37  ;;  %v186_v57 = vmul.f32 %v683_v48, %v962_v1  ;;  %v687_v59 = vunpack.c.l.bf16 %v886_v46  ;;  %v921_v45 = vld [vmem:[%s1479_s1 + $0xb0] sm:$0xff]  }
  0x35   :  { %v256_v56 = vadd.f32 %v976_v7, %v185_v47  ;;  %v187_v58 = vmul.f32 %v684_v50, %v962_v1  ;;  %v510_v61 = vmax.f32 %v446_v53, 0.0  ;;  %v447_v62 = vadd.f32 %v807_v39, %v255_v54  ;;  %v891_v54 = vld [vmem:[%s1478_s0 + $0xb8] sm:$0xff]  }
  0x36   :  { %573 = vst [vmem:[%s1482_s4 + $0xf0] sm:$0xff] %v509_v52  ;;  %v815_v63 = vunpack.c.l.bf16 %v917_v51  ;;  %v688_v0 = vunpack.c.h.bf16 %v886_v46  ;;  %v257_v3 = vadd.f32 %v976_v7, %v186_v57  ;;  %v188_v5 = vmul.f32 %v687_v59, %v962_v1 }
  0x37   :  { %v448_v2 = vadd.f32 %v808_v41, %v256_v56  ;;  %v258_v4 = vadd.f32 %v976_v7, %v187_v58  ;;  %574 = vst [vmem:[%s1482_s4 + $0xf8] sm:$0xff] %v510_v61  ;;  %v511_v8 = vmax.f32 %v447_v62, 0.0  ;;  %v816_v10 = vunpack.c.h.bf16 %v917_v51 }
  0x38   :  { %v189_v9 = vmul.f32 %v688_v0, %v962_v1  ;;  %v691_v11 = vunpack.c.l.bf16 %v887_v60  ;;  %v449_v13 = vadd.f32 %v811_v49, %v257_v3  ;;  %v259_v15 = vadd.f32 %v976_v7, %v188_v5 }
  0x39   :  { %v512_v12 = vmax.f32 %v448_v2, 0.0  ;;  %v450_v14 = vadd.f32 %v812_v55, %v258_v4  ;;  %575 = vst [vmem:[%s1482_s4 + $0x100] sm:$0xff] %v511_v8  ;;  %v819_v19 = vunpack.c.l.bf16 %v918_v6  ;;  %v692_v20 = vunpack.c.h.bf16 %v887_v60 }
  0x3a   :  { %v260_v17 = vadd.f32 %v976_v7, %v189_v9  ;;  %v190_v18 = vmul.f32 %v691_v11, %v962_v1  ;;  %v513_v22 = vmax.f32 %v449_v13, 0.0  ;;  %v451_v24 = vadd.f32 %v815_v63, %v259_v15  ;;  %v922_v63 = vld [vmem:[%s1479_s1 + $0xb8] sm:$0xff]   ;;  %v923_v15 = vld [vmem:[%s1479_s1 + $0xc0] sm:$0xff]  }
  0x3b   :  { %576 = vst [vmem:[%s1482_s4 + $0x108] sm:$0xff] %v512_v12  ;;  %v514_v23 = vmax.f32 %v450_v14, 0.0  ;;  %v820_v25 = vunpack.c.h.bf16 %v918_v6  ;;  %v191_v28 = vmul.f32 %v692_v20, %v962_v1  ;;  %v695_v29 = vunpack.c.l.bf16 %v888_v16 }
  0x3c   :  { %v452_v26 = vadd.f32 %v816_v10, %v260_v17  ;;  %v261_v27 = vadd.f32 %v976_v7, %v190_v18  ;;  %577 = vst [vmem:[%s1482_s4 + $0x110] sm:$0xff] %v513_v22  ;;  %v515_v32 = vmax.f32 %v451_v24, 0.0  ;;  %v823_v33 = vunpack.c.l.bf16 %v919_v21  ;;  %v892_v10 = vld [vmem:[%s1478_s0 + $0xc0] sm:$0xff]   ;;  %v893_v24 = vld [vmem:[%s1478_s0 + $0xc8] sm:$0xff]  }
  0x3d   :  { %578 = vst [vmem:[%s1482_s4 + $0x118] sm:$0xff] %v514_v23  ;;  %v696_v34 = vunpack.c.h.bf16 %v888_v16  ;;  %v824_v35 = vunpack.c.h.bf16 %v919_v21  ;;  %v262_v38 = vadd.f32 %v976_v7, %v191_v28  ;;  %v192_v39 = vmul.f32 %v695_v29, %v962_v1 }
  0x3e   :  { %v516_v36 = vmax.f32 %v452_v26, 0.0  ;;  %v453_v37 = vadd.f32 %v819_v19, %v261_v27  ;;  %579 = vst [vmem:[%s1482_s4 + $0x120] sm:$0xff] %v515_v32  ;;  %v699_v42 = vunpack.c.l.bf16 %v889_v30  ;;  %v827_v43 = vunpack.c.l.bf16 %v920_v31 }
  0x3f   :  { %v193_v41 = vmul.f32 %v696_v34, %v962_v1  ;;  %v700_v44 = vunpack.c.h.bf16 %v889_v30  ;;  %v454_v47 = vadd.f32 %v820_v25, %v262_v38  ;;  %v263_v48 = vadd.f32 %v976_v7, %v192_v39  ;;  %v924_v25 = vld [vmem:[%s1479_s1 + $0xc8] sm:$0xff]   ;;  %v894_v34 = vld [vmem:[%s1478_s0 + $0xd0] sm:$0xff]  }
  0x40   :  { %580 = vst [vmem:[%s1482_s4 + $0x128] sm:$0xff] %v516_v36  ;;  %v517_v46 = vmax.f32 %v453_v37, 0.0  ;;  %v828_v49 = vunpack.c.h.bf16 %v920_v31  ;;  %v194_v51 = vmul.f32 %v699_v42, %v962_v1  ;;  %v703_v53 = vunpack.c.l.bf16 %v890_v40  ;;  %v925_v39 = vld [vmem:[%s1479_s1 + $0xd0] sm:$0xff]  }
  0x41   :  { %v264_v50 = vadd.f32 %v976_v7, %v193_v41  ;;  %v195_v52 = vmul.f32 %v700_v44, %v962_v1  ;;  %v518_v55 = vmax.f32 %v454_v47, 0.0  ;;  %v455_v56 = vadd.f32 %v823_v33, %v263_v48  ;;  %v895_v48 = vld [vmem:[%s1478_s0 + $0xd8] sm:$0xff]  }
  0x42   :  { %581 = vst [vmem:[%s1482_s4 + $0x130] sm:$0xff] %v517_v46  ;;  %v831_v57 = vunpack.c.l.bf16 %v921_v45  ;;  %v704_v58 = vunpack.c.h.bf16 %v890_v40  ;;  %v265_v60 = vadd.f32 %v976_v7, %v194_v51  ;;  %v196_v62 = vmul.f32 %v703_v53, %v962_v1 }
  0x43   :  { %v456_v59 = vadd.f32 %v824_v35, %v264_v50  ;;  %v266_v61 = vadd.f32 %v976_v7, %v195_v52  ;;  %582 = vst [vmem:[%s1482_s4 + $0x138] sm:$0xff] %v518_v55  ;;  %v519_v0 = vmax.f32 %v455_v56, 0.0  ;;  %v832_v3 = vunpack.c.h.bf16 %v921_v45 }
  0x44   :  { %v197_v2 = vmul.f32 %v704_v58, %v962_v1  ;;  %v707_v4 = vunpack.c.l.bf16 %v891_v54  ;;  %v457_v6 = vadd.f32 %v827_v43, %v265_v60  ;;  %v267_v9 = vadd.f32 %v976_v7, %v196_v62 }
  0x45   :  { %v520_v5 = vmax.f32 %v456_v59, 0.0  ;;  %v458_v8 = vadd.f32 %v828_v49, %v266_v61  ;;  %583 = vst [vmem:[%s1482_s4 + $0x140] sm:$0xff] %v519_v0  ;;  %v835_v13 = vunpack.c.l.bf16 %v922_v63  ;;  %v708_v14 = vunpack.c.h.bf16 %v891_v54 }
  0x46   :  { %v268_v11 = vadd.f32 %v976_v7, %v197_v2  ;;  %v198_v12 = vmul.f32 %v707_v4, %v962_v1  ;;  %v521_v16 = vmax.f32 %v457_v6, 0.0  ;;  %v459_v18 = vadd.f32 %v831_v57, %v267_v9  ;;  %v926_v57 = vld [vmem:[%s1479_s1 + $0xd8] sm:$0xff]   ;;  %v927_v9 = vld [vmem:[%s1479_s1 + $0xe0] sm:$0xff]  }
  0x47   :  { %584 = vst [vmem:[%s1482_s4 + $0x148] sm:$0xff] %v520_v5  ;;  %v522_v17 = vmax.f32 %v458_v8, 0.0  ;;  %v836_v19 = vunpack.c.h.bf16 %v922_v63  ;;  %v199_v22 = vmul.f32 %v708_v14, %v962_v1  ;;  %v711_v23 = vunpack.c.l.bf16 %v892_v10 }
  0x48   :  { %v460_v20 = vadd.f32 %v832_v3, %v268_v11  ;;  %v269_v21 = vadd.f32 %v976_v7, %v198_v12  ;;  %585 = vst [vmem:[%s1482_s4 + $0x150] sm:$0xff] %v521_v16  ;;  %v523_v26 = vmax.f32 %v459_v18, 0.0  ;;  %v839_v27 = vunpack.c.l.bf16 %v923_v15  ;;  %v896_v3 = vld [vmem:[%s1478_s0 + $0xe0] sm:$0xff]   ;;  %v897_v18 = vld [vmem:[%s1478_s0 + $0xe8] sm:$0xff]  }
  0x49   :  { %586 = vst [vmem:[%s1482_s4 + $0x158] sm:$0xff] %v522_v17  ;;  %v712_v28 = vunpack.c.h.bf16 %v892_v10  ;;  %v840_v29 = vunpack.c.h.bf16 %v923_v15  ;;  %v270_v32 = vadd.f32 %v976_v7, %v199_v22  ;;  %v200_v33 = vmul.f32 %v711_v23, %v962_v1 }
  0x4a   :  { %v524_v30 = vmax.f32 %v460_v20, 0.0  ;;  %v461_v31 = vadd.f32 %v835_v13, %v269_v21  ;;  %587 = vst [vmem:[%s1482_s4 + $0x160] sm:$0xff] %v523_v26  ;;  %v715_v36 = vunpack.c.l.bf16 %v893_v24  ;;  %v843_v37 = vunpack.c.l.bf16 %v924_v25 }
  0x4b   :  { %v201_v35 = vmul.f32 %v712_v28, %v962_v1  ;;  %v716_v38 = vunpack.c.h.bf16 %v893_v24  ;;  %v462_v41 = vadd.f32 %v836_v19, %v270_v32  ;;  %v271_v42 = vadd.f32 %v976_v7, %v200_v33  ;;  %v928_v19 = vld [vmem:[%s1479_s1 + $0xe8] sm:$0xff]   ;;  %v898_v28 = vld [vmem:[%s1478_s0 + $0xf0] sm:$0xff]  }
  0x4c   :  { %588 = vst [vmem:[%s1482_s4 + $0x168] sm:$0xff] %v524_v30  ;;  %v525_v40 = vmax.f32 %v461_v31, 0.0  ;;  %v844_v43 = vunpack.c.h.bf16 %v924_v25  ;;  %v202_v45 = vmul.f32 %v715_v36, %v962_v1  ;;  %v719_v47 = vunpack.c.l.bf16 %v894_v34  ;;  %v929_v33 = vld [vmem:[%s1479_s1 + $0xf0] sm:$0xff]  }
  0x4d   :  { %v272_v44 = vadd.f32 %v976_v7, %v201_v35  ;;  %v203_v46 = vmul.f32 %v716_v38, %v962_v1  ;;  %v526_v49 = vmax.f32 %v462_v41, 0.0  ;;  %v463_v50 = vadd.f32 %v839_v27, %v271_v42  ;;  %v899_v42 = vld [vmem:[%s1478_s0 + $0xf8] sm:$0xff]  }
  0x4e   :  { %589 = vst [vmem:[%s1482_s4 + $0x170] sm:$0xff] %v525_v40  ;;  %v847_v51 = vunpack.c.l.bf16 %v925_v39  ;;  %v720_v52 = vunpack.c.h.bf16 %v894_v34  ;;  %v273_v54 = vadd.f32 %v976_v7, %v202_v45  ;;  %v204_v56 = vmul.f32 %v719_v47, %v962_v1 }
  0x4f   :  { %v464_v53 = vadd.f32 %v840_v29, %v272_v44  ;;  %v274_v55 = vadd.f32 %v976_v7, %v203_v46  ;;  %590 = vst [vmem:[%s1482_s4 + $0x178] sm:$0xff] %v526_v49  ;;  %v527_v58 = vmax.f32 %v463_v50, 0.0  ;;  %v848_v60 = vunpack.c.h.bf16 %v925_v39 }
  0x50   :  { %v205_v59 = vmul.f32 %v720_v52, %v962_v1  ;;  %v723_v61 = vunpack.c.l.bf16 %v895_v48  ;;  %v465_v63 = vadd.f32 %v843_v37, %v273_v54  ;;  %v275_v2 = vadd.f32 %v976_v7, %v204_v56 }
  0x51   :  { %v528_v62 = vmax.f32 %v464_v53, 0.0  ;;  %v466_v0 = vadd.f32 %v844_v43, %v274_v55  ;;  %591 = vst [vmem:[%s1482_s4 + $0x180] sm:$0xff] %v527_v58  ;;  %v851_v6 = vunpack.c.l.bf16 %v926_v57  ;;  %v724_v8 = vunpack.c.h.bf16 %v895_v48 }
  0x52   :  { %v276_v4 = vadd.f32 %v976_v7, %v205_v59  ;;  %v206_v5 = vmul.f32 %v723_v61, %v962_v1  ;;  %v529_v10 = vmax.f32 %v465_v63, 0.0  ;;  %v467_v12 = vadd.f32 %v847_v51, %v275_v2  ;;  %v930_v51 = vld [vmem:[%s1479_s1 + $0xf8] sm:$0xff]  }
  0x53   :  { %592 = vst [vmem:[%s1482_s4 + $0x188] sm:$0xff] %v528_v62  ;;  %v530_v11 = vmax.f32 %v466_v0, 0.0  ;;  %v852_v13 = vunpack.c.h.bf16 %v926_v57  ;;  %v207_v16 = vmul.f32 %v724_v8, %v962_v1  ;;  %v727_v17 = vunpack.c.l.bf16 %v896_v3 }
  0x54   :  { %v468_v14 = vadd.f32 %v848_v60, %v276_v4  ;;  %v277_v15 = vadd.f32 %v976_v7, %v206_v5  ;;  %593 = vst [vmem:[%s1482_s4 + $0x190] sm:$0xff] %v529_v10  ;;  %v531_v20 = vmax.f32 %v467_v12, 0.0  ;;  %v855_v21 = vunpack.c.l.bf16 %v927_v9 }
  0x55   :  { %594 = vst [vmem:[%s1482_s4 + $0x198] sm:$0xff] %v530_v11  ;;  %v728_v22 = vunpack.c.h.bf16 %v896_v3  ;;  %v856_v23 = vunpack.c.h.bf16 %v927_v9  ;;  %v278_v26 = vadd.f32 %v976_v7, %v207_v16  ;;  %v208_v27 = vmul.f32 %v727_v17, %v962_v1 }
  0x56   :  { %v532_v24 = vmax.f32 %v468_v14, 0.0  ;;  %v469_v25 = vadd.f32 %v851_v6, %v277_v15  ;;  %595 = vst [vmem:[%s1482_s4 + $0x1a0] sm:$0xff] %v531_v20  ;;  %v731_v30 = vunpack.c.l.bf16 %v897_v18  ;;  %v859_v31 = vunpack.c.l.bf16 %v928_v19 }
  0x57   :  { %v209_v29 = vmul.f32 %v728_v22, %v962_v1  ;;  %v732_v32 = vunpack.c.h.bf16 %v897_v18  ;;  %v470_v35 = vadd.f32 %v852_v13, %v278_v26  ;;  %v279_v36 = vadd.f32 %v976_v7, %v208_v27 }
  0x58   :  { %596 = vst [vmem:[%s1482_s4 + $0x1a8] sm:$0xff] %v532_v24  ;;  %v533_v34 = vmax.f32 %v469_v25, 0.0  ;;  %v860_v37 = vunpack.c.h.bf16 %v928_v19  ;;  %v210_v39 = vmul.f32 %v731_v30, %v962_v1  ;;  %v735_v41 = vunpack.c.l.bf16 %v898_v28 }
  0x59   :  { %v280_v38 = vadd.f32 %v976_v7, %v209_v29  ;;  %v211_v40 = vmul.f32 %v732_v32, %v962_v1  ;;  %v534_v43 = vmax.f32 %v470_v35, 0.0  ;;  %v471_v44 = vadd.f32 %v855_v21, %v279_v36 }
  0x5a   :  { %597 = vst [vmem:[%s1482_s4 + $0x1b0] sm:$0xff] %v533_v34  ;;  %v863_v45 = vunpack.c.l.bf16 %v929_v33  ;;  %v736_v46 = vunpack.c.h.bf16 %v898_v28  ;;  %v281_v48 = vadd.f32 %v976_v7, %v210_v39  ;;  %v212_v50 = vmul.f32 %v735_v41, %v962_v1 }
  0x5b   :  { %v472_v47 = vadd.f32 %v856_v23, %v280_v38  ;;  %v282_v49 = vadd.f32 %v976_v7, %v211_v40  ;;  %598 = vst [vmem:[%s1482_s4 + $0x1b8] sm:$0xff] %v534_v43  ;;  %v535_v52 = vmax.f32 %v471_v44, 0.0  ;;  %v864_v54 = vunpack.c.h.bf16 %v929_v33 }
  0x5c   :  { %v213_v53 = vmul.f32 %v736_v46, %v962_v1  ;;  %v739_v55 = vunpack.c.l.bf16 %v899_v42  ;;  %v473_v57 = vadd.f32 %v859_v31, %v281_v48  ;;  %v283_v59 = vadd.f32 %v976_v7, %v212_v50 }
  0x5d   :  { %v536_v56 = vmax.f32 %v472_v47, 0.0  ;;  %v474_v58 = vadd.f32 %v860_v37, %v282_v49  ;;  %599 = vst [vmem:[%s1482_s4 + $0x1c0] sm:$0xff] %v535_v52  ;;  %v867_v62 = vunpack.c.l.bf16 %v930_v51  ;;  %v740_v63 = vunpack.c.h.bf16 %v899_v42 }
  0x5e   :  { %v284_v60 = vadd.f32 %v976_v7, %v213_v53  ;;  %v214_v61 = vmul.f32 %v739_v55, %v962_v1  ;;  %v537_v0 = vmax.f32 %v473_v57, 0.0  ;;  %v475_v3 = vadd.f32 %v863_v45, %v283_v59 }
  0x5f   :  { %600 = vst [vmem:[%s1482_s4 + $0x1c8] sm:$0xff] %v536_v56  ;;  %v538_v2 = vmax.f32 %v474_v58, 0.0  ;;  %v215_v6 = vmul.f32 %v740_v63, %v962_v1  ;;  %v868_v8 = vunpack.c.h.bf16 %v930_v51 }
  0x60   :  { %v476_v4 = vadd.f32 %v864_v54, %v284_v60  ;;  %v285_v5 = vadd.f32 %v976_v7, %v214_v61  ;;  %601 = vst [vmem:[%s1482_s4 + $0x1d0] sm:$0xff] %v537_v0  ;;  %v539_v9 = vmax.f32 %v475_v3, 0.0 }
  0x61   :  { %602 = vst [vmem:[%s1482_s4 + $0x1d8] sm:$0xff] %v538_v2  ;;  %v286_v12 = vadd.f32 %v976_v7, %v215_v6 }
  0x62   :  { %v540_v10 = vmax.f32 %v476_v4, 0.0  ;;  %v477_v11 = vadd.f32 %v867_v62, %v285_v5  ;;  %603 = vst [vmem:[%s1482_s4 + $0x1e0] sm:$0xff] %v539_v9 }
  0x63   :  { %v478_v13 = vadd.f32 %v868_v8, %v286_v12 }
  0x64   :  { %604 = vst [vmem:[%s1482_s4 + $0x1e8] sm:$0xff] %v540_v10  ;;  %v541_v1 = vmax.f32 %v477_v11, 0.0 }
  0x65   :  { %v542_v14 = vmax.f32 %v478_v13, 0.0 }
  0x66   :  { %605 = vst [vmem:[%s1482_s4 + $0x1f0] sm:$0xff] %v541_v1 }
  0x67   :  { %606 = vst [vmem:[%s1482_s4 + $0x1f8] sm:$0xff] %v542_v14 }

// kernel: basic_block_forward.3
= control target key start
LH: loop header
LB: loop body
LE: loop exit
PB: predicated region body
PF: predicated region fallthrough
CT: control target
= control target key end

     0   :  { %s3901_s12 = smov 0   ;;  %s5311_s0 = inlined_call_operand.vmem [shape: bf16[2,16,16,128], index: 0, kind: input, shape index: {}]   ;;  %s5312_s1 = inlined_call_operand.vmem [shape: bf16[3,384,128], index: 1, kind: input, shape index: {}]   ;;  %s5313_s2 = inlined_call_operand.vmem [shape: bf16[2,256,128], index: 2, kind: output, shape index: {0}]   ;;  %s5314_s3 = inlined_call_operand.vmem [shape: f32[2,2,128], index: 3, kind: output, shape index: {1}]  }
   0x1 LB: > { %s2778_s13 = sadd.s32 4294967295, %s3878_s12   ;;  %p2782_p0 = scmp.ge.s32.totalorder %s3878_s12, 1  ;;  %s3878_s12 = sphi %s3901_s12, %s14_s12  }
   0x2   : > { %p140_p1 = scmp.lt.s32.totalorder %s3878_s12, 3 }
   0x4   : > { %p141_p2 = pnand %p2782_p0, %p140_p1 }
   0x6   : > { %144 = sbr.rel (%p141_p2) target bundleno = 550 (0x226), region = 28 }
   0xb   : > { %v3775_v0 = vld [vmem:[%s5312_s1 + $0x138] sm:$0xff]   ;;  %v3777_v2 = vld [vmem:[%s5312_s1 + $0x130] sm:$0xff]   ;;  %p3920_p3 = scmp.lt.s32.totalorder %s2778_s13, 1  ;;  %v3880_v3 = vmov 0.0   ;;  %v3779_v5 = vld [vmem:[%s5312_s1 + $0x128] sm:$0xff]   ;;  %vm359_vm0 = vcmask 1047554  }
   0xc   : > { %v3776_v1 = vld [vmem:[%s5312_s1 + $0xf8] sm:$0xff]   ;;  %3198 = vmatprep.subr.bf16.mxu0 %v3775_v0  ;;  %3750 = vmatprep.subr.bf16.mxu1 %v3775_v0  ;;  %288 = vst [vmem:[#allocation2 + $0x140] sm:$0x3] %v3880_v3  ;;  %280 = vst [vmem:[#allocation2 + $0x90] sm:$0xff] %v3880_v3  ;;  %v3778_v4 = vld [vmem:[%s5312_s1 + $0xf0] sm:$0xff]   ;;  %vm516_vm1 = vcmask 1046528  }
   0xd   : > { %282 = vst [vmem:[#allocation2 + $0xe8] sm:$0x3] %v3880_v3  ;;  %286 = vst [vmem:[#allocation2 + $0x148] sm:$0x3] %v3880_v3  ;;  %3199 = vmatpush3.bf16.msra.mxu0 %v3776_v1  ;;  %3758 = vmatpush3.bf16.msra.mxu1 %v3776_v1  ;;  %s5370_s13 = smov (!%p3920_p3, %s2778_s13), 1  ;;  %v3780_v6 = vld [vmem:[%s5312_s1 + $0xe8] sm:$0xff]  }
   0xe   : > { %289 = vst [vmem:[#allocation2 + $0x180] sm:$0x3] %v3880_v3  ;;  %290 = vst [vmem:[#allocation2 + $0x88] sm:$0x3] %v3880_v3  ;;  %3200 = vmatprep.subr.bf16.mxu0 %v3777_v2  ;;  %3751 = vmatprep.subr.bf16.mxu1 %v3777_v2  ;;  %v3781_v7 = vld [vmem:[%s5312_s1 + $0x120] sm:$0xff]   ;;  %s2990_s29 = sshll.u32 %s5370_s13, 7 }
   0xf   : > { %291 = vst [vmem:[#allocation2 + $0x60] sm:$0x3] %v3880_v3  ;;  %292 = vst [vmem:[#allocation2 + $0x188] sm:$0x3] %v3880_v3  ;;  %v3782_v8 = vld [vmem:[%s5312_s1 + $0xe0] sm:$0xff]   ;;  %v3783_v9 = vld [vmem:[%s5312_s1 + $0x118] sm:$0xff]   ;;  %s3954_s9 = scalar_lea.vmem %s5311_s0, %s2990_s29  ;;  %s5182_s24 = scalar_lea.vmem %s5313_s2, %s2990_s29 }
  0x10   : > { %293 = vst [vmem:[#allocation2 + $0x38] sm:$0x3] %v3880_v3  ;;  %294 = vst [vmem:[#allocation2 + $0x20] sm:$0x3] %v3880_v3  ;;  %v3784_v10 = vld [vmem:[%s5312_s1 + $0xd8] sm:$0xff]   ;;  %v3785_v11 = vld [vmem:[%s5312_s1 + $0x110] sm:$0xff]  }
  0x11   : > { %295 = vst [vmem:[#allocation2 + $0xa8] sm:$0x3] %v3880_v3  ;;  %296 = vst [vmem:[#allocation2 + $0xc0] sm:$0x3] %v3880_v3  ;;  %3201 = vmatpush3.bf16.msra.mxu0 %v3778_v4  ;;  %3759 = vmatpush3.bf16.msra.mxu1 %v3778_v4  ;;  %v3025_v12 = vld [vmem:[%s3954_s9] sm:$0xff]   ;;  %v3786_v15 = vld [vmem:[%s5312_s1 + $0xd0] sm:$0xff]  }
  0x12   : > { %297 = vst [vmem:[#allocation2 + $0xb0] sm:$0x3] %v3880_v3  ;;  %298 = vst [vmem:[#allocation2 + $0x68] sm:$0x3] %v3880_v3  ;;  %3202 = vmatprep.subr.bf16.mxu0 %v3779_v5  ;;  %3752 = vmatprep.subr.bf16.mxu1 %v3779_v5  ;;  %v3791_v13 = vld [vmem:[%s3954_s9] sm:$0xff]  ;;  %v3026_v16 = vunpack.c.l.bf16 %v3025_v12  ;;  %v3027_v17 = vunpack.c.h.bf16 %v3025_v12  ;;  %v3787_v25 = vld [vmem:[%s5312_s1 + $0x108] sm:$0xff]  }
  0x13   : > { %299 = vst [vmem:[#allocation2 + $0x48] sm:$0x3] %v3880_v3  ;;  %300 = vst [vmem:[#allocation2 + $0xe0] sm:$0x3] %v3880_v3  ;;  %v3965_v14 = vld [vmem:[%s3954_s9 + $0x60] sm:$0xff]   ;;  %1099 = vmatprep.mubr.bf16.mxu0 %v3791_v13  ;;  %v3990_v35 = vld [vmem:[%s3954_s9 + $0x8] sm:$0xff]  }
  0x14   : > { %301 = vst [vmem:[#allocation2 + $0x168] sm:$0x3] %v3880_v3  ;;  %302 = vst [vmem:[#allocation2 + $0x1a0] sm:$0x3] %v3880_v3  ;;  %v3074_v18 = vunpack.c.l.bf16 %v3965_v14  ;;  %v3075_v19 = vunpack.c.h.bf16 %v3965_v14  ;;  %v3792_v20 = vld [vmem:[%s3954_s9 + $0x60] sm:$0xff]  ;;  %v362_v22 = vrot.slane %v3026_v16, 6  ;;  %v3030_v41 = vunpack.c.l.bf16 %v3990_v35 }
  0x15   : > { %303 = vst [vmem:[#allocation2 + $0x130] sm:$0x3] %v3880_v3  ;;  %287 = vst [vmem:[#allocation2 + $0xe8] sm:$0x3] %v3880_v3  ;;  %3203 = vmatpush3.bf16.msra.mxu0 %v3780_v6  ;;  %3760 = vmatpush3.bf16.msra.mxu1 %v3780_v6  ;;  %v310_v21 = vld [vmem:[#allocation2 + $0x140] sm:$0x3]  ;;  %v3031_v44 = vunpack.c.h.bf16 %v3990_v35 }
  0x16   : > { %304 = vst [vmem:[#allocation2 + $0x148] sm:$0x3] %v3880_v3  ;;  %3204 = vmatprep.subr.bf16.mxu0 %v3781_v7  ;;  %3753 = vmatprep.subr.bf16.mxu1 %v3781_v7  ;;  %v397_v23 = vrot.slane %v3027_v17, 6  ;;  %v386_v26 = vrot.slane %v3074_v18, 6  ;;  %v409_v27 = vrot.slane %v3075_v19, 6  ;;  %v3978_v28 = vrot.slane %v3026_v16, 1 }
  0x17   : > { %1195 = vmatprep.mubr.bf16.mxu1 %v3792_v20  ;;  %v3981_v29 = vsel %vm359_vm0, %v362_v22, %v310_v21  ;;  %v3788_v36 = vld [vmem:[%s5312_s1 + $0xc8] sm:$0xff]   ;;  %v3789_v37 = vld [vmem:[%s5312_s1 + $0x100] sm:$0xff]   ;;  %v4007_v47 = vrot.slane %v3027_v17, 1  ;;  %v364_v50 = vrot.slane %v3030_v41, 6  ;;  %v3793_v55 = vld [vmem:[%s5312_s1 + $0x178] sm:$0xff]   ;;  %v398_v56 = vrot.slane %v3031_v44, 6 }
  0x18   : > { %v433_v30 = vsel %vm359_vm0, %v397_v23, %v362_v22  ;;  %v415_v31 = vrot.slane %v3981_v29, 6  ;;  %v522_v32 = vrot.slane %v3981_v29, 1  ;;  %v445_v39 = vsel %vm359_vm0, %v409_v27, %v386_v26  ;;  %v4005_v45 = vld [vmem:[%s3954_s9 + $0x68] sm:$0xff]   ;;  %v313_v46 = vld [vmem:[#allocation2 + $0x180] sm:$0x3]  ;;  %v3794_v63 = vld [vmem:[%s5312_s1 + $0xb8] sm:$0xff]  }
  0x19   : > { %3205 = vmatpush3.bf16.msra.mxu0 %v3782_v8  ;;  %3761 = vmatpush3.bf16.msra.mxu1 %v3782_v8  ;;  %v523_v33 = vrot.slane %v433_v30, 1  ;;  %v583_v43 = vrot.slane %v445_v39, 1  ;;  %v3790_v51 = vld [vmem:[%s5312_s1 + $0xc0] sm:$0xff]   ;;  %v3078_v58 = vunpack.c.l.bf16 %v4005_v45  ;;  %v3079_v59 = vunpack.c.h.bf16 %v4005_v45  ;;  %v4041_v3 = vld [vmem:[%s3954_s9 + $0x10] sm:$0xff]   ;;  %v3797_v14 = vld [vmem:[%s3954_s9 + $0x68] sm:$0xff]  ;;  %s2787_s29 = sshll.u32 %s5370_s13, 1 }
  0x1a   : > { %3206 = vmatprep.subr.bf16.mxu0 %v3783_v9  ;;  %3754 = vmatprep.subr.bf16.mxu1 %v3783_v9  ;;  %v346_v24 = vld [vmem:[#allocation2 + $0xe0] sm:$0x3]  ;;  %v451_v42 = vsel %vm359_vm0, %v415_v31, %v397_v23  ;;  %v4030_v60 = vsel %vm359_vm0, %v364_v50, %v313_v46  ;;  %v4032_v61 = vrot.slane %v3074_v18, 1  ;;  %v434_v1 = vsel %vm359_vm0, %v398_v56, %v364_v50  ;;  %v3795_v9 = vld [vmem:[%s5312_s1 + $0x170] sm:$0xff]   ;;  %v3798_v46 = vld [vmem:[%s5312_s1 + $0x168] sm:$0xff]   ;;  %s181_s27 = scalar_lea.vmem %s5314_s3, %s2787_s29 }
  0x1b   : > { %v3987_v34 = vsel %vm359_vm0, %v386_v26, %v346_v24  ;;  %v525_v48 = vrot.slane %v451_v42, 1  ;;  %v524_v52 = vsel %vm516_vm1, %v522_v32, %v523_v33  ;;  %v416_v0 = vrot.slane %v4030_v60, 6  ;;  %v349_v2 = vld [vmem:[#allocation2 + $0x168] sm:$0x3]  ;;  %v3800_v23 = vld [vmem:[%s5312_s1 + $0xb0] sm:$0xff]   ;;  %v4183_v35 = vld [vmem:[%s3954_s9 + $0x18] sm:$0xff] }
  0x1c   : > { %v427_v38 = vrot.slane %v3987_v34, 6  ;;  %v5318_v40 = vrot.slane %v3987_v34, 1  ;;  %v4045_v4 = vrot.slane %v3075_v19, 1  ;;  %v388_v6 = vrot.slane %v3078_v58, 6  ;;  %v4068_v19 = vld [vmem:[%s3954_s9 + $0x70] sm:$0xff]  }
  0x1d   : > { %3207 = vmatpush3.bf16.msra.mxu0 %v3784_v10  ;;  %3762 = vmatpush3.bf16.msra.mxu1 %v3784_v10  ;;  %v526_v57 = vsel %vm516_vm1, %v523_v33, %v525_v48  ;;  %v410_v7 = vrot.slane %v3079_v59, 6  ;;  %v3796_v10 = vld [vmem:[%s3954_s9 + $0x8] sm:$0xff]  ;;  %v527_v12 = vrot.slane %v4030_v60, 1  ;;  %v528_v13 = vrot.slane %v434_v1, 1  ;;  %v3801_v1 = vld [vmem:[%s3954_s9 + $0x10] sm:$0xff] }
  0x1e   : > { %3208 = vmatprep.subr.bf16.mxu0 %v3785_v11  ;;  %3755 = vmatprep.subr.bf16.mxu1 %v3785_v11  ;;  %v463_v49 = vsel %vm359_vm0, %v427_v38, %v409_v27  ;;  %v584_v53 = vsel %vm516_vm1, %v5318_v40, %v583_v43  ;;  %v4047_v5 = vpack.c.bf16 %v526_v57, %v524_v52  ;;  %v3034_v18 = vunpack.c.l.bf16 %v4041_v3  ;;  %v316_v26 = vld [vmem:[#allocation2 + $0x88] sm:$0x3]  ;;  %v4079_v27 = vld [vmem:[%s3954_s9 + $0x18] sm:$0xff]   ;;  %v3799_v57 = vld [vmem:[%s5312_s1 + $0x160] sm:$0xff]  }
  0x1f   : > { %v585_v54 = vrot.slane %v463_v49, 1  ;;  %v452_v11 = vsel %vm359_vm0, %v416_v0, %v398_v56  ;;  %v4063_v16 = vsel %vm359_vm0, %v388_v6, %v349_v2  ;;  %v446_v17 = vsel %vm359_vm0, %v410_v7, %v388_v6  ;;  %v3802_v2 = vld [vmem:[%s3954_s9 + $0x70] sm:$0xff] }
  0x20   : > { %v428_v20 = vrot.slane %v4063_v16, 6  ;;  %v5317_v21 = vrot.slane %v4063_v16, 1  ;;  %v588_v22 = vrot.slane %v446_v17, 1  ;;  %v3035_v24 = vunpack.c.h.bf16 %v4041_v3  ;;  %v4264_v40 = vld [vmem:[%s3954_s9 + $0x30] sm:$0xff]  }
  0x21   : > { %3209 = vmatpush3.bf16.msra.mxu0 %v3786_v15  ;;  %3763 = vmatpush3.bf16.msra.mxu1 %v3786_v15  ;;  %v586_v62 = vsel %vm516_vm1, %v583_v43, %v585_v54  ;;  %v530_v15 = vrot.slane %v452_v11, 1  ;;  %v529_v30 = vsel %vm516_vm1, %v527_v12, %v528_v13  ;;  %v3083_v42 = vunpack.c.h.bf16 %v4068_v19  ;;  %v352_v43 = vld [vmem:[#allocation2 + $0x1a0] sm:$0x3] }
  0x22   : > { %3210 = vmatprep.subr.bf16.mxu0 %v3787_v25  ;;  %3756 = vmatprep.subr.bf16.mxu1 %v3787_v25  ;;  %v4053_v8 = vpack.c.bf16 %v586_v62, %v584_v53  ;;  %v366_v25 = vrot.slane %v3034_v18, 6  ;;  %v464_v33 = vsel %vm359_vm0, %v428_v20, %v410_v7  ;;  %v399_v39 = vrot.slane %v3035_v24, 6 }
  0x23   : > { %v531_v31 = vsel %vm516_vm1, %v528_v13, %v530_v15  ;;  %v590_v38 = vrot.slane %v464_v33, 1  ;;  %v3038_v50 = vunpack.c.l.bf16 %v4079_v27  ;;  %v411_v53 = vrot.slane %v3083_v42, 6  ;;  %v319_v13 = vld [vmem:[#allocation2 + $0x60] sm:$0x3] }
  0x24   : > { %v4101_v49 = vsel %vm359_vm0, %v366_v25, %v316_v26  ;;  %v435_v62 = vsel %vm359_vm0, %v399_v39, %v366_v25  ;;  %v3039_v20 = vunpack.c.h.bf16 %v4079_v27  ;;  %v4137_v25 = vld [vmem:[%s3954_s9 + $0x20] sm:$0xff]   ;;  %v667_v45 = vsel %vm516_vm1, %v3978_v28, %v4007_v47 }
  0x25   : > { %3211 = vmatpush3.bf16.msra.mxu0 %v3788_v36  ;;  %3764 = vmatpush3.bf16.msra.mxu1 %v3788_v36  ;;  %v3082_v36 = vunpack.c.l.bf16 %v4068_v19  ;;  %v591_v52 = vsel %vm516_vm1, %v588_v22, %v590_v38  ;;  %v417_v54 = vrot.slane %v4101_v49, 6  ;;  %v533_v7 = vrot.slane %v435_v62, 1 }
  0x26   : > { %3212 = vmatprep.subr.bf16.mxu0 %v3789_v37  ;;  %3757 = vmatprep.subr.bf16.mxu1 %v3789_v37  ;;  %v589_v37 = vsel %vm516_vm1, %v5317_v21, %v588_v22  ;;  %v400_v33 = vrot.slane %v3039_v20, 6  ;;  %v4152_v38 = vrot.slane %v3030_v41, 1  ;;  %v3042_v62 = vunpack.c.l.bf16 %v4137_v25 }
  0x27   : > { %v390_v48 = vrot.slane %v3082_v36, 6  ;;  %v4113_v56 = vpack.c.bf16 %v591_v52, %v589_v37  ;;  %v453_v6 = vsel %vm359_vm0, %v417_v54, %v399_v39  ;;  %v3813_v37 = vld [vmem:[%s5312_s1 + $0xa0] sm:$0xff]   ;;  %v355_v54 = vld [vmem:[#allocation2 + $0x130] sm:$0x3]  ;;  %v668_v3 = vsel %vm516_vm1, %v4007_v47, %v522_v32 }
  0x28   : > { %v4268_v32 = vrot.slane %v3083_v42, 1  ;;  %v677_v47 = vrot.slane %v3038_v50, 1  ;;  %vm2689_vm2 = vcmask 1040384  }
  0x29   : > { %3213 = vmatpush3.bf16.msra.mxu0 %v3790_v51  ;;  %3765 = vmatpush3.bf16.msra.mxu1 %v3790_v51  ;;  %v4104_v51 = vpack.c.bf16 %v531_v31, %v529_v30  ;;  %v4121_v0 = vsel %vm359_vm0, %v390_v48, %v352_v43  ;;  %v447_v11 = vsel %vm359_vm0, %v411_v53, %v390_v48 }
  0x2a   : > { %3606 = vmatprep.subr.bf16.mxu1 %v3793_v55  ;;  %3654 = vmatprep.subr.bf16.mxu0 %v3794_v63  ;;  %v5315_v15 = vrot.slane %v4121_v0, 1  ;;  %v593_v17 = vrot.slane %v447_v11, 1 }
  0x2c   : > { %1100 = vmatmul.mubr.bf16.vlgmr.msra.gmra.mxu0 %v4047_v5  ;;  %1196 = vmatmul.mubr.bf16.vlgmr.msra.gmra.mxu1 %v4053_v8  ;;  %v594_v39 = vsel %vm516_vm1, %v5315_v15, %v593_v17  ;;  %v4211_v15 = vrot.slane %v3034_v18, 1 }
  0x2d   : > { %3607 = vmatpush3.bf16.msra.mxu1 %v3793_v55  ;;  %3655 = vmatpush3.bf16.msra.mxu0 %v3794_v63  ;;  %v3808_v55 = vld [vmem:[%s5312_s1 + $0xa8] sm:$0xff]   ;;  %v532_v63 = vrot.slane %v4101_v49, 1 }
  0x2e   : > { %3608 = vmatprep.subr.bf16.mxu1 %v3795_v9  ;;  %1107 = vmatprep.mubr.bf16.mxu0 %v3796_v10  ;;  %v429_v10 = vrot.slane %v4121_v0, 6 }
  0x2f   : > { %1203 = vmatprep.mubr.bf16.mxu1 %v3797_v14  ;;  %3656 = vmatprep.subr.bf16.mxu0 %v3800_v23  ;;  %v535_v14 = vrot.slane %v453_v6, 1  ;;  %v534_v26 = vsel %vm516_vm1, %v532_v63, %v533_v7 }
  0x30   : > { %v465_v22 = vsel %vm359_vm0, %v429_v10, %v411_v53  ;;  %v3803_v53 = vld [vmem:[%s5312_s1 + $0x158] sm:$0xff]  }
  0x31   : > { %3609 = vmatpush3.bf16.msra.mxu1 %v3795_v9  ;;  %3657 = vmatpush3.bf16.msra.mxu0 %v3800_v23  ;;  %v4131_v9 = vld [vmem:[%s3954_s9 + $0x78] sm:$0xff]   ;;  %v368_v23 = vrot.slane %v3038_v50, 6  ;;  %v536_v30 = vsel %vm516_vm1, %v533_v7, %v535_v14  ;;  %v595_v31 = vrot.slane %v465_v22, 1  ;;  %v3043_v22 = vunpack.c.h.bf16 %v4137_v25 }
  0x32   : > { %3610 = vmatprep.subr.bf16.mxu1 %v3798_v46  ;;  %3658 = vmatprep.subr.bf16.mxu0 %v3808_v55  ;;  %v3086_v43 = vunpack.c.l.bf16 %v4131_v9  ;;  %v5319_v48 = vunpack.c.h.bf16 %v4131_v9  ;;  %v3812_v25 = vld [vmem:[%s5312_s1 + $0x38] sm:$0xff]  }
  0x33   : > { %v596_v52 = vsel %vm516_vm1, %v593_v17, %v595_v31  ;;  %v4164_v41 = vsel %vm359_vm0, %v368_v23, %v319_v13 }
  0x34   : > { %1108 = vmatmul.mubr.bf16.gmra.mxu0 %v4104_v51  ;;  %1204 = vmatmul.mubr.bf16.gmra.mxu1 %v4113_v56  ;;  %v392_v6 = vrot.slane %v3086_v43, 6  ;;  %v412_v7 = vrot.slane %v5319_v48, 6  ;;  %v4178_v10 = vpack.c.bf16 %v596_v52, %v594_v39  ;;  %v418_v11 = vrot.slane %v4164_v41, 6 }
  0x35   : > { %3611 = vmatpush3.bf16.msra.mxu1 %v3798_v46  ;;  %1115 = vmatprep.mubr.bf16.mxu0 %v3801_v1  ;;  %v436_v46 = vsel %vm359_vm0, %v400_v33, %v368_v23  ;;  %v4170_v1 = vrot.slane %v3031_v44, 1  ;;  %v537_v13 = vrot.slane %v4164_v41, 1  ;;  %v322_v23 = vld [vmem:[#allocation2 + $0x188] sm:$0x3] }
  0x36   : > { %3612 = vmatprep.subr.bf16.mxu1 %v3799_v57  ;;  %1211 = vmatprep.mubr.bf16.mxu1 %v3802_v2  ;;  %v4172_v2 = vpack.c.bf16 %v536_v30, %v534_v26  ;;  %5324 = vst [vmem:[#allocation3_spill] sm:$0xff] %v4178_v10  ;;  %v538_v14 = vrot.slane %v436_v46, 1  ;;  %v4186_v44 = vsel %vm359_vm0, %v392_v6, %v355_v54  ;;  %v4194_v26 = vrot.slane %v3078_v58, 1  ;;  %v3806_v30 = vld [vmem:[%s3954_s9 + $0x78] sm:$0xff] }
  0x37   : > { %3659 = vmatpush3.bf16.msra.mxu0 %v3808_v55  ;;  %v448_v17 = vsel %vm359_vm0, %v412_v7, %v392_v6  ;;  %v370_v55 = vrot.slane %v3042_v62, 6  ;;  %v454_v31 = vsel %vm359_vm0, %v418_v11, %v400_v33  ;;  %v430_v39 = vrot.slane %v4186_v44, 6  ;;  %v4223_v11 = vld [vmem:[%s3954_s9 + $0x28] sm:$0xff]  }
  0x38   : > { %3660 = vmatprep.subr.bf16.mxu0 %v3813_v37  ;;  %v5316_v52 = vrot.slane %v4186_v44, 1  ;;  %v4205_v46 = vrot.slane %v3079_v59, 1  ;;  %v540_v54 = vrot.slane %v454_v31, 1  ;;  %v857_v58 = vrot.slane %v448_v17, 1  ;;  %v3820_v17 = vld [vmem:[%s5312_s1 + $0x98] sm:$0xff]  }
  0x39   : > { %3613 = vmatpush3.bf16.msra.mxu1 %v3799_v57  ;;  %v3804_v57 = vld [vmem:[%s5312_s1 + $0x150] sm:$0xff]   ;;  %v401_v6 = vrot.slane %v3043_v22, 6  ;;  %v466_v33 = vsel %vm359_vm0, %v430_v39, %v412_v7  ;;  %v4220_v59 = vsel %vm359_vm0, %v370_v55, %v322_v23  ;;  %v539_v18 = vsel %vm516_vm1, %v537_v13, %v538_v14 }
  0x3a   : > { %3614 = vmatprep.subr.bf16.mxu1 %v3803_v53  ;;  %v858_v7 = vsel %vm516_vm1, %v5316_v52, %v857_v58  ;;  %v859_v28 = vrot.slane %v466_v33, 1  ;;  %v4240_v23 = vrot.slane %v3082_v36, 1  ;;  %v419_v31 = vrot.slane %v4220_v59, 6  ;;  %v4249_v33 = vld [vmem:[%s3954_s9 + $0x20] sm:$0xff] }
  0x3b   : > { %3661 = vmatpush3.bf16.msra.mxu0 %v3813_v37  ;;  %v541_v37 = vsel %vm516_vm1, %v538_v14, %v540_v54  ;;  %v3807_v14 = vld [vmem:[%s5312_s1 + $0x148] sm:$0xff]   ;;  %v437_v39 = vsel %vm359_vm0, %v401_v6, %v370_v55  ;;  %v3047_v29 = vunpack.c.h.bf16 %v4223_v11  ;;  %v671_v19 = vsel %vm516_vm1, %v4152_v38, %v4170_v1 }
  0x3c   : > { %1116 = vmatmul.mubr.bf16.gmra.mxu0 %v4172_v2  ;;  %1212 = vmatmul.mubr.bf16.gmra.mxu1 %v4178_v10  ;;  %v860_v54 = vsel %vm516_vm1, %v857_v58, %v859_v28  ;;  %v543_v36 = vrot.slane %v437_v39, 1  ;;  %v4256_v52 = vpack.c.bf16 %v541_v37, %v539_v18  ;;  %v455_v55 = vsel %vm359_vm0, %v419_v31, %v401_v6  ;;  %v3809_v6 = vld [vmem:[%s5312_s1 + $0x140] sm:$0xff]  }
  0x3d   : > { %3615 = vmatpush3.bf16.msra.mxu1 %v3803_v53  ;;  %1123 = vmatprep.mubr.bf16.mxu0 %v4183_v35  ;;  %v674_v53 = vrot.slane %v3035_v24, 1  ;;  %v542_v24 = vrot.slane %v4220_v59, 1  ;;  %v4258_v21 = vpack.c.bf16 %v860_v54, %v858_v7  ;;  %v3046_v58 = vunpack.c.l.bf16 %v4223_v11  ;;  %v328_v54 = vld [vmem:[#allocation2 + $0x20] sm:$0x3] }
  0x3e   : > { %3616 = vmatprep.subr.bf16.mxu1 %v3804_v57  ;;  %1219 = vmatprep.mubr.bf16.mxu1 %v3806_v30  ;;  %v325_v30 = vld [vmem:[#allocation2 + $0x38] sm:$0x3]  ;;  %v545_v28 = vrot.slane %v455_v55, 1  ;;  %v4275_v18 = vpack.c.bf16 %v668_v3, %v667_v45  ;;  %v678_v37 = vrot.slane %v3039_v20, 1  ;;  %v672_v42 = vsel %vm516_vm1, %v4170_v1, %v527_v12  ;;  %v3824_v45 = vld [vmem:[%s5312_s1 + $0x90] sm:$0xff]  }
  0x3f   : > { %3662 = vmatprep.subr.bf16.mxu0 %v3820_v17  ;;  %5325 = vst [vmem:[#allocation4_spill] sm:$0xff] %v4258_v21  ;;  %v402_v50 = vrot.slane %v3047_v29, 6  ;;  %v544_v27 = vsel %vm516_vm1, %v542_v24, %v543_v36  ;;  %v3050_v20 = vunpack.c.l.bf16 %v4264_v40  ;;  %v681_v38 = vrot.slane %v3042_v62, 1  ;;  %v4316_v3 = vld [vmem:[%s3954_s9 + $0x38] sm:$0xff]  }
  0x40   : > { %3663 = vmatpush3.bf16.msra.mxu0 %v3820_v17  ;;  %v546_v60 = vsel %vm516_vm1, %v543_v36, %v545_v28  ;;  %v682_v17 = vrot.slane %v3043_v22, 1  ;;  %v4309_v31 = vpack.c.bf16 %v672_v42, %v671_v19  ;;  %v3051_v62 = vunpack.c.h.bf16 %v4264_v40  ;;  %v4324_v22 = vld [vmem:[%s3954_s9 + $0x28] sm:$0xff]  ;;  %v3815_v42 = vld [vmem:[%s5312_s1 + $0x70] sm:$0xff]  }
  0x41   : > { %3617 = vmatpush3.bf16.msra.mxu1 %v3804_v57  ;;  %v372_v57 = vrot.slane %v3046_v58, 6  ;;  %v374_v39 = vrot.slane %v3050_v20, 6  ;;  %v4318_v36 = vpack.c.bf16 %v546_v60, %v544_v27  ;;  %v676_v55 = vsel %vm516_vm1, %v674_v53, %v532_v63  ;;  %3664 = vmatprep.subr.bf16.mxu0 %v3824_v45  ;;  %v4344_v60 = vld [vmem:[%s3954_s9 + $0x40] sm:$0xff]  }
  0x42   : > { %3618 = vmatprep.subr.bf16.mxu1 %v3807_v14  ;;  %v403_v27 = vrot.slane %v3051_v62, 6  ;;  %v3054_v49 = vunpack.c.l.bf16 %v4316_v3  ;;  %v684_v11 = vsel %vm516_vm1, %v682_v17, %v542_v24 }
  0x43   : > { %v4298_v12 = vsel %vm359_vm0, %v372_v57, %v325_v30  ;;  %v438_v7 = vsel %vm359_vm0, %v402_v50, %v372_v57  ;;  %v675_v30 = vsel %vm516_vm1, %v4211_v15, %v674_v53  ;;  %v4337_v15 = vsel %vm359_vm0, %v374_v39, %v328_v54 }
  0x44   : > { %1124 = vmatmul.mubr.bf16.gmra.mxu0 %v4256_v52  ;;  %1220 = vmatmul.mubr.bf16.gmra.mxu1 %v4258_v21  ;;  %v420_v1 = vrot.slane %v4298_v12, 6  ;;  %v547_v28 = vrot.slane %v4298_v12, 1  ;;  %v548_v57 = vrot.slane %v438_v7, 1  ;;  %v4340_v63 = vpack.c.bf16 %v676_v55, %v675_v30  ;;  %v3840_v12 = vld [vmem:[%s5312_s1 + $0x1f8] sm:$0xff]  }
  0x45   : > { %3619 = vmatpush3.bf16.msra.mxu1 %v3807_v14  ;;  %1131 = vmatprep.mubr.bf16.mxu0 %v4249_v33  ;;  %v3811_v14 = vld [vmem:[%s5312_s1 + $0x78] sm:$0xff]   ;;  %v421_v53 = vrot.slane %v4337_v15, 6  ;;  %v679_v7 = vsel %vm516_vm1, %v677_v47, %v678_v37  ;;  %v3816_v47 = vld [vmem:[%s5312_s1 + $0x30] sm:$0xff]   ;;  %v376_v54 = vrot.slane %v3054_v49, 6  ;;  %v686_v30 = vrot.slane %v3047_v29, 1 }
  0x46   : > { %3620 = vmatprep.subr.bf16.mxu1 %v3809_v6  ;;  %3622 = vmatprep.mubr.bf16.mxu1 %v4275_v18  ;;  %v456_v40 = vsel %vm359_vm0, %v420_v1, %v402_v50  ;;  %v331_v50 = vld [vmem:[#allocation2 + $0xa8] sm:$0x3]  ;;  %v685_v1 = vrot.slane %v3046_v58, 1  ;;  %v680_v58 = vsel %vm516_vm1, %v678_v37, %v537_v13  ;;  %v439_v41 = vsel %vm359_vm0, %v403_v27, %v374_v39 }
  0x47   : > { %v550_v19 = vrot.slane %v456_v40, 1  ;;  %3665 = vmatpush3.bf16.msra.mxu0 %v3824_v45  ;;  %v3055_v40 = vunpack.c.h.bf16 %v4316_v3  ;;  %v549_v45 = vsel %vm516_vm1, %v547_v28, %v548_v57  ;;  %v457_v13 = vsel %vm359_vm0, %v421_v53, %v403_v27  ;;  %v3818_v37 = vld [vmem:[%s5312_s1 + $0x68] sm:$0xff]   ;;  %v4387_v27 = vld [vmem:[%s3954_s9 + $0x30] sm:$0xff] }
  0x48   : > { %v4380_v29 = vsel %vm359_vm0, %v376_v54, %v331_v50  ;;  %v3058_v39 = vunpack.c.l.bf16 %v4344_v60  ;;  %v552_v53 = vrot.slane %v4337_v15, 1  ;;  %v553_v59 = vrot.slane %v439_v41, 1  ;;  %v334_v41 = vld [vmem:[#allocation2 + $0xc0] sm:$0x3] }
  0x49   : > { %3621 = vmatpush3.bf16.msra.mxu1 %v3809_v6  ;;  %v3831_v6 = vld [vmem:[%s5312_s1 + $0x88] sm:$0xff]   ;;  %v551_v55 = vsel %vm516_vm1, %v548_v57, %v550_v19  ;;  %v4384_v57 = vpack.c.bf16 %v680_v58, %v679_v7  ;;  %v689_v19 = vrot.slane %v3050_v20, 1  ;;  %v555_v24 = vrot.slane %v457_v13, 1  ;;  %v4411_v13 = vld [vmem:[%s3954_s9 + $0x50] sm:$0xff]  }
  0x4a   : > { %3334 = vmatprep.subr.bf16.mxu1 %v3811_v14  ;;  %v683_v14 = vsel %vm516_vm1, %v681_v38, %v682_v17  ;;  %v3835_v38 = vld [vmem:[%s5312_s1 + $0x80] sm:$0xff]   ;;  %3666 = vmatprep.subr.bf16.mxu0 %v3831_v6  ;;  %v3819_v17 = vld [vmem:[%s5312_s1 + $0x28] sm:$0xff]   ;;  %v404_v50 = vrot.slane %v3055_v40, 6  ;;  %v690_v20 = vrot.slane %v3051_v62, 1  ;;  %v422_v15 = vrot.slane %v4380_v29, 6 }
  0x4b   : > { %3667 = vmatpush3.bf16.msra.mxu0 %v3831_v6  ;;  %v4400_v7 = vpack.c.bf16 %v684_v11, %v683_v14  ;;  %v378_v58 = vrot.slane %v3058_v39, 6  ;;  %v687_v62 = vsel %vm516_vm1, %v685_v1, %v686_v30  ;;  %v688_v6 = vsel %vm516_vm1, %v686_v30, %v547_v28  ;;  %v3823_v1 = vld [vmem:[%s5312_s1 + $0x20] sm:$0xff]  }
  0x4c   : > { %1132 = vmatmul.mubr.bf16.gmra.mxu0 %v4318_v36  ;;  %3623 = vmatmul.mubr.bf16.vlgmr.msra.gmra.mxu1 %v4309_v31  ;;  %v554_v14 = vsel %vm516_vm1, %v552_v53, %v553_v59  ;;  %v440_v11 = vsel %vm359_vm0, %v404_v50, %v376_v54  ;;  %v691_v28 = vsel %vm516_vm1, %v689_v19, %v690_v20  ;;  %v3066_v19 = vunpack.c.l.bf16 %v4411_v13 }
  0x4d   : > { %3335 = vmatpush3.bf16.msra.mxu1 %v3812_v25  ;;  %1139 = vmatprep.mubr.bf16.mxu0 %v4324_v22  ;;  %v3059_v25 = vunpack.c.h.bf16 %v4344_v60  ;;  %v4398_v60 = vld [vmem:[%s3954_s9 + $0x48] sm:$0xff]   ;;  %v458_v30 = vsel %vm359_vm0, %v422_v15, %v404_v50  ;;  %v692_v48 = vsel %vm516_vm1, %v690_v20, %v552_v53  ;;  %v4446_v15 = vpack.c.bf16 %v688_v6, %v687_v62  ;;  %v4465_v6 = vld [vmem:[%s3954_s9 + $0x58] sm:$0xff]  }
  0x4e   : > { %3626 = vmatprep.mubr.bf16.mxu1 %v4340_v63  ;;  %3336 = vmatprep.subr.bf16.mxu1 %v3815_v42  ;;  %v4390_v42 = vpack.c.bf16 %v551_v55, %v549_v45  ;;  %v3822_v45 = vld [vmem:[%s5312_s1 + $0x60] sm:$0xff]   ;;  %v4408_v55 = vrot.slane %v3086_v43, 1  ;;  %v556_v43 = vsel %vm516_vm1, %v553_v59, %v555_v24  ;;  %v3063_v54 = vunpack.c.h.bf16 %v4398_v60  ;;  %v3826_v59 = vld [vmem:[%s5312_s1 + $0x58] sm:$0xff]  }
  0x4f   : > { %3668 = vmatprep.subr.bf16.mxu0 %v3835_v38  ;;  %v694_v24 = vrot.slane %v3055_v40, 1  ;;  %v4444_v50 = vpack.c.bf16 %v556_v43, %v554_v14  ;;  %v557_v21 = vrot.slane %v4380_v29, 1  ;;  %v558_v10 = vrot.slane %v440_v11, 1  ;;  %v3827_v29 = vld [vmem:[%s5312_s1 + $0x18] sm:$0xff]   ;;  %v337_v11 = vld [vmem:[#allocation2 + $0xb0] sm:$0x3] }
  0x50   : > { %3669 = vmatpush3.bf16.msra.mxu0 %v3835_v38  ;;  %v560_v3 = vrot.slane %v458_v30, 1  ;;  %v697_v40 = vrot.slane %v3058_v39, 1  ;;  %v4453_v20 = vpack.c.bf16 %v692_v48, %v691_v28  ;;  %v5326_v14 = vunpack.c.l.bf16 %v4398_v60  ;;  %v3829_v28 = vld [vmem:[%s5312_s1 + $0x50] sm:$0xff]   ;;  %v3834_v60 = vld [vmem:[%s5312_s1 + $0x8] sm:$0xff]  }
  0x51   : > { %3337 = vmatpush3.bf16.msra.mxu1 %v3816_v47  ;;  %v405_v47 = vrot.slane %v3059_v25, 6  ;;  %3470 = vmatprep.subr.bf16.mxu0 %v3840_v12  ;;  %v559_v48 = vsel %vm516_vm1, %v557_v21, %v558_v10  ;;  %v696_v43 = vsel %vm516_vm1, %v694_v24, %v557_v21  ;;  %v4473_v12 = vrot.slane %v3066_v19, 6 }
  0x52   : > { %3338 = vmatprep.subr.bf16.mxu1 %v3818_v37  ;;  %v693_v37 = vrot.slane %v3054_v49, 1  ;;  %v4434_v49 = vsel %vm359_vm0, %v378_v58, %v334_v41  ;;  %v4449_v41 = vld [vmem:[%s3954_s9 + $0x38] sm:$0xff]  ;;  %v4458_v62 = vrot.slane %v5326_v14, 6  ;;  %v561_v21 = vsel %vm516_vm1, %v558_v10, %v560_v3  ;;  %v3830_v10 = vld [vmem:[%s5312_s1 + $0x10] sm:$0xff]  }
  0x53   : > { %v423_v53 = vrot.slane %v4434_v49, 6  ;;  %v562_v38 = vrot.slane %v4434_v49, 1  ;;  %v441_v39 = vsel %vm359_vm0, %v405_v47, %v378_v58  ;;  %v340_v49 = vld [vmem:[#allocation2 + $0x68] sm:$0x3] }
  0x54   : > { %1140 = vmatmul.mubr.bf16.gmra.mxu0 %v4390_v42  ;;  %3627 = vmatmul.mubr.bf16.gmra.mxu1 %v4384_v57 }
  0x55   : > { %1147 = vmatprep.mubr.bf16.mxu0 %v4387_v27  ;;  %3630 = vmatprep.mubr.bf16.mxu1 %v4400_v7 }
  0x56   : > { %3339 = vmatpush3.bf16.msra.mxu1 %v3819_v17  ;;  %v698_v17 = vrot.slane %v3059_v25, 1  ;;  %v695_v25 = vsel %vm516_vm1, %v693_v37, %v694_v24  ;;  %v459_v37 = vsel %vm359_vm0, %v423_v53, %v405_v47  ;;  %v3070_v24 = vunpack.c.l.bf16 %v4465_v6 }
  0x57   : > { %3340 = vmatprep.subr.bf16.mxu1 %v3822_v45  ;;  %v3067_v45 = vunpack.c.h.bf16 %v4411_v13  ;;  %v4495_v3 = vpack.c.bf16 %v696_v43, %v695_v25  ;;  %v4499_v47 = vsel %vm359_vm0, %v4458_v62, %v337_v11  ;;  %v565_v25 = vrot.slane %v459_v37, 1 }
  0x58   : > { %v699_v58 = vsel %vm516_vm1, %v697_v40, %v698_v17  ;;  %v715_v40 = vsel %vm516_vm1, %v4032_v61, %v4045_v4  ;;  %v5329_v43 = vmov %v5326_v14  ;;  %v424_v37 = vrot.slane %v4499_v47, 6 }
  0x59   : > { %v701_v14 = vrot.slane %v5329_v43, 1 }
  0x5a   : > { %3341 = vmatpush3.bf16.msra.mxu1 %v3823_v1  ;;  %v5327_v1 = vunpack.c.h.bf16 %v4131_v9  ;;  %v700_v9 = vsel %vm516_vm1, %v698_v17, %v562_v38  ;;  %v5328_v17 = vrot.slane %v3987_v34, 1  ;;  %v3833_v34 = vld [vmem:[%s5312_s1 + $0x48] sm:$0xff]  }
  0x5b   : > { %3342 = vmatprep.subr.bf16.mxu1 %v3826_v59  ;;  %v563_v59 = vrot.slane %v441_v39, 1  ;;  %v4508_v39 = vpack.c.bf16 %v561_v21, %v559_v48  ;;  %v4522_v61 = vpack.c.bf16 %v700_v9, %v699_v58  ;;  %v702_v48 = vrot.slane %v3063_v54, 1 }
  0x5c   : > { %v4480_v30 = vrot.slane %v5327_v1, 1  ;;  %1148 = vmatmul.mubr.bf16.gmra.mxu0 %v4444_v50  ;;  %3631 = vmatmul.mubr.bf16.gmra.mxu1 %v4446_v15  ;;  %v716_v53 = vsel %vm516_vm1, %v4045_v4, %v5328_v17  ;;  %v4511_v1 = vld [vmem:[%s3954_s9 + $0x40] sm:$0xff]  ;;  %v406_v4 = vrot.slane %v3063_v54, 6  ;;  %v719_v58 = vsel %vm516_vm1, %v4194_v26, %v4205_v46 }
  0x5d   : > { %1155 = vmatprep.mubr.bf16.mxu0 %v4449_v41  ;;  %3634 = vmatprep.mubr.bf16.mxu1 %v4453_v20  ;;  %v4524_v11 = vpack.c.bf16 %v716_v53, %v715_v40  ;;  %v564_v21 = vsel %vm516_vm1, %v562_v38, %v563_v59  ;;  %v705_v54 = vrot.slane %v3066_v19, 1  ;;  %v706_v40 = vrot.slane %v3067_v45, 1 }
  0x5e   : > { %3343 = vmatpush3.bf16.msra.mxu1 %v3827_v29  ;;  %v4517_v29 = vsel %vm359_vm0, %v4473_v12, %v340_v49  ;;  %v343_v49 = vld [vmem:[#allocation2 + $0x48] sm:$0x3]  ;;  %v4540_v17 = vrot.slane %v3070_v24, 6  ;;  %v566_v38 = vsel %vm516_vm1, %v563_v59, %v565_v25  ;;  %v723_v26 = vsel %vm516_vm1, %v4240_v23, %v4268_v32 }
  0x5f   : > { %3344 = vmatprep.subr.bf16.mxu1 %v3829_v28  ;;  %v567_v28 = vrot.slane %v4499_v47, 1  ;;  %v572_v9 = vrot.slane %v4517_v29, 1  ;;  %v5330_v47 = vrot.slane %v4063_v16, 1  ;;  %v5331_v19 = vrot.slane %v4121_v0, 1 }
  0x60   : > { %v703_v16 = vsel %vm516_vm1, %v701_v14, %v702_v48  ;;  %v707_v25 = vsel %vm516_vm1, %v705_v54, %v706_v40  ;;  %v5332_v54 = vrot.slane %v4186_v44, 1  ;;  %v5333_v44 = vunpack.c.h.bf16 %v4465_v6 }
  0x61   : > { %v720_v53 = vsel %vm516_vm1, %v4205_v46, %v5330_v47  ;;  %v724_v43 = vsel %vm516_vm1, %v4268_v32, %v5331_v19  ;;  %v442_v46 = vsel %vm359_vm0, %v406_v4, %v4458_v62  ;;  %v704_v0 = vsel %vm516_vm1, %v702_v48, %v567_v28 }
  0x62   : > { %3345 = vmatpush3.bf16.msra.mxu1 %v3830_v10  ;;  %v3837_v10 = vld [vmem:[%s5312_s1 + $0x40] sm:$0xff]   ;;  %v4562_v23 = vpack.c.bf16 %v720_v53, %v719_v58  ;;  %v460_v32 = vsel %vm359_vm0, %v424_v37, %v406_v4  ;;  %v4568_v59 = vpack.c.bf16 %v724_v43, %v723_v26  ;;  %v708_v14 = vsel %vm516_vm1, %v706_v40, %v572_v9  ;;  %v4587_v37 = vld [vmem:[%s3954_s9 + $0x48] sm:$0xff] }
  0x63   : > { %3346 = vmatprep.subr.bf16.mxu1 %v3833_v34  ;;  %v4576_v62 = vsel %vm359_vm0, %v4540_v17, %v343_v49  ;;  %v867_v34 = vsel %vm516_vm1, %v4408_v55, %v4480_v30  ;;  %v3838_v4 = vld [vmem:[%s5312_s1] sm:$0xff]   ;;  %v4584_v48 = vpack.c.bf16 %v566_v38, %v564_v21  ;;  %v568_v58 = vrot.slane %v442_v46, 1 }
  0x64   : > { %1156 = vmatmul.mubr.bf16.gmra.mxu0 %v4508_v39  ;;  %3635 = vmatmul.mubr.bf16.gmra.mxu1 %v4495_v3  ;;  %v868_v49 = vsel %vm516_vm1, %v4480_v30, %v5332_v54  ;;  %v4598_v55 = vpack.c.bf16 %v704_v0, %v703_v16  ;;  %v570_v40 = vrot.slane %v460_v32, 1  ;;  %v709_v47 = vrot.slane %v3070_v24, 1 }
  0x65   : > { %1163 = vmatprep.mubr.bf16.mxu0 %v4511_v1  ;;  %3638 = vmatprep.mubr.bf16.mxu1 %v4522_v61  ;;  %v4600_v21 = vpack.c.bf16 %v868_v49, %v867_v34  ;;  %v4602_v38 = vpack.c.bf16 %v708_v14, %v707_v25  ;;  %v577_v53 = vrot.slane %v4576_v62, 1  ;;  %v710_v26 = vrot.slane %v5333_v44, 1 }
  0x66   : > { %3347 = vmatpush3.bf16.msra.mxu1 %v3834_v60  ;;  %v4596_v60 = vld [vmem:[%s5312_s1 + $0x238] sm:$0xff]   ;;  %v407_v30 = vrot.slane %v3067_v45, 6  ;;  %v425_v19 = vrot.slane %v4517_v29, 6  ;;  %v569_v24 = vsel %vm516_vm1, %v567_v28, %v568_v58  ;;  %v571_v43 = vsel %vm516_vm1, %v568_v58, %v570_v40  ;;  %v4627_v28 = vld [vmem:[%s3954_s9 + $0x50] sm:$0xff] }
  0x67   : > { %3348 = vmatprep.subr.bf16.mxu1 %v3837_v10  ;;  %v711_v13 = vsel %vm516_vm1, %v709_v47, %v710_v26  ;;  %v712_v45 = vsel %vm516_vm1, %v710_v26, %v577_v53  ;;  %v4622_v46 = vpack.c.bf16 %v571_v43, %v569_v24  ;;  %v5334_v14 = vmov %v5333_v44  ;;  %v3863_v58 = vld [vmem:[#allocation2 + $0x90] sm:$0xff]  ;;  %v4650_v26 = vld [vmem:[%s3954_s9 + $0x58] sm:$0xff] }
  0x68   : > { %v443_v10 = vsel %vm359_vm0, %v407_v30, %v4473_v12  ;;  %v461_v16 = vsel %vm359_vm0, %v425_v19, %v407_v30  ;;  %v4624_v0 = vpack.c.bf16 %v712_v45, %v711_v13  ;;  %v408_v34 = vrot.slane %v5334_v14, 6  ;;  %v307_v12 = vld [vmem:[#allocation2 + $0xe8] sm:$0x3] }
  0x69   : > { %v573_v32 = vrot.slane %v443_v10, 1  ;;  %v575_v25 = vrot.slane %v461_v16, 1  ;;  %v4632_v54 = vrot.slane %v3863_v58, 6  ;;  %v4652_v24 = vrot.slane %v3863_v58, 1 }
  0x6a   : > { %3349 = vmatpush3.bf16.msra.mxu1 %v3838_v4  ;;  %v426_v4 = vrot.slane %v4576_v62, 6  ;;  %v444_v62 = vsel %vm359_vm0, %v408_v34, %v4540_v17 }
  0x6b   : > { %3702 = vmatprep.subr.bf16.mxu1 %v4596_v60  ;;  %v574_v6 = vsel %vm516_vm1, %v572_v9, %v573_v32  ;;  %v576_v49 = vsel %vm516_vm1, %v573_v32, %v575_v25  ;;  %v361_v47 = vsel %vm359_vm0, %v4632_v54, %v307_v12  ;;  %v578_v30 = vrot.slane %v444_v62, 1  ;;  %v3842_v12 = vld [vmem:[%s5312_s1 + $0x1f0] sm:$0xff]   ;;  %v3864_v62 = vld [vmem:[%s3954_s9] sm:$0xff] }
  0x6c   : > { %1164 = vmatmul.mubr.bf16.gmra.mxu0 %v4584_v48  ;;  %3639 = vmatmul.mubr.bf16.gmra.mxu1 %v4598_v55  ;;  %v462_v40 = vsel %vm359_vm0, %v426_v4, %v408_v34  ;;  %v4647_v44 = vpack.c.bf16 %v576_v49, %v574_v6  ;;  %v414_v29 = vrot.slane %v361_v47, 6  ;;  %v517_v9 = vrot.slane %v361_v47, 1  ;;  %v3844_v6 = vld [vmem:[%s5312_s1 + $0x230] sm:$0xff]   ;;  %v3847_v47 = vld [vmem:[%s5312_s1 + $0x1e0] sm:$0xff]  }
  0x6d   : > { %1171 = vmatprep.mubr.bf16.mxu0 %v4587_v37  ;;  %3642 = vmatprep.mubr.bf16.mxu1 %v4602_v38  ;;  %v580_v19 = vrot.slane %v462_v40, 1  ;;  %v579_v17 = vsel %vm516_vm1, %v577_v53, %v578_v30  ;;  %v4667_v16 = vrot.slane %v4632_v54, 1  ;;  %v4669_v32 = vpack.c.bf16 %v3863_v58, %v3863_v58  ;;  %v3841_v58 = vld [vmem:[%s5312_s1 + $0x1b8] sm:$0xff]   ;;  %v3843_v49 = vld [vmem:[%s5312_s1 + $0x1b0] sm:$0xff]   ;;  %v3845_v40 = vld [vmem:[%s5312_s1 + $0x1e8] sm:$0xff]  }
  0x6e   : > { %v450_v13 = vsel %vm359_vm0, %v414_v29, %v4632_v54  ;;  %v664_v45 = vsel %vm516_vm1, %v4652_v24, %v517_v9  ;;  %v3848_v29 = vld [vmem:[%s5312_s1 + $0x1a0] sm:$0xff]  }
  0x6f   : > { %v581_v43 = vsel %vm516_vm1, %v578_v30, %v580_v19  ;;  %v520_v25 = vrot.slane %v450_v13, 1  ;;  %v759_v14 = vpack.c.bf16 %v664_v45, %v4652_v24  ;;  %v519_v53 = vsel %vm516_vm1, %v517_v9, %v4667_v16  ;;  %v3854_v30 = vld [vmem:[%s5312_s1 + $0x220] sm:$0xff]   ;;  %v3865_v19 = vld [vmem:[%s3954_s9 + $0x8] sm:$0xff]  ;;  %v3850_v9 = vld [vmem:[%s5312_s1 + $0x1d8] sm:$0xff]  }
  0x70   : > { %v4664_v10 = vpack.c.bf16 %v581_v43, %v579_v17  ;;  %v3851_v17 = vld [vmem:[%s5312_s1 + $0x198] sm:$0xff]   ;;  %v3852_v43 = vld [vmem:[%s5312_s1 + $0x1d0] sm:$0xff]  }
  0x71   : > { %v521_v34 = vsel %vm516_vm1, %v4667_v16, %v520_v25  ;;  %v3860_v13 = vld [vmem:[%s5312_s1 + $0x210] sm:$0xff]  }
  0x72   : > { %v757_v4 = vpack.c.bf16 %v521_v34, %v519_v53  ;;  %v3866_v45 = vld [vmem:[%s3954_s9 + $0x10] sm:$0xff]  ;;  %v3861_v53 = vld [vmem:[%s5312_s1 + $0x208] sm:$0xff]  }
  0x73   : > { %v3853_v25 = vld [vmem:[%s5312_s1 + $0x190] sm:$0xff]   ;;  %v3856_v34 = vld [vmem:[%s5312_s1 + $0x188] sm:$0xff]  }
  0x74   : > { %1172 = vmatmul.mubr.bf16.gmra.mxu0 %v4622_v46  ;;  %3643 = vmatmul.mubr.bf16.gmra.mxu1 %v4624_v0 }
  0x75   : > { %1179 = vmatprep.mubr.bf16.mxu0 %v4627_v28  ;;  %3646 = vmatprep.mubr.bf16.mxu1 %v4524_v11 }
  0x7c   : > { %1180 = vmatmul.mubr.bf16.gmra.mxu0 %v4647_v44  ;;  %3647 = vmatmul.mubr.bf16.gmra.mxu1 %v4562_v23 }
  0x7d   : > { %1187 = vmatprep.mubr.bf16.mxu0 %v4650_v26  ;;  %3650 = vmatprep.mubr.bf16.mxu1 %v4568_v59 }
  0x84   : > { %1188 = vmatmul.mubr.bf16.gmra.mxu0 %v4664_v10  ;;  %3651 = vmatmul.mubr.bf16.gmra.mxu1 %v4600_v21 }
  0x85   : > { %1565 = vmatprep.mubr.bf16.mxu1 %v4669_v32  ;;  %3670 = vmatprep.mubr.bf16.mxu0 %v759_v14  ;;  %v3855_v14 = vld [vmem:[%s5312_s1 + $0x1c8] sm:$0xff]  }
  0x8c   : > { %1566 = vmatmul.mubr.bf16.vlgmr.msra.gmra.mxu1 %v757_v4  ;;  %3671 = vmatmul.mubr.bf16.vlgmr.msra.gmra.mxu0 %v4275_v18  ;;  %v3849_v18 = vld [vmem:[%s5312_s1 + $0x228] sm:$0xff]   ;;  %v3857_v4 = vld [vmem:[%s5312_s1 + $0x1c0] sm:$0xff]  }
  0x8d   : > { %3703 = vmatpush3.bf16.msra.mxu1 %v4596_v60  ;;  %3471 = vmatpush3.bf16.msra.mxu0 %v3841_v58  ;;  %v3846_v60 = vld [vmem:[%s5312_s1 + $0x1a8] sm:$0xff]   ;;  %v3862_v58 = vld [vmem:[%s5312_s1 + $0x200] sm:$0xff]  }
  0x8e   : > { %1573 = vmatprep.mubr.bf16.mxu1 %v3864_v62  ;;  %3674 = vmatprep.mubr.bf16.mxu0 %v4309_v31 }
  0x8f   : > { %3472 = vmatprep.subr.bf16.mxu0 %v3842_v12  ;;  %3704 = vmatprep.subr.bf16.mxu1 %v3844_v6  ;;  %v3858_v12 = vld [vmem:[%s5312_s1 + $0x180] sm:$0xff]  }
  0x91   : > { %3473 = vmatpush3.bf16.msra.mxu0 %v3843_v49  ;;  %3705 = vmatpush3.bf16.msra.mxu1 %v3844_v6  ;;  %v4794_v6 = vld [vmem:[%s3954_s9 + $0x60] sm:$0xff] }
  0x92   : > { %3474 = vmatprep.subr.bf16.mxu0 %v3845_v40  ;;  %3706 = vmatprep.subr.bf16.mxu1 %v3849_v18 }
  0x94   : > { %1574 = vmatmul.mubr.bf16.gmra.mxu1 %v4047_v5  ;;  %3675 = vmatmul.mubr.bf16.gmra.mxu0 %v4340_v63  ;;  %v3859_v5 = vld [vmem:[%s5312_s1 + $0x218] sm:$0xff]  }
  0x95   : > { %1581 = vmatprep.mubr.bf16.mxu1 %v3865_v19  ;;  %3678 = vmatprep.mubr.bf16.mxu0 %v4384_v57 }
  0x96   : > { %3475 = vmatpush3.bf16.msra.mxu0 %v3846_v60  ;;  %3707 = vmatpush3.bf16.msra.mxu1 %v3849_v18 }
  0x97   : > { %3476 = vmatprep.subr.bf16.mxu0 %v3847_v47  ;;  %3708 = vmatprep.subr.bf16.mxu1 %v3854_v30 }
  0x9a   : > { %3477 = vmatpush3.bf16.msra.mxu0 %v3848_v29  ;;  %3709 = vmatpush3.bf16.msra.mxu1 %v3854_v30 }
  0x9b   : > { %3478 = vmatprep.subr.bf16.mxu0 %v3850_v9  ;;  %3710 = vmatprep.subr.bf16.mxu1 %v3859_v5 }
  0x9c   : > { %1582 = vmatmul.mubr.bf16.gmra.mxu1 %v4104_v51  ;;  %3679 = vmatmul.mubr.bf16.gmra.mxu0 %v4400_v7 }
  0x9d   : > { %1589 = vmatprep.mubr.bf16.mxu1 %v3866_v45  ;;  %3682 = vmatprep.mubr.bf16.mxu0 %v4446_v15 }
  0x9e   : > { %3479 = vmatpush3.bf16.msra.mxu0 %v3851_v17  ;;  %3711 = vmatpush3.bf16.msra.mxu1 %v3859_v5 }
  0x9f   : > { %3480 = vmatprep.subr.bf16.mxu0 %v3852_v43  ;;  %3712 = vmatprep.subr.bf16.mxu1 %v3860_v13 }
  0xa2   : > { %3481 = vmatpush3.bf16.msra.mxu0 %v3853_v25  ;;  %3713 = vmatpush3.bf16.msra.mxu1 %v3860_v13 }
  0xa3   : > { %3482 = vmatprep.subr.bf16.mxu0 %v3855_v14  ;;  %3714 = vmatprep.subr.bf16.mxu1 %v3861_v53 }
  0xa4   : > { %1590 = vmatmul.mubr.bf16.gmra.mxu1 %v4172_v2  ;;  %3683 = vmatmul.mubr.bf16.gmra.mxu0 %v4453_v20 }
  0xa5   : > { %1597 = vmatprep.mubr.bf16.mxu1 %v4183_v35  ;;  %3686 = vmatprep.mubr.bf16.mxu0 %v4495_v3  ;;  %v3867_v35 = vld [vmem:[%s3954_s9 + $0x18] sm:$0xff] }
  0xa6   : > { %3483 = vmatpush3.bf16.msra.mxu0 %v3856_v34  ;;  %3715 = vmatpush3.bf16.msra.mxu1 %v3861_v53  ;;  %v4820_v34 = vld [vmem:[%s3954_s9 + $0x70] sm:$0xff] }
  0xa7   : > { %3484 = vmatprep.subr.bf16.mxu0 %v3857_v4  ;;  %3716 = vmatprep.subr.bf16.mxu1 %v3862_v58 }
  0xaa   : > { %3485 = vmatpush3.bf16.msra.mxu0 %v3858_v12  ;;  %3717 = vmatpush3.bf16.msra.mxu1 %v3862_v58 }
  0xac   : > { %1598 = vmatmul.mubr.bf16.gmra.mxu1 %v4256_v52  ;;  %3687 = vmatmul.mubr.bf16.gmra.mxu0 %v4522_v61 }
  0xad   : > { %1605 = vmatprep.mubr.bf16.mxu1 %v4249_v33  ;;  %3690 = vmatprep.mubr.bf16.mxu0 %v4598_v55 }
  0xb4   : > { %1606 = vmatmul.mubr.bf16.gmra.mxu1 %v4318_v36  ;;  %3691 = vmatmul.mubr.bf16.gmra.mxu0 %v4602_v38 }
  0xb5   : > { %1613 = vmatprep.mubr.bf16.mxu1 %v4324_v22  ;;  %3694 = vmatprep.mubr.bf16.mxu0 %v4624_v0 }
  0xbc   : > { %1614 = vmatmul.mubr.bf16.gmra.mxu1 %v4390_v42  ;;  %3695 = vmatmul.mubr.bf16.gmra.mxu0 %v4524_v11 }
  0xbd   : > { %1621 = vmatprep.mubr.bf16.mxu1 %v4387_v27  ;;  %3698 = vmatprep.mubr.bf16.mxu0 %v4562_v23 }
  0xc4   : > { %1622 = vmatmul.mubr.bf16.gmra.mxu1 %v4444_v50  ;;  %3699 = vmatmul.mubr.bf16.gmra.mxu0 %v4568_v59 }
  0xc5   : > { %1629 = vmatprep.mubr.bf16.mxu1 %v4449_v41  ;;  %2101 = vmatprep.mubr.bf16.mxu0 %v3865_v19 }
  0xcc   : > { %1630 = vmatmul.mubr.bf16.gmra.mxu1 %v4508_v39  ;;  %2102 = vmatmul.mubr.bf16.vlgmr.msra.gmra.mxu0 %v4104_v51 }
  0xcd   : > { %1637 = vmatprep.mubr.bf16.mxu1 %v4511_v1  ;;  %2109 = vmatprep.mubr.bf16.mxu0 %v3866_v45 }
  0xd4   : > { %1638 = vmatmul.mubr.bf16.gmra.mxu1 %v4584_v48  ;;  %2110 = vmatmul.mubr.bf16.gmra.mxu0 %v4172_v2 }
  0xd5   : > { %1645 = vmatprep.mubr.bf16.mxu1 %v4587_v37  ;;  %2117 = vmatprep.mubr.bf16.mxu0 %v3867_v35 }
  0xdc   : > { %1646 = vmatmul.mubr.bf16.gmra.mxu1 %v4622_v46  ;;  %2118 = vmatmul.mubr.bf16.gmra.mxu0 %v4256_v52 }
  0xdd   : > { %1653 = vmatprep.mubr.bf16.mxu1 %v4627_v28  ;;  %2125 = vmatprep.mubr.bf16.mxu0 %v4249_v33 }
  0xe4   : > { %1654 = vmatmul.mubr.bf16.gmra.mxu1 %v4647_v44  ;;  %2126 = vmatmul.mubr.bf16.gmra.mxu0 %v4318_v36 }
  0xe5   : > { %1661 = vmatprep.mubr.bf16.mxu1 %v4650_v26  ;;  %2133 = vmatprep.mubr.bf16.mxu0 %v4324_v22 }
  0xec   : > { %v3214_v51 = vpop.f32.mrf.mxu0  ;;  %v3286_v2 = vpop.f32.mrf.mxu1  ;;  %1662 = vmatmul.mubr.bf16.gmra.mxu1 %v4664_v10  ;;  %2134 = vmatmul.mubr.bf16.gmra.mxu0 %v4390_v42 }
  0xed   : > { %1669 = vmatprep.mubr.bf16.mxu1 %v4794_v6  ;;  %2141 = vmatprep.mubr.bf16.mxu0 %v4387_v27  ;;  %v4809_v27 = vld [vmem:[%s3954_s9 + $0x68] sm:$0xff] }
  0xee   : > { %v3215_v52 = vpop.f32.mrf.mxu0  ;;  %v3287_v33 = vpop.f32.mrf.mxu1 }
  0xef   : > { %v4798_v36 = vadd.f32 %v3215_v52, %v3214_v51  ;;  %v4800_v49 = vadd.f32 %v3287_v33, %v3286_v2 }
  0xf0   : > { %v3217_v22 = vpop.f32.mrf.mxu0  ;;  %v3289_v62 = vpop.f32.mrf.mxu1 }
  0xf2   : > { %v3218_v40 = vpop.f32.mrf.mxu0  ;;  %v3290_v18 = vpop.f32.mrf.mxu1 }
  0xf3   : > { %v4802_v60 = vadd.f32 %v3218_v40, %v3217_v22  ;;  %v4804_v42 = vadd.f32 %v3290_v18, %v3289_v62  ;;  %v5335_v40 = vld [vmem:[#allocation3_spill] sm:$0xff] }
  0xf4   : > { %v3220_v47 = vpop.f32.mrf.mxu0  ;;  %v3292_v30 = vpop.f32.mrf.mxu1  ;;  %1670 = vmatmul.mubr.bf16.gmra.mxu1 %v4053_v8  ;;  %2142 = vmatmul.mubr.bf16.gmra.mxu0 %v4444_v50 }
  0xf5   : > { %1677 = vmatprep.mubr.bf16.mxu1 %v4809_v27  ;;  %2149 = vmatprep.mubr.bf16.mxu0 %v4449_v41 }
  0xf6   : > { %v3221_v19 = vpop.f32.mrf.mxu0  ;;  %v3293_v29 = vpop.f32.mrf.mxu1 }
  0xf7   : > { %v3222_v9 = vadd.f32 %v3221_v19, %v3220_v47  ;;  %v4813_v5 = vadd.f32 %v3293_v29, %v3292_v30 }
  0xf8   : > { %v3223_v17 = vpop.f32.mrf.mxu0  ;;  %v3295_v43 = vpop.f32.mrf.mxu1 }
  0xfa   : > { %v3224_v13 = vpop.f32.mrf.mxu0  ;;  %v3296_v45 = vpop.f32.mrf.mxu1 }
  0xfb   : > { %v3225_v25 = vadd.f32 %v3224_v13, %v3223_v17  ;;  %v4815_v14 = vadd.f32 %v3296_v45, %v3295_v43 }
  0xfc   : > { %v3226_v50 = vpop.f32.mrf.mxu0  ;;  %v3298_v53 = vpop.f32.mrf.mxu1  ;;  %1678 = vmatmul.mubr.bf16.gmra.mxu1 %v4113_v56  ;;  %2150 = vmatmul.mubr.bf16.gmra.mxu0 %v4508_v39 }
  0xfd   : > { %1685 = vmatprep.mubr.bf16.mxu1 %v4820_v34  ;;  %2157 = vmatprep.mubr.bf16.mxu0 %v4511_v1 }
  0xfe   : > { %v3227_v41 = vpop.f32.mrf.mxu0  ;;  %v3299_v4 = vpop.f32.mrf.mxu1 }
  0xff   : > { %v3228_v58 = vadd.f32 %v3227_v41, %v3226_v50  ;;  %v4824_v12 = vadd.f32 %v3299_v4, %v3298_v53 }
 0x100   : > { %v3229_v35 = vpop.f32.mrf.mxu0  ;;  %v3301_v51 = vpop.f32.mrf.mxu1 }
 0x102   : > { %v3230_v2 = vpop.f32.mrf.mxu0  ;;  %v3302_v52 = vpop.f32.mrf.mxu1 }
 0x103   : > { %v3231_v33 = vadd.f32 %v3230_v2, %v3229_v35  ;;  %v4826_v22 = vadd.f32 %v3302_v52, %v3301_v51 }
 0x104   : > { %v3232_v62 = vpop.f32.mrf.mxu0  ;;  %v3304_v39 = vpop.f32.mrf.mxu1  ;;  %1686 = vmatmul.mubr.bf16.gmra.mxu1 %v5335_v40  ;;  %2158 = vmatmul.mubr.bf16.gmra.mxu0 %v4584_v48 }
 0x105   : > { %2165 = vmatprep.mubr.bf16.mxu0 %v4587_v37  ;;  %3718 = vmatprep.mubr.bf16.mxu1 %v4309_v31 }
 0x106   : > { %v3233_v1 = vpop.f32.mrf.mxu0  ;;  %v3305_v18 = vpop.f32.mrf.mxu1 }
 0x107   : > { %v3234_v47 = vadd.f32 %v3233_v1, %v3232_v62  ;;  %v4832_v30 = vadd.f32 %v3305_v18, %v3304_v39 }
 0x108   : > { %v3235_v19 = vpop.f32.mrf.mxu0  ;;  %v3307_v29 = vpop.f32.mrf.mxu1 }
 0x10a   : > { %v3236_v17 = vpop.f32.mrf.mxu0  ;;  %v3308_v43 = vpop.f32.mrf.mxu1 }
 0x10b   : > { %v3237_v13 = vadd.f32 %v3236_v17, %v3235_v19  ;;  %v4834_v45 = vadd.f32 %v3308_v43, %v3307_v29 }
 0x10c   : > { %v3238_v50 = vpop.f32.mrf.mxu0  ;;  %v3624_v53 = vpop.f32.mrf.mxu1  ;;  %2166 = vmatmul.mubr.bf16.gmra.mxu0 %v4622_v46  ;;  %3719 = vmatmul.mubr.bf16.vlgmr.msra.gmra.mxu1 %v4340_v63 }
 0x10d   : > { %v4838_v48 = vadd.f32 %v3624_v53, %v3222_v9  ;;  %2173 = vmatprep.mubr.bf16.mxu0 %v4627_v28  ;;  %3722 = vmatprep.mubr.bf16.mxu1 %v4384_v57 }
 0x10e   : > { %v3239_v31 = vpop.f32.mrf.mxu0  ;;  %v1262_v37 = vpop.f32.mrf.mxu1 }
 0x10f   : > { %v3240_v41 = vadd.f32 %v3239_v31, %v3238_v50  ;;  %v4843_v4 = vadd.f32 %v4798_v36, %v1262_v37 }
 0x110   : > { %v3241_v35 = vpop.f32.mrf.mxu0  ;;  %v3625_v51 = vpop.f32.mrf.mxu1 }
 0x111   : > { %v4845_v2 = vadd.f32 %v3625_v51, %v3225_v25 }
 0x112   : > { %v3242_v52 = vpop.f32.mrf.mxu0  ;;  %v1265_v46 = vpop.f32.mrf.mxu1 }
 0x113   : > { %v3243_v62 = vadd.f32 %v3242_v52, %v3241_v35  ;;  %v4848_v63 = vadd.f32 %v4802_v60, %v1265_v46 }
 0x114   : > { %v3244_v9 = vpop.f32.mrf.mxu0  ;;  %v3628_v28 = vpop.f32.mrf.mxu1  ;;  %2174 = vmatmul.mubr.bf16.gmra.mxu0 %v4647_v44  ;;  %3723 = vmatmul.mubr.bf16.gmra.mxu1 %v4400_v7 }
 0x115   : > { %v4852_v57 = vadd.f32 %v3628_v28, %v3234_v47  ;;  %2181 = vmatprep.mubr.bf16.mxu0 %v4650_v26  ;;  %3726 = vmatprep.mubr.bf16.mxu1 %v4446_v15 }
 0x116   : > { %v3245_v36 = vpop.f32.mrf.mxu0  ;;  %v1278_v25 = vpop.f32.mrf.mxu1 }
 0x117   : > { %v3246_v39 = vadd.f32 %v3245_v36, %v3244_v9  ;;  %v4856_v1 = vadd.f32 %v3228_v58, %v1278_v25 }
 0x118   : > { %v3247_v18 = vpop.f32.mrf.mxu0  ;;  %v3629_v60 = vpop.f32.mrf.mxu1 }
 0x119   : > { %v4858_v19 = vadd.f32 %v3629_v60, %v3237_v13 }
 0x11a   : > { %v3248_v29 = vpop.f32.mrf.mxu0  ;;  %v1281_v17 = vpop.f32.mrf.mxu1 }
 0x11b   : > { %v3249_v44 = vadd.f32 %v3248_v29, %v3247_v18  ;;  %v4860_v43 = vadd.f32 %v3231_v33, %v1281_v17 }
 0x11c   : > { %v3250_v7 = vpop.f32.mrf.mxu0  ;;  %v3632_v47 = vpop.f32.mrf.mxu1  ;;  %2182 = vmatmul.mubr.bf16.gmra.mxu0 %v4664_v10  ;;  %3727 = vmatmul.mubr.bf16.gmra.mxu1 %v4453_v20 }
 0x11d   : > { %v4864_v15 = vadd.f32 %v3632_v47, %v3246_v39  ;;  %2189 = vmatprep.mubr.bf16.mxu0 %v4794_v6  ;;  %3730 = vmatprep.mubr.bf16.mxu1 %v4495_v3 }
 0x11e   : > { %v3251_v26 = vpop.f32.mrf.mxu0  ;;  %v1294_v58 = vpop.f32.mrf.mxu1 }
 0x11f   : > { %v3252_v13 = vadd.f32 %v3251_v26, %v3250_v7  ;;  %v4868_v50 = vadd.f32 %v3240_v41, %v1294_v58 }
 0x120   : > { %v3253_v53 = vpop.f32.mrf.mxu0  ;;  %v3633_v33 = vpop.f32.mrf.mxu1 }
 0x121   : > { %v4870_v31 = vadd.f32 %v3633_v33, %v3249_v44 }
 0x122   : > { %v3254_v37 = vpop.f32.mrf.mxu0  ;;  %v1297_v35 = vpop.f32.mrf.mxu1 }
 0x123   : > { %v3255_v10 = vadd.f32 %v3254_v37, %v3253_v53  ;;  %v4872_v51 = vadd.f32 %v3243_v62, %v1297_v35 }
 0x124   : > { %v3256_v20 = vpop.f32.mrf.mxu0  ;;  %v3636_v52 = vpop.f32.mrf.mxu1  ;;  %2190 = vmatmul.mubr.bf16.gmra.mxu0 %v4053_v8  ;;  %3731 = vmatmul.mubr.bf16.gmra.mxu1 %v4522_v61  ;;  %v358_v8 = vld [vmem:[#allocation2 + $0x148] sm:$0x3] }
 0x125   : > { %2197 = vmatprep.mubr.bf16.mxu0 %v4809_v27  ;;  %3734 = vmatprep.mubr.bf16.mxu1 %v4598_v55  ;;  %v395_v17 = vsel %vm359_vm0, %v4632_v54, %v358_v8 }
 0x126   : > { %v3257_v3 = vpop.f32.mrf.mxu0  ;;  %v1310_v6 = vpop.f32.mrf.mxu1 }
 0x127   : > { %v3258_v41 = vadd.f32 %v3257_v3, %v3256_v20  ;;  %v4878_v46 = vadd.f32 %v3252_v13, %v1310_v6  ;;  %v1858_v6 = vrot.slane %v395_v17, 1 }
 0x128   : > { %v3259_v9 = vpop.f32.mrf.mxu0  ;;  %v3637_v28 = vpop.f32.mrf.mxu1 }
 0x129   : > { %v4880_v36 = vadd.f32 %v3636_v52, %v3258_v41 }
 0x12a   : > { %v3260_v62 = vpop.f32.mrf.mxu0  ;;  %v1313_v25 = vpop.f32.mrf.mxu1 }
 0x12b   : > { %v3261_v39 = vadd.f32 %v3260_v62, %v3259_v9  ;;  %v4882_v18 = vadd.f32 %v3255_v10, %v1313_v25 }
 0x12c   : > { %v3262_v61 = vpop.f32.mrf.mxu0  ;;  %v3640_v60 = vpop.f32.mrf.mxu1  ;;  %2198 = vmatmul.mubr.bf16.gmra.mxu0 %v4113_v56  ;;  %3735 = vmatmul.mubr.bf16.gmra.mxu1 %v4602_v38  ;;  %v431_v56 = vrot.slane %v395_v17, 6 }
 0x12d   : > { %v4886_v55 = vadd.f32 %v3637_v28, %v3261_v39  ;;  %2205 = vmatprep.mubr.bf16.mxu0 %v4820_v34  ;;  %3738 = vmatprep.mubr.bf16.mxu1 %v4624_v0  ;;  %v3871_v34 = vld [vmem:[%s3954_s9 + $0x78] sm:$0xff] }
 0x12e   : > { %v3263_v27 = vpop.f32.mrf.mxu0  ;;  %v1326_v29 = vpop.f32.mrf.mxu1  ;;  %v467_v37 = vsel %vm359_vm0, %v431_v56, %v4632_v54  ;;  %v5336_v39 = vld [vmem:[#allocation4_spill] sm:$0xff] }
 0x12f   : > { %v3264_v44 = vadd.f32 %v3263_v27, %v3262_v61  ;;  %v1861_v41 = vrot.slane %v467_v37, 1 }
 0x130   : > { %v3265_v7 = vpop.f32.mrf.mxu0  ;;  %v3641_v47 = vpop.f32.mrf.mxu1 }
 0x131   : > { %v4892_v26 = vadd.f32 %v3264_v44, %v1326_v29  ;;  %v1862_v54 = vsel %vm516_vm1, %v4667_v16, %v1861_v41 }
 0x132   : > { %v3266_v58 = vpop.f32.mrf.mxu0  ;;  %v1329_v38 = vpop.f32.mrf.mxu1 }
 0x133   : > { %v3267_v13 = vadd.f32 %v3266_v58, %v3265_v7 }
 0x134   : > { %v3268_v53 = vpop.f32.mrf.mxu0  ;;  %v3644_v33 = vpop.f32.mrf.mxu1  ;;  %2206 = vmatmul.mubr.bf16.gmra.mxu0 %v5335_v40  ;;  %3739 = vmatmul.mubr.bf16.gmra.mxu1 %v4524_v11 }
 0x135   : > { %v4896_v0 = vadd.f32 %v3267_v13, %v1329_v38  ;;  %2213 = vmatprep.mubr.bf16.mxu0 %v3871_v34  ;;  %3742 = vmatprep.mubr.bf16.mxu1 %v4562_v23  ;;  %v1860_v23 = vsel %vm516_vm1, %v1858_v6, %v4667_v16 }
 0x136   : > { %v3269_v35 = vpop.f32.mrf.mxu0  ;;  %v1342_v10 = vpop.f32.mrf.mxu1  ;;  %v1873_v7 = vpack.c.bf16 %v1862_v54, %v1860_v23 }
 0x137   : > { %v3270_v20 = vadd.f32 %v3269_v35, %v3268_v53 }
 0x138   : > { %v3271_v52 = vpop.f32.mrf.mxu0  ;;  %v3645_v3 = vpop.f32.mrf.mxu1 }
 0x139   : > { %v4902_v9 = vadd.f32 %v3640_v60, %v3270_v20  ;;  %v1870_v60 = vsel %vm516_vm1, %v4652_v24, %v1858_v6 }
 0x13a   : > { %v3272_v40 = vpop.f32.mrf.mxu0  ;;  %v1345_v11 = vpop.f32.mrf.mxu1 }
 0x13b   : > { %v3273_v28 = vadd.f32 %v3272_v40, %v3271_v52 }
 0x13c   : > { %v3274_v62 = vpop.f32.mrf.mxu0  ;;  %v3648_v25 = vpop.f32.mrf.mxu1  ;;  %2214 = vmatmul.mubr.bf16.gmra.mxu0 %v5336_v39  ;;  %3743 = vmatmul.mubr.bf16.gmra.mxu1 %v4568_v59 }
 0x13d   : > { %v4910_v8 = vadd.f32 %v3641_v47, %v3273_v28  ;;  %v4913_v61 = vadd.f32 %v3648_v25, %v4813_v5  ;;  %2221 = vmatprep.mubr.bf16.mxu0 %v4669_v32  ;;  %3746 = vmatprep.mubr.bf16.mxu1 %v4600_v21  ;;  %v1875_v47 = vpack.c.bf16 %v1870_v60, %v4652_v24 }
 0x13e   : > { %v3275_v27 = vpop.f32.mrf.mxu0  ;;  %v1358_v59 = vpop.f32.mrf.mxu1 }
 0x13f   : > { %v3276_v29 = vadd.f32 %v3275_v27, %v3274_v62  ;;  %v4920_v17 = vadd.f32 %v4800_v49, %v1358_v59 }
 0x140   : > { %v3277_v44 = vpop.f32.mrf.mxu0  ;;  %v3649_v16 = vpop.f32.mrf.mxu1 }
 0x141   : > { %v4923_v5 = vadd.f32 %v3276_v29, %v1342_v10  ;;  %v4926_v32 = vadd.f32 %v3649_v16, %v4815_v14 }
 0x142   : > { %v3278_v21 = vpop.f32.mrf.mxu0  ;;  %v1361_v56 = vpop.f32.mrf.mxu1 }
 0x143   : > { %v3279_v58 = vadd.f32 %v3278_v21, %v3277_v44  ;;  %v4929_v38 = vadd.f32 %v4804_v42, %v1361_v56 }
 0x144   : > { %v3280_v13 = vpop.f32.mrf.mxu0  ;;  %v3652_v53 = vpop.f32.mrf.mxu1  ;;  %2222 = vmatmul.mubr.bf16.gmra.mxu0 %v1873_v7  ;;  %3747 = vmatmul.mubr.bf16.gmra.mxu1 %v1875_v47 }
 0x145   : > { %v4931_v49 = vadd.f32 %v3279_v58, %v1345_v11  ;;  %v4934_v34 = vadd.f32 %v3652_v53, %v4832_v30 }
 0x146   : > { %v3281_v24 = vpop.f32.mrf.mxu0  ;;  %v1374_v37 = vpop.f32.mrf.mxu1 }
 0x147   : > { %v3282_v35 = vadd.f32 %v3281_v24, %v3280_v13  ;;  %v4937_v14 = vadd.f32 %v4824_v12, %v1374_v37 }
 0x148   : > { %v3283_v10 = vpop.f32.mrf.mxu0  ;;  %v3653_v20 = vpop.f32.mrf.mxu1 }
 0x149   : > { %v4939_v52 = vadd.f32 %v3644_v33, %v3282_v35  ;;  %v4942_v42 = vadd.f32 %v3653_v20, %v4834_v45 }
 0x14a   : > { %v3284_v6 = vpop.f32.mrf.mxu0  ;;  %v1377_v41 = vpop.f32.mrf.mxu1 }
 0x14b   : > { %v3285_v40 = vadd.f32 %v3284_v6, %v3283_v10  ;;  %v4945_v11 = vadd.f32 %v4826_v22, %v1377_v41 }
 0x14c   : > { %v3350_v30 = vpop.f32.mrf.mxu1  ;;  %v3672_v28 = vpop.f32.mrf.mxu0 }
 0x14d   : > { %v4947_v62 = vadd.f32 %v3645_v3, %v3285_v40 }
 0x14e   : > { %v3351_v25 = vpop.f32.mrf.mxu1  ;;  %v1728_v12 = vpop.f32.mrf.mxu0 }
 0x14f   : > { %v3352_v39 = vadd.f32 %v3351_v25, %v3350_v30 }
 0x150   : > { %v3353_v23 = vpop.f32.mrf.mxu1  ;;  %v3673_v54 = vpop.f32.mrf.mxu0 }
 0x151   : > { %v1568_v33 = vadd.f32 %v3352_v39, %v4843_v4 }
 0x152   : > { %v3354_v60 = vpop.f32.mrf.mxu1  ;;  %v1731_v45 = vpop.f32.mrf.mxu0 }
 0x153   : > { %v4950_v27 = vadd.f32 %v1728_v12, %v1568_v33  ;;  %v3355_v59 = vadd.f32 %v3354_v60, %v3353_v23 }
 0x154   : > { %v3356_v29 = vpop.f32.mrf.mxu1  ;;  %v3676_v44 = vpop.f32.mrf.mxu0 }
 0x155   : > { %v1571_v22 = vadd.f32 %v3355_v59, %v4848_v63 }
 0x156   : > { %v3357_v16 = vpop.f32.mrf.mxu1  ;;  %v1744_v7 = vpop.f32.mrf.mxu0 }
 0x157   : > { %v4953_v3 = vadd.f32 %v1731_v45, %v1571_v22  ;;  %v3358_v47 = vadd.f32 %v3357_v16, %v3356_v29 }
 0x158   : > { %v3359_v21 = vpop.f32.mrf.mxu1  ;;  %v3677_v56 = vpop.f32.mrf.mxu0 }
 0x159   : > { %v1576_v58 = vadd.f32 %v3358_v47, %v4838_v48 }
 0x15a   : > { %v3360_v13 = vpop.f32.mrf.mxu1  ;;  %v1747_v4 = vpop.f32.mrf.mxu0 }
 0x15b   : > { %v3361_v53 = vadd.f32 %v3360_v13, %v3359_v21  ;;  %v4956_v24 = vadd.f32 %v3672_v28, %v1576_v58 }
 0x15c   : > { %v3362_v37 = vpop.f32.mrf.mxu1  ;;  %v3680_v35 = vpop.f32.mrf.mxu0 }
 0x15d   : > { %v1579_v10 = vadd.f32 %v3361_v53, %v4845_v2 }
 0x15e   : > { %v3363_v20 = vpop.f32.mrf.mxu1  ;;  %v1760_v63 = vpop.f32.mrf.mxu0 }
 0x15f   : > { %v3364_v6 = vadd.f32 %v3363_v20, %v3362_v37  ;;  %v4959_v41 = vadd.f32 %v3673_v54, %v1579_v10 }
 0x160   : > { %v3365_v40 = vpop.f32.mrf.mxu1  ;;  %v3681_v30 = vpop.f32.mrf.mxu0 }
 0x161   : > { %v1584_v25 = vadd.f32 %v3364_v6, %v4856_v1 }
 0x162   : > { %v3366_v12 = vpop.f32.mrf.mxu1  ;;  %v1763_v48 = vpop.f32.mrf.mxu0 }
 0x163   : > { %v3367_v39 = vadd.f32 %v3366_v12, %v3365_v40  ;;  %v4962_v23 = vadd.f32 %v1744_v7, %v1584_v25 }
 0x164   : > { %v3368_v28 = vpop.f32.mrf.mxu1  ;;  %v4964_v33 = vpop.f32.mrf.mxu0 }
 0x165   : > { %v1587_v60 = vadd.f32 %v3367_v39, %v4860_v43 }
 0x166   : > { %v3369_v2 = vpop.f32.mrf.mxu1  ;;  %v1776_v45 = vpop.f32.mrf.mxu0 }
 0x167   : > { %v3370_v59 = vadd.f32 %v3369_v2, %v3368_v28  ;;  %v4967_v29 = vadd.f32 %v1747_v4, %v1587_v60 }
 0x168   : > { %v3371_v54 = vpop.f32.mrf.mxu1  ;;  %v4969_v22 = vpop.f32.mrf.mxu0 }
 0x169   : > { %v1592_v1 = vadd.f32 %v3370_v59, %v4852_v57 }
 0x16a   : > { %v3372_v16 = vpop.f32.mrf.mxu1  ;;  %v1779_v47 = vpop.f32.mrf.mxu0 }
 0x16b   : > { %v3373_v21 = vadd.f32 %v3372_v16, %v3371_v54  ;;  %v4972_v7 = vadd.f32 %v3676_v44, %v1592_v1 }
 0x16c   : > { %v3374_v58 = vpop.f32.mrf.mxu1  ;;  %v4974_v13 = vpop.f32.mrf.mxu0 }
 0x16d   : > { %v1595_v43 = vadd.f32 %v3373_v21, %v4858_v19 }
 0x16e   : > { %v3375_v53 = vpop.f32.mrf.mxu1  ;;  %v4977_v37 = vpop.f32.mrf.mxu0 }
 0x16f   : > { %v3376_v4 = vadd.f32 %v3375_v53, %v3374_v58  ;;  %v4979_v10 = vadd.f32 %v3677_v56, %v1595_v43 }
 0x170   : > { %v3377_v20 = vpop.f32.mrf.mxu1  ;;  %v4981_v6 = vpop.f32.mrf.mxu0 }
 0x171   : > { %v1600_v57 = vadd.f32 %v3376_v4, %v4868_v50 }
 0x172   : > { %v3378_v40 = vpop.f32.mrf.mxu1  ;;  %v4984_v25 = vpop.f32.mrf.mxu0 }
 0x173   : > { %v3379_v44 = vadd.f32 %v3378_v40, %v3377_v20  ;;  %v4986_v12 = vadd.f32 %v1760_v63, %v1600_v57 }
 0x174   : > { %v3380_v39 = vpop.f32.mrf.mxu1  ;;  %v4988_v28 = vpop.f32.mrf.mxu0 }
 0x175   : > { %v1603_v19 = vadd.f32 %v3379_v44, %v4872_v51 }
 0x176   : > { %v3381_v60 = vpop.f32.mrf.mxu1  ;;  %v4991_v2 = vpop.f32.mrf.mxu0 }
 0x177   : > { %v3382_v56 = vadd.f32 %v3381_v60, %v3380_v39  ;;  %v4993_v59 = vadd.f32 %v1763_v48, %v1603_v19 }
 0x178   : > { %v3383_v54 = vpop.f32.mrf.mxu1  ;;  %v4995_v1 = vpop.f32.mrf.mxu0 }
 0x179   : > { %v1608_v50 = vadd.f32 %v3382_v56, %v4864_v15 }
 0x17a   : > { %v3384_v16 = vpop.f32.mrf.mxu1  ;;  %v4998_v21 = vpop.f32.mrf.mxu0 }
 0x17b   : > { %v3385_v63 = vadd.f32 %v3384_v16, %v3383_v54  ;;  %v5000_v58 = vadd.f32 %v3680_v35, %v1608_v50 }
 0x17c   : > { %v3386_v43 = vpop.f32.mrf.mxu1  ;;  %v5002_v53 = vpop.f32.mrf.mxu0 }
 0x17d   : > { %v1611_v51 = vadd.f32 %v3385_v63, %v4870_v31 }
 0x17e   : > { %v3387_v4 = vpop.f32.mrf.mxu1  ;;  %v5005_v20 = vpop.f32.mrf.mxu0 }
 0x17f   : > { %v3388_v48 = vadd.f32 %v3387_v4, %v3386_v43  ;;  %v5007_v57 = vadd.f32 %v3681_v30, %v1611_v51 }
 0x180   : > { %v3389_v40 = vpop.f32.mrf.mxu1  ;;  %v5009_v44 = vpop.f32.mrf.mxu0 }
 0x181   : > { %v1616_v15 = vadd.f32 %v3388_v48, %v4878_v46 }
 0x182   : > { %v3390_v39 = vpop.f32.mrf.mxu1  ;;  %v5012_v19 = vpop.f32.mrf.mxu0 }
 0x183   : > { %v3391_v35 = vadd.f32 %v3390_v39, %v3389_v40  ;;  %v5014_v60 = vadd.f32 %v1776_v45, %v1616_v15 }
 0x184   : > { %v3392_v56 = vpop.f32.mrf.mxu1  ;;  %v5016_v54 = vpop.f32.mrf.mxu0 }
 0x185   : > { %5337 = vst [vmem:[#allocation3_spill] sm:$0xff] %v5016_v54  ;;  %v1619_v31 = vadd.f32 %v3391_v35, %v4882_v18 }
 0x186   : > { %v3393_v50 = vpop.f32.mrf.mxu1  ;;  %v5019_v16 = vpop.f32.mrf.mxu0 }
 0x187   : > { %v3394_v30 = vadd.f32 %v3393_v50, %v3392_v56  ;;  %v5021_v63 = vadd.f32 %v1779_v47, %v1619_v31 }
 0x188   : > { %v3395_v43 = vpop.f32.mrf.mxu1  ;;  %v5023_v51 = vpop.f32.mrf.mxu0 }
 0x189   : > { %5338 = vst [vmem:[#allocation4_spill] sm:$0xff] %v5023_v51  ;;  %v1624_v46 = vadd.f32 %v3394_v30, %v4880_v36 }
 0x18a   : > { %v3396_v4 = vpop.f32.mrf.mxu1  ;;  %v5026_v48 = vpop.f32.mrf.mxu0 }
 0x18b   : > { %v3397_v45 = vadd.f32 %v3396_v4, %v3395_v43  ;;  %v5029_v40 = vadd.f32 %v4964_v33, %v1624_v46 }
 0x18c   : > { %v3398_v15 = vpop.f32.mrf.mxu1  ;;  %v3486_v18 = vpop.f32.mrf.mxu0 }
 0x18d   : > { %v1627_v39 = vadd.f32 %v3397_v45, %v4886_v55 }
 0x18e   : > { %v3399_v35 = vpop.f32.mrf.mxu1  ;;  %v3487_v56 = vpop.f32.mrf.mxu0 }
 0x18f   : > { %v3400_v47 = vadd.f32 %v3399_v35, %v3398_v15  ;;  %v5032_v31 = vadd.f32 %v3487_v56, %v3486_v18  ;;  %v5035_v50 = vadd.f32 %v4969_v22, %v1627_v39 }
 0x190   : > { %v3401_v36 = vpop.f32.mrf.mxu1  ;;  %v5037_v30 = vpop.f32.mrf.mxu0 }
 0x191   : > { %v1632_v43 = vadd.f32 %v3400_v47, %v4892_v26 }
 0x192   : > { %v3402_v4 = vpop.f32.mrf.mxu1  ;;  %v5040_v33 = vpop.f32.mrf.mxu0 }
 0x193   : > { %v3403_v46 = vadd.f32 %v3402_v4, %v3401_v36  ;;  %v5043_v51 = vadd.f32 %v4977_v37, %v1632_v43 }
 0x194   : > { %v3404_v55 = vpop.f32.mrf.mxu1  ;;  %v5045_v45 = vpop.f32.mrf.mxu0 }
 0x195   : > { %v1635_v15 = vadd.f32 %v3403_v46, %v4896_v0 }
 0x196   : > { %v3405_v18 = vpop.f32.mrf.mxu1  ;;  %v5048_v22 = vpop.f32.mrf.mxu0 }
 0x197   : > { %v3406_v39 = vadd.f32 %v3405_v18, %v3404_v55  ;;  %v5051_v35 = vadd.f32 %v4984_v25, %v1635_v15 }
 0x198   : > { %v3407_v26 = vpop.f32.mrf.mxu1  ;;  %v5053_v56 = vpop.f32.mrf.mxu0 }
 0x199   : > { %5339 = vst [vmem:[#allocation5_spill] sm:$0xff] %v5051_v35  ;;  %v1640_v47 = vadd.f32 %v3406_v39, %v4902_v9 }
 0x19a   : > { %v3408_v36 = vpop.f32.mrf.mxu1  ;;  %v5056_v37 = vpop.f32.mrf.mxu0 }
 0x19b   : > { %v3409_v43 = vadd.f32 %v3408_v36, %v3407_v26  ;;  %v5059_v4 = vadd.f32 %v4974_v13, %v1640_v47 }
 0x19c   : > { %v3410_v0 = vpop.f32.mrf.mxu1  ;;  %v5061_v46 = vpop.f32.mrf.mxu0 }
 0x19d   : > { %v1643_v55 = vadd.f32 %v3409_v43, %v4910_v8 }
 0x19e   : > { %v3411_v18 = vpop.f32.mrf.mxu1  ;;  %v5064_v25 = vpop.f32.mrf.mxu0 }
 0x19f   : > { %v3412_v15 = vadd.f32 %v3411_v18, %v3410_v0  ;;  %v5067_v54 = vadd.f32 %v4981_v6, %v1643_v55 }
 0x1a0   : > { %v3413_v9 = vpop.f32.mrf.mxu1  ;;  %v5069_v39 = vpop.f32.mrf.mxu0 }
 0x1a1   : > { %5340 = vst [vmem:[#allocation6_spill] sm:$0xff] %v5067_v54  ;;  %v1648_v26 = vadd.f32 %v3412_v15, %v4923_v5 }
 0x1a2   : > { %v3414_v36 = vpop.f32.mrf.mxu1  ;;  %v5072_v13 = vpop.f32.mrf.mxu0 }
 0x1a3   : > { %v3415_v47 = vadd.f32 %v3414_v36, %v3413_v9  ;;  %v5075_v35 = vadd.f32 %v4991_v2, %v1648_v26 }
 0x1a4   : > { %v3416_v8 = vpop.f32.mrf.mxu1  ;;  %v5077_v43 = vpop.f32.mrf.mxu0 }
 0x1a5   : > { %5341 = vst [vmem:[#allocation7_spill] sm:$0xff] %v5075_v35  ;;  %v1651_v0 = vadd.f32 %v3415_v47, %v4931_v49 }
 0x1a6   : > { %v3417_v18 = vpop.f32.mrf.mxu1  ;;  %v5080_v6 = vpop.f32.mrf.mxu0 }
 0x1a7   : > { %v3418_v55 = vadd.f32 %v3417_v18, %v3416_v8  ;;  %v5083_v54 = vadd.f32 %v4998_v21, %v1651_v0 }
 0x1a8   : > { %v3419_v5 = vpop.f32.mrf.mxu1  ;;  %v5085_v15 = vpop.f32.mrf.mxu0 }
 0x1a9   : > { %5342 = vst [vmem:[#allocation8_spill] sm:$0xff] %v5083_v54  ;;  %v1656_v9 = vadd.f32 %v3418_v55, %v4939_v52 }
 0x1aa   : > { %v3420_v36 = vpop.f32.mrf.mxu1  ;;  %v5088_v2 = vpop.f32.mrf.mxu0 }
 0x1ab   : > { %v3421_v26 = vadd.f32 %v3420_v36, %v3419_v5  ;;  %v5091_v35 = vadd.f32 %v4988_v28, %v1656_v9 }
 0x1ac   : > { %v3422_v49 = vpop.f32.mrf.mxu1  ;;  %v5093_v47 = vpop.f32.mrf.mxu0 }
 0x1ad   : > { %5343 = vst [vmem:[#allocation9_spill] sm:$0xff] %v5091_v35  ;;  %v1659_v8 = vadd.f32 %v3421_v26, %v4947_v62 }
 0x1ae   : > { %v3423_v18 = vpop.f32.mrf.mxu1  ;;  %v5096_v21 = vpop.f32.mrf.mxu0 }
 0x1af   : > { %v3424_v0 = vadd.f32 %v3423_v18, %v3422_v49  ;;  %v5099_v54 = vadd.f32 %v4995_v1, %v1659_v8 }
 0x1b0   : > { %v3425_v52 = vpop.f32.mrf.mxu1  ;;  %v5101_v55 = vpop.f32.mrf.mxu0 }
 0x1b1   : > { %5344 = vst [vmem:[#allocation10_spill] sm:$0xff] %v5099_v54  ;;  %v1664_v5 = vadd.f32 %v3424_v0, %v4920_v17 }
 0x1b2   : > { %v3426_v36 = vpop.f32.mrf.mxu1  ;;  %v5104_v28 = vpop.f32.mrf.mxu0 }
 0x1b3   : > { %v3427_v9 = vadd.f32 %v3426_v36, %v3425_v52  ;;  %v5107_v35 = vadd.f32 %v5005_v20, %v1664_v5 }
 0x1b4   : > { %v3428_v62 = vpop.f32.mrf.mxu1  ;;  %v5109_v26 = vpop.f32.mrf.mxu0 }
 0x1b5   : > { %5345 = vst [vmem:[#allocation11_spill] sm:$0xff] %v5107_v35  ;;  %v1667_v49 = vadd.f32 %v3427_v9, %v4929_v38 }
 0x1b6   : > { %v3429_v18 = vpop.f32.mrf.mxu1  ;;  %v5112_v1 = vpop.f32.mrf.mxu0 }
 0x1b7   : > { %v3430_v8 = vadd.f32 %v3429_v18, %v3428_v62  ;;  %v5115_v54 = vadd.f32 %v5012_v19, %v1667_v49 }
 0x1b8   : > { %v3431_v17 = vpop.f32.mrf.mxu1  ;;  %v5117_v0 = vpop.f32.mrf.mxu0 }
 0x1b9   : > { %5346 = vst [vmem:[#allocation12_spill] sm:$0xff] %v5115_v54  ;;  %v1672_v52 = vadd.f32 %v3430_v8, %v4913_v61 }
 0x1ba   : > { %v3432_v36 = vpop.f32.mrf.mxu1  ;;  %v5120_v20 = vpop.f32.mrf.mxu0 }
 0x1bb   : > { %v3433_v5 = vadd.f32 %v3432_v36, %v3431_v17  ;;  %v5123_v35 = vadd.f32 %v5002_v53, %v1672_v52 }
 0x1bc   : > { %v3434_v38 = vpop.f32.mrf.mxu1  ;;  %v5125_v9 = vpop.f32.mrf.mxu0 }
 0x1bd   : > { %5347 = vst [vmem:[#allocation13_spill] sm:$0xff] %v5123_v35  ;;  %v1675_v62 = vadd.f32 %v3433_v5, %v4926_v32 }
 0x1be   : > { %v3435_v18 = vpop.f32.mrf.mxu1  ;;  %v5128_v19 = vpop.f32.mrf.mxu0 }
 0x1bf   : > { %v3436_v49 = vadd.f32 %v3435_v18, %v3434_v38  ;;  %v5131_v54 = vadd.f32 %v5009_v44, %v1675_v62 }
 0x1c0   : > { %v3437_v61 = vpop.f32.mrf.mxu1  ;;  %v5133_v8 = vpop.f32.mrf.mxu0 }
 0x1c1   : > { %5348 = vst [vmem:[#allocation14_spill] sm:$0xff] %v5131_v54  ;;  %v1680_v17 = vadd.f32 %v3436_v49, %v4937_v14 }
 0x1c2   : > { %v3438_v36 = vpop.f32.mrf.mxu1  ;;  %v5136_v53 = vpop.f32.mrf.mxu0 }
 0x1c3   : > { %v3439_v52 = vadd.f32 %v3438_v36, %v3437_v61  ;;  %v5139_v35 = vadd.f32 %v5019_v16, %v1680_v17 }
 0x1c4   : > { %v3440_v32 = vpop.f32.mrf.mxu1  ;;  %v5141_v5 = vpop.f32.mrf.mxu0 }
 0x1c5   : > { %5349 = vst [vmem:[#allocation15_spill] sm:$0xff] %v5139_v35  ;;  %v1683_v38 = vadd.f32 %v3439_v52, %v4945_v11  ;;  %v3494_v52 = vadd.f32 %v5048_v22, %v5045_v45 }
 0x1c6   : > { %v3441_v18 = vpop.f32.mrf.mxu1  ;;  %v5144_v44 = vpop.f32.mrf.mxu0 }
 0x1c7   : > { %v3442_v62 = vadd.f32 %v3441_v18, %v3440_v32  ;;  %v5147_v54 = vadd.f32 %v5026_v48, %v1683_v38 }
 0x1c8   : > { %v3443_v14 = vpop.f32.mrf.mxu1  ;;  %v5149_v49 = vpop.f32.mrf.mxu0 }
 0x1c9   : > { %5350 = vst [vmem:[#allocation16_spill] sm:$0xff] %v5147_v54  ;;  %v5152_v61 = vadd.f32 %v3442_v62, %v4934_v34  ;;  %v3497_v34 = vadd.f32 %v5056_v37, %v5053_v56  ;;  %v3491_v54 = vadd.f32 %v5040_v33, %v5037_v30 }
 0x1ca   : > { %v3444_v16 = vpop.f32.mrf.mxu1  ;;  %v5154_v17 = vpop.f32.mrf.mxu0 }
 0x1cb   : > { %5351 = vst [vmem:[#allocation17_spill] sm:$0xff] %v5152_v61  ;;  %v3445_v36 = vadd.f32 %v3444_v16, %v3443_v14 }
 0x1cc   : > { %v5156_v35 = vpop.f32.mrf.mxu0  ;;  %v3720_v11 = vpop.f32.mrf.mxu1 }
 0x1cd   : > { %v5161_v32 = vadd.f32 %v3445_v36, %v4942_v42  ;;  %v2273_v18 = vadd.f32 %v3720_v11, %v3494_v52 }
 0x1ce   : > { %v5163_v48 = vpop.f32.mrf.mxu0  ;;  %v2264_v38 = vpop.f32.mrf.mxu1 }
 0x1cf   : > { %5352 = vst [vmem:[#allocation18_spill] sm:$0xff] %v5161_v32  ;;  %v2265_v62 = vadd.f32 %v5032_v31, %v2264_v38  ;;  %v2393_v32 = vadd.f32 %v2273_v18, %v4956_v24 }
 0x1d0   : > { %v5168_v14 = vpop.f32.mrf.mxu0  ;;  %v3721_v16 = vpop.f32.mrf.mxu1 }
 0x1d1   : > { %v2391_v45 = vadd.f32 %v2265_v62, %v4950_v27  ;;  %v2276_v42 = vadd.f32 %v3721_v16, %v3497_v34  ;;  %v3506_v27 = vadd.f32 %v5080_v6, %v5077_v43 }
 0x1d2   : > { %v5173_v22 = vpop.f32.mrf.mxu0  ;;  %v2267_v36 = vpop.f32.mrf.mxu1 }
 0x1d3   : > { %v2394_v61 = vadd.f32 %v2276_v42, %v4959_v41  ;;  %v2268_v56 = vadd.f32 %v3491_v54, %v2267_v36  ;;  %v3500_v41 = vadd.f32 %v5064_v25, %v5061_v46  ;;  %v3509_v54 = vadd.f32 %v5088_v2, %v5085_v15 }
 0x1d4   : > { %v5184_v31 = vpop.f32.mrf.mxu0  ;;  %v3724_v30 = vpop.f32.mrf.mxu1  ;;  %v2620_v37 = vmul.f32 %v2391_v45, %v2391_v45  ;;  %v3503_v15 = vadd.f32 %v5072_v13, %v5069_v39 }
 0x1d5   : > { %v3096_v33 = vpack.c.bf16 %v2394_v61, %v2393_v32  ;;  %v2392_v24 = vadd.f32 %v2268_v56, %v4953_v3  ;;  %v2289_v62 = vadd.f32 %v3724_v30, %v3506_v27  ;;  %v2622_v3 = vmul.f32 %v2393_v32, %v2393_v32 }
 0x1d6   : > { %v5193_v11 = vpop.f32.mrf.mxu0  ;;  %v2280_v52 = vpop.f32.mrf.mxu1  ;;  %v2623_v2 = vmul.f32 %v2394_v61, %v2394_v61 }
 0x1d7   : > { %3183 = vst [vmem:[%s5182_s24 + $0x8] sm:$0xff] %v3096_v33   ;;  %v3091_v38 = vpack.c.bf16 %v2392_v24, %v2391_v45  ;;  %v2583_v34 = vadd.f32 %v2392_v24, %v2391_v45  ;;  %v2621_v18 = vmul.f32 %v2392_v24, %v2392_v24  ;;  %v2281_v43 = vadd.f32 %v3500_v41, %v2280_v52 }
 0x1d8   : > { %v5196_v6 = vpop.f32.mrf.mxu0  ;;  %v3725_v16 = vpop.f32.mrf.mxu1  ;;  %v2397_v30 = vadd.f32 %v2289_v62, %v4972_v7  ;;  %v3518_v41 = vadd.f32 %v5112_v1, %v5109_v26 }
 0x1d9   : > { %3092 = vst [vmem:[%s5182_s24] sm:$0xff] %v3091_v38   ;;  %v2584_v42 = vadd.f32 %v2583_v34, %v2393_v32  ;;  %v2652_v46 = vadd.f32 %v2621_v18, %v2620_v37  ;;  %v2292_v25 = vadd.f32 %v3725_v16, %v3509_v54  ;;  %v2395_v36 = vadd.f32 %v2281_v43, %v4962_v23 }
 0x1da   : > { %v5202_v56 = vpop.f32.mrf.mxu0  ;;  %v2283_v45 = vpop.f32.mrf.mxu1  ;;  %v3512_v32 = vadd.f32 %v5096_v21, %v5093_v47  ;;  %v3521_v47 = vadd.f32 %v5120_v20, %v5117_v0 }
 0x1db   : > { %v2653_v33 = vadd.f32 %v2652_v46, %v2622_v3  ;;  %v2585_v27 = vadd.f32 %v2584_v42, %v2394_v61  ;;  %v2398_v24 = vadd.f32 %v2292_v25, %v4979_v10  ;;  %v2284_v39 = vadd.f32 %v3503_v15, %v2283_v45 }
 0x1dc   : > { %v5210_v13 = vpop.f32.mrf.mxu0  ;;  %v3728_v23 = vpop.f32.mrf.mxu1  ;;  %v2624_v37 = vmul.f32 %v2395_v36, %v2395_v36  ;;  %v2626_v42 = vmul.f32 %v2397_v30, %v2397_v30 }
 0x1dd   : > { %v2586_v54 = vadd.f32 %v2585_v27, %v2395_v36  ;;  %v2654_v52 = vadd.f32 %v2653_v33, %v2623_v2  ;;  %v3106_v38 = vpack.c.bf16 %v2398_v24, %v2397_v30  ;;  %v2396_v7 = vadd.f32 %v2284_v39, %v4967_v29 }
 0x1de   : > { %v5213_v61 = vpop.f32.mrf.mxu0  ;;  %v2296_v10 = vpop.f32.mrf.mxu1  ;;  %v2305_v26 = vadd.f32 %v3728_v23, %v3518_v41  ;;  %v3515_v29 = vadd.f32 %v5104_v28, %v5101_v55  ;;  %v2627_v33 = vmul.f32 %v2398_v24, %v2398_v24  ;;  %v3524_v39 = vadd.f32 %v5128_v19, %v5125_v9 }
 0x1df   : > { %v2655_v21 = vadd.f32 %v2654_v52, %v2624_v37  ;;  %3185 = vst [vmem:[%s5182_s24 + $0x18] sm:$0xff] %v3106_v38   ;;  %v2297_v1 = vadd.f32 %v3512_v32, %v2296_v10  ;;  %v3101_v34 = vpack.c.bf16 %v2396_v7, %v2395_v36  ;;  %v2587_v18 = vadd.f32 %v2586_v54, %v2396_v7 }
 0x1e0   : > { %v2625_v62 = vmul.f32 %v2396_v7, %v2396_v7  ;;  %v5218_v43 = vpop.f32.mrf.mxu0  ;;  %v3729_v16 = vpop.f32.mrf.mxu1  ;;  %v2401_v2 = vadd.f32 %v2305_v26, %v5000_v58  ;;  %v3527_v19 = vadd.f32 %v5136_v53, %v5133_v8  ;;  %v3542_v53 = vadd.f32 %v5193_v11, %v5184_v31 }
 0x1e1   : > { %v2308_v3 = vadd.f32 %v3729_v16, %v3521_v47  ;;  %3184 = vst [vmem:[%s5182_s24 + $0x10] sm:$0xff] %v3101_v34   ;;  %v2588_v46 = vadd.f32 %v2587_v18, %v2397_v30  ;;  %v2399_v0 = vadd.f32 %v2297_v1, %v4986_v12  ;;  %v3530_v30 = vadd.f32 %v5144_v44, %v5141_v5 }
 0x1e2   : > { %v2656_v25 = vadd.f32 %v2655_v21, %v2625_v62  ;;  %v5224_v20 = vpop.f32.mrf.mxu0  ;;  %v2299_v15 = vpop.f32.mrf.mxu1  ;;  %v2630_v21 = vmul.f32 %v2401_v2, %v2401_v2 }
 0x1e3   : > { %v2402_v36 = vadd.f32 %v2308_v3, %v5007_v57  ;;  %v2300_v45 = vadd.f32 %v3515_v29, %v2299_v15  ;;  %v2589_v32 = vadd.f32 %v2588_v46, %v2398_v24  ;;  %v2628_v57 = vmul.f32 %v2399_v0, %v2399_v0 }
 0x1e4   : > { %v2657_v27 = vadd.f32 %v2656_v25, %v2626_v42  ;;  %v5228_v55 = vpop.f32.mrf.mxu0  ;;  %v3732_v28 = vpop.f32.mrf.mxu1  ;;  %v3533_v24 = vadd.f32 %v5154_v17, %v5149_v49 }
 0x1e5   : > { %v3116_v41 = vpack.c.bf16 %v2402_v36, %v2401_v2  ;;  %v2400_v12 = vadd.f32 %v2300_v45, %v4993_v59  ;;  %v2590_v58 = vadd.f32 %v2589_v32, %v2399_v0  ;;  %v2321_v5 = vadd.f32 %v3732_v28, %v3530_v30 }
 0x1e6   : > { %v2658_v23 = vadd.f32 %v2657_v27, %v2627_v33  ;;  %v5235_v54 = vpop.f32.mrf.mxu0  ;;  %v2312_v37 = vpop.f32.mrf.mxu1  ;;  %v2631_v29 = vmul.f32 %v2402_v36, %v2402_v36 }
 0x1e7   : > { %3187 = vst [vmem:[%s5182_s24 + $0x28] sm:$0xff] %v3116_v41   ;;  %v3111_v52 = vpack.c.bf16 %v2400_v12, %v2399_v0  ;;  %v2629_v38 = vmul.f32 %v2400_v12, %v2400_v12  ;;  %v2591_v7 = vadd.f32 %v2590_v58, %v2400_v12  ;;  %v2313_v59 = vadd.f32 %v3524_v39, %v2312_v37 }
 0x1e8   : > { %v2659_v44 = vadd.f32 %v2658_v23, %v2628_v57  ;;  %v5240_v10 = vpop.f32.mrf.mxu0  ;;  %v3733_v9 = vpop.f32.mrf.mxu1  ;;  %v2405_v18 = vadd.f32 %v2321_v5, %v5029_v40  ;;  %v3536_v0 = vadd.f32 %v5163_v48, %v5156_v35  ;;  %v3539_v48 = vadd.f32 %v5173_v22, %v5168_v14  ;;  %v5353_v23 = vld [vmem:[#allocation6_spill] sm:$0xff] }
 0x1e9   : > { %3186 = vst [vmem:[%s5182_s24 + $0x20] sm:$0xff] %v3111_v52   ;;  %v2324_v47 = vadd.f32 %v3733_v9, %v3533_v24  ;;  %v2592_v26 = vadd.f32 %v2591_v7, %v2401_v2  ;;  %v2403_v49 = vadd.f32 %v2313_v59, %v5014_v60  ;;  %v5354_v59 = vld [vmem:[#allocation5_spill] sm:$0xff]  ;;  %v3548_v9 = vadd.f32 %v5213_v61, %v5210_v13 }
 0x1ea   : > { %v2660_v1 = vadd.f32 %v2659_v44, %v2629_v38  ;;  %v3556_v17 = vpop.f32.mrf.mxu0  ;;  %v2315_v34 = vpop.f32.mrf.mxu1  ;;  %v2634_v41 = vmul.f32 %v2405_v18, %v2405_v18  ;;  %v3554_v44 = vadd.f32 %v5235_v54, %v5228_v55  ;;  %v3551_v13 = vadd.f32 %v5224_v20, %v5218_v43 }
 0x1eb   : > { %v2406_v62 = vadd.f32 %v2324_v47, %v5035_v50  ;;  %v2316_v16 = vadd.f32 %v3527_v19, %v2315_v34  ;;  %v2593_v42 = vadd.f32 %v2592_v26, %v2402_v36  ;;  %v2632_v50 = vmul.f32 %v2403_v49, %v2403_v49 }
 0x1ec   : > { %v2661_v3 = vadd.f32 %v2660_v1, %v2630_v21  ;;  %v5248_v46 = vpop.f32.mrf.mxu0  ;;  %v3736_v8 = vpop.f32.mrf.mxu1  ;;  %v3545_v36 = vadd.f32 %v5202_v56, %v5196_v6  ;;  %v3557_v1 = vadd.f32 %v3556_v17, %v5240_v10 }
 0x1ed   : > { %v3126_v25 = vpack.c.bf16 %v2406_v62, %v2405_v18  ;;  %v2404_v60 = vadd.f32 %v2316_v16, %v5021_v63  ;;  %v2594_v40 = vadd.f32 %v2593_v42, %v2403_v49  ;;  %v2337_v31 = vadd.f32 %v3736_v8, %v3542_v53  ;;  %v5355_v53 = vld [vmem:[#allocation7_spill] sm:$0xff] }
 0x1ee   : > { %v2662_v15 = vadd.f32 %v2661_v3, %v2631_v29  ;;  %v5255_v2 = vpop.f32.mrf.mxu0  ;;  %v2328_v45 = vpop.f32.mrf.mxu1  ;;  %v2635_v52 = vmul.f32 %v2406_v62, %v2406_v62 }
 0x1ef   : > { %3189 = vst [vmem:[%s5182_s24 + $0x38] sm:$0xff] %v3126_v25   ;;  %v3121_v33 = vpack.c.bf16 %v2404_v60, %v2403_v49  ;;  %v2633_v27 = vmul.f32 %v2404_v60, %v2404_v60  ;;  %v2595_v32 = vadd.f32 %v2594_v40, %v2404_v60  ;;  %v2329_v63 = vadd.f32 %v3536_v0, %v2328_v45  ;;  %v5356_v60 = vld [vmem:[#allocation9_spill] sm:$0xff]  ;;  %v5357_v40 = vld [vmem:[#allocation10_spill] sm:$0xff] }
 0x1f0   : > { %v2663_v11 = vadd.f32 %v2662_v15, %v2632_v50  ;;  %v5260_v28 = vpop.f32.mrf.mxu0  ;;  %v3737_v35 = vpop.f32.mrf.mxu1  ;;  %v2409_v57 = vadd.f32 %v2337_v31, %v5059_v4 }
 0x1f1   : > { %3188 = vst [vmem:[%s5182_s24 + $0x30] sm:$0xff] %v3121_v33   ;;  %v2340_v30 = vadd.f32 %v3737_v35, %v3545_v36  ;;  %v2596_v12 = vadd.f32 %v2595_v32, %v2405_v18  ;;  %v2407_v6 = vadd.f32 %v2329_v63, %v5043_v51  ;;  %v3560_v63 = vadd.f32 %v5255_v2, %v5248_v46 }
 0x1f2   : > { %v2664_v39 = vadd.f32 %v2663_v11, %v2633_v27  ;;  %v5266_v56 = vpop.f32.mrf.mxu0  ;;  %v2331_v58 = vpop.f32.mrf.mxu1  ;;  %v2638_v3 = vmul.f32 %v2409_v57, %v2409_v57  ;;  %v5358_v11 = vld [vmem:[#allocation8_spill] sm:$0xff] }
 0x1f3   : > { %v2410_v37 = vadd.f32 %v2340_v30, %v5353_v23  ;;  %v2332_v24 = vadd.f32 %v3539_v48, %v2331_v58  ;;  %v2597_v5 = vadd.f32 %v2596_v12, %v2406_v62  ;;  %v2636_v4 = vmul.f32 %v2407_v6, %v2407_v6 }
 0x1f4   : > { %v2665_v38 = vadd.f32 %v2664_v39, %v2634_v41  ;;  %v3564_v14 = vpop.f32.mrf.mxu0  ;;  %v3740_v22 = vpop.f32.mrf.mxu1 }
 0x1f5   : > { %v3136_v7 = vpack.c.bf16 %v2410_v37, %v2409_v57  ;;  %v2408_v51 = vadd.f32 %v2332_v24, %v5354_v59  ;;  %v2598_v19 = vadd.f32 %v2597_v5, %v2407_v6  ;;  %v2353_v18 = vadd.f32 %v3740_v22, %v3554_v44  ;;  %v5359_v44 = vld [vmem:[#allocation11_spill] sm:$0xff] }
 0x1f6   : > { %v2666_v47 = vadd.f32 %v2665_v38, %v2635_v52  ;;  %v3565_v21 = vpop.f32.mrf.mxu0  ;;  %v2344_v26 = vpop.f32.mrf.mxu1  ;;  %v2639_v45 = vmul.f32 %v2410_v37, %v2410_v37  ;;  %v3563_v5 = vadd.f32 %v5266_v56, %v5260_v28 }
 0x1f7   : > { %3191 = vst [vmem:[%s5182_s24 + $0x48] sm:$0xff] %v3136_v7   ;;  %v3131_v49 = vpack.c.bf16 %v2408_v51, %v2407_v6  ;;  %v2637_v34 = vmul.f32 %v2408_v51, %v2408_v51  ;;  %v2599_v55 = vadd.f32 %v2598_v19, %v2408_v51  ;;  %v2345_v54 = vadd.f32 %v3548_v9, %v2344_v26  ;;  %v5360_v9 = vld [vmem:[#allocation13_spill] sm:$0xff] }
 0x1f8   : > { %v2667_v62 = vadd.f32 %v2666_v47, %v2636_v4  ;;  %v3567_v16 = vpop.f32.mrf.mxu0  ;;  %v3741_v29 = vpop.f32.mrf.mxu1  ;;  %v2413_v0 = vadd.f32 %v2353_v18, %v5356_v60  ;;  %v3566_v20 = vadd.f32 %v3565_v21, %v3564_v14  ;;  %v5361_v4 = vld [vmem:[#allocation14_spill] sm:$0xff] }
 0x1f9   : > { %3190 = vst [vmem:[%s5182_s24 + $0x40] sm:$0xff] %v3131_v49   ;;  %v2356_v61 = vadd.f32 %v3741_v29, %v3557_v1  ;;  %v2600_v42 = vadd.f32 %v2599_v55, %v2409_v57  ;;  %v2411_v25 = vadd.f32 %v2345_v54, %v5355_v53 }
 0x1fa   : > { %v2668_v8 = vadd.f32 %v2667_v62, %v2637_v34  ;;  %v3568_v10 = vpop.f32.mrf.mxu0  ;;  %v2347_v17 = vpop.f32.mrf.mxu1  ;;  %v2642_v2 = vmul.f32 %v2413_v0, %v2413_v0  ;;  %v5362_v62 = vld [vmem:[#allocation12_spill] sm:$0xff] }
 0x1fb   : > { %v2414_v50 = vadd.f32 %v2356_v61, %v5357_v40  ;;  %v2348_v15 = vadd.f32 %v3551_v13, %v2347_v17  ;;  %v2601_v33 = vadd.f32 %v2600_v42, %v2410_v37  ;;  %v2640_v48 = vmul.f32 %v2411_v25, %v2411_v25 }
 0x1fc   : > { %v2669_v36 = vadd.f32 %v2668_v8, %v2638_v3  ;;  %v3570_v27 = vpop.f32.mrf.mxu0  ;;  %v3744_v43 = vpop.f32.mrf.mxu1  ;;  %v3569_v39 = vadd.f32 %v3568_v10, %v3567_v16 }
 0x1fd   : > { %v3146_v31 = vpack.c.bf16 %v2414_v50, %v2413_v0  ;;  %v2412_v32 = vadd.f32 %v2348_v15, %v5358_v11  ;;  %v2602_v35 = vadd.f32 %v2601_v33, %v2411_v25  ;;  %v2369_v57 = vadd.f32 %v3744_v43, %v3566_v20  ;;  %v5364_v11 = vld [vmem:[#allocation17_spill] sm:$0xff] }
 0x1fe   : > { %v2670_v30 = vadd.f32 %v2669_v36, %v2639_v45  ;;  %v3571_v41 = vpop.f32.mrf.mxu0  ;;  %v2360_v12 = vpop.f32.mrf.mxu1  ;;  %v2643_v26 = vmul.f32 %v2414_v50, %v2414_v50  ;;  %v5363_v36 = vld [vmem:[#allocation15_spill] sm:$0xff] }
 0x1ff   : > { %3193 = vst [vmem:[%s5182_s24 + $0x58] sm:$0xff] %v3146_v31   ;;  %v3141_v6 = vpack.c.bf16 %v2412_v32, %v2411_v25  ;;  %v2641_v58 = vmul.f32 %v2412_v32, %v2412_v32  ;;  %v2603_v37 = vadd.f32 %v2602_v35, %v2412_v32  ;;  %v2361_v24 = vadd.f32 %v3560_v63, %v2360_v12  ;;  %v5365_v32 = vld [vmem:[#allocation3_spill] sm:$0xff]  ;;  %v5367_v12 = vld [vmem:[#allocation4_spill] sm:$0xff] }
 0x200   : > { %v2671_v23 = vadd.f32 %v2670_v30, %v2640_v48  ;;  %v3573_v52 = vpop.f32.mrf.mxu0  ;;  %v3745_v38 = vpop.f32.mrf.mxu1  ;;  %v2417_v19 = vadd.f32 %v2369_v57, %v5360_v9  ;;  %v3572_v56 = vadd.f32 %v3571_v41, %v3570_v27  ;;  %v1849_v63 = vadd.f32 %v5365_v32, %v5364_v11  ;;  %v5366_v41 = vld [vmem:[#allocation18_spill] sm:$0xff] }
 0x201   : > { %3192 = vst [vmem:[%s5182_s24 + $0x50] sm:$0xff] %v3141_v6   ;;  %v2372_v46 = vadd.f32 %v3745_v38, %v3569_v39  ;;  %v2604_v14 = vadd.f32 %v2603_v37, %v2413_v0  ;;  %v2415_v7 = vadd.f32 %v2361_v24, %v5359_v44  ;;  %v1852_v39 = vadd.f32 %v5367_v12, %v5366_v41 }
 0x202   : > { %v2672_v22 = vadd.f32 %v2671_v23, %v2641_v58  ;;  %v3574_v59 = vpop.f32.mrf.mxu0  ;;  %v2363_v51 = vpop.f32.mrf.mxu1  ;;  %v2646_v0 = vmul.f32 %v2417_v19, %v2417_v19  ;;  %v5368_v58 = vld [vmem:[#allocation16_spill] sm:$0xff] }
 0x203   : > { %v2418_v47 = vadd.f32 %v2372_v46, %v5361_v4  ;;  %v2364_v21 = vadd.f32 %v3563_v5, %v2363_v51  ;;  %v2605_v49 = vadd.f32 %v2604_v14, %v2414_v50  ;;  %v2644_v16 = vmul.f32 %v2415_v7, %v2415_v7 }
 0x204   : > { %v2673_v1 = vadd.f32 %v2672_v22, %v2642_v2  ;;  %v3576_v34 = vpop.f32.mrf.mxu0  ;;  %v3748_v28 = vpop.f32.mrf.mxu1  ;;  %v3575_v40 = vadd.f32 %v3574_v59, %v3573_v52 }
 0x205   : > { %v3156_v18 = vpack.c.bf16 %v2418_v47, %v2417_v19  ;;  %v2416_v55 = vadd.f32 %v2364_v21, %v5362_v62  ;;  %v2606_v54 = vadd.f32 %v2605_v49, %v2415_v7  ;;  %v2647_v35 = vmul.f32 %v2418_v47, %v2418_v47 }
 0x206   : > { %v2674_v29 = vadd.f32 %v2673_v1, %v2643_v26  ;;  %v3577_v13 = vpop.f32.mrf.mxu0  ;;  %v2376_v61 = vpop.f32.mrf.mxu1 }
 0x207   : > { %3195 = vst [vmem:[%s5182_s24 + $0x68] sm:$0xff] %v3156_v18   ;;  %v3151_v3 = vpack.c.bf16 %v2416_v55, %v2415_v7  ;;  %v2645_v42 = vmul.f32 %v2416_v55, %v2416_v55  ;;  %v3578_v8 = vadd.f32 %v3577_v13, %v3576_v34  ;;  %v2377_v53 = vadd.f32 %v3572_v56, %v2376_v61 }
 0x208   : > { %v2675_v25 = vadd.f32 %v2674_v29, %v2644_v16  ;;  %v2607_v10 = vadd.f32 %v2606_v54, %v2416_v55  ;;  %v3579_v17 = vpop.f32.mrf.mxu0  ;;  %v3749_v60 = vpop.f32.mrf.mxu1 }
 0x209   : > { %3194 = vst [vmem:[%s5182_s24 + $0x60] sm:$0xff] %v3151_v3   ;;  %v2385_v45 = vadd.f32 %v3748_v28, %v3578_v8  ;;  %v2419_v33 = vadd.f32 %v2377_v53, %v5363_v36 }
 0x20a   : > { %v2608_v50 = vadd.f32 %v2607_v10, %v2417_v19  ;;  %v2676_v15 = vadd.f32 %v2675_v25, %v2645_v42  ;;  %v3580_v27 = vpop.f32.mrf.mxu0  ;;  %v2379_v43 = vpop.f32.mrf.mxu1 }
 0x20b   : > { %v3581_v20 = vadd.f32 %v3580_v27, %v3579_v17  ;;  %v2380_v31 = vadd.f32 %v3575_v40, %v2379_v43  ;;  %v2421_v23 = vadd.f32 %v2385_v45, %v1849_v63  ;;  %v2648_v24 = vmul.f32 %v2419_v33, %v2419_v33 }
 0x20c   : > { %v2677_v48 = vadd.f32 %v2676_v15, %v2646_v0  ;;  %v2609_v30 = vadd.f32 %v2608_v50, %v2418_v47 }
 0x20d   : > { %v2388_v6 = vadd.f32 %v3749_v60, %v3581_v20  ;;  %v2420_v57 = vadd.f32 %v2380_v31, %v5368_v58  ;;  %v2650_v44 = vmul.f32 %v2421_v23, %v2421_v23 }
 0x20e   : > { %v2610_v37 = vadd.f32 %v2609_v30, %v2419_v33  ;;  %v2678_v52 = vadd.f32 %v2677_v48, %v2647_v35 }
 0x20f   : > { %v2422_v38 = vadd.f32 %v2388_v6, %v1852_v39  ;;  %v3161_v5 = vpack.c.bf16 %v2420_v57, %v2419_v33  ;;  %v2649_v46 = vmul.f32 %v2420_v57, %v2420_v57 }
 0x210   : > { %v2679_v2 = vadd.f32 %v2678_v52, %v2648_v24  ;;  %v2611_v14 = vadd.f32 %v2610_v37, %v2420_v57 }
 0x211   : > { %v3166_v22 = vpack.c.bf16 %v2422_v38, %v2421_v23  ;;  %3196 = vst [vmem:[%s5182_s24 + $0x70] sm:$0xff] %v3161_v5   ;;  %v2651_v51 = vmul.f32 %v2422_v38, %v2422_v38 }
 0x212   : > { %v2612_v7 = vadd.f32 %v2611_v14, %v2421_v23  ;;  %v2680_v59 = vadd.f32 %v2679_v2, %v2649_v46 }
 0x213   : > { %3197 = vst [vmem:[%s5182_s24 + $0x78] sm:$0xff] %v3166_v22  }
 0x214   : > { %v2613_v9 = vadd.f32 %v2612_v7, %v2422_v38  ;;  %v2681_v19 = vadd.f32 %v2680_v59, %v2650_v44 }
 0x216   : > { %v2614_v4 = vrot.slane %v2613_v9, 4  ;;  %v2682_v47 = vadd.f32 %v2681_v19, %v2651_v51 }
 0x218   : > { %v2615_v21 = vadd.f32 %v2614_v4, %v2613_v9  ;;  %v2683_v26 = vrot.slane %v2682_v47, 4 }
 0x21a   : > { %v2616_v1 = vrot.slane %v2615_v21, 2  ;;  %v2684_v49 = vadd.f32 %v2683_v26, %v2682_v47 }
 0x21c   : > { %v2617_v34 = vadd.f32 %v2616_v1, %v2615_v21  ;;  %v2685_v28 = vrot.slane %v2684_v49, 2 }
 0x21e   : > { %v2618_v56 = vrot.slane %v2617_v34, 1  ;;  %v2686_v18 = vadd.f32 %v2685_v28, %v2684_v49 }
 0x220   : > { %v2687_v62 = vrot.slane %v2686_v18, 1  ;;  %v2619_v55 = vadd.f32 %v2618_v56, %v2617_v34 }
 0x222   : > { %v2688_v54 = vadd.f32 %v2687_v62, %v2686_v18 }
 0x224   : > { %v2690_v16 = vsel %vm2689_vm2, %v2619_v55, %v2688_v54 }
 0x225   : > { %2691 = vst [vmem:[%s181_s27] sm:$0x3] %v2690_v16 }
 0x226 PF: > { %s14_s12 = sadd.s32 1, %s3878_s12  }
 0x227   : > { %p11_p4 = scmp.ge.s32.totalorder %s14_s12, 4  }
 0x229   :  { %13 = sbr.rel (!%p11_p4) target bundleno = 1 (0x1), region = 74 }

// kernel: basic_block_forward.4
= control target key start
LH: loop header
LB: loop body
LE: loop exit
PB: predicated region body
PF: predicated region fallthrough
CT: control target
= control target key end

     0   :  { %s4055_s18 = smov 0   ;;  %s5435_s0 = inlined_call_operand.vmem [shape: bf16[2,16,16,128], index: 0, kind: input, shape index: {}]   ;;  %s5436_s1 = inlined_call_operand.vmem [shape: bf16[3,384,128], index: 1, kind: input, shape index: {}]   ;;  %s5437_s2 = inlined_call_operand.vmem [shape: f32[1,128], index: 2, kind: input, shape index: {}]   ;;  %s5438_s3 = inlined_call_operand.vmem [shape: f32[1,128], index: 3, kind: input, shape index: {}]   ;;  %s5439_s4 = inlined_call_operand.vmem [shape: bf16[2,256,128], index: 4, kind: output, shape index: {0}]   ;;  %s5440_s5 = inlined_call_operand.vmem [shape: f32[2,2,128], index: 5, kind: output, shape index: {1}]  }
   0x1 LB: > { %s2942_s19 = sadd.s32 4294967295, %s4022_s18   ;;  %p2946_p0 = scmp.ge.s32.totalorder %s4022_s18, 1  ;;  %s4022_s18 = sphi %s4055_s18, %s16_s18  }
   0x2   : > { %p190_p1 = scmp.lt.s32.totalorder %s4022_s18, 3 }
   0x4   : > { %p191_p2 = pnand %p2946_p0, %p190_p1 }
   0x6   : > { %194 = sbr.rel (%p191_p2) target bundleno = 566 (0x236), region = 36 }
   0xb   : > { %v3941_v0 = vld [vmem:[%s5436_s1 + $0x138] sm:$0xff]   ;;  %v3943_v2 = vld [vmem:[%s5436_s1 + $0x130] sm:$0xff]   ;;  %p4074_p3 = scmp.lt.s32.totalorder %s2942_s19, 1  ;;  %v4024_v3 = vmov 0.0   ;;  %v3945_v5 = vld [vmem:[%s5436_s1 + $0x128] sm:$0xff]   ;;  %vm523_vm0 = vcmask 1047554  }
   0xc   : > { %v3942_v1 = vld [vmem:[%s5436_s1 + $0xf8] sm:$0xff]   ;;  %3364 = vmatprep.subr.bf16.mxu0 %v3941_v0  ;;  %3916 = vmatprep.subr.bf16.mxu1 %v3941_v0  ;;  %452 = vst [vmem:[#allocation2 + $0x140] sm:$0x3] %v4024_v3  ;;  %444 = vst [vmem:[#allocation2 + $0x90] sm:$0xff] %v4024_v3  ;;  %v3944_v4 = vld [vmem:[%s5436_s1 + $0xf0] sm:$0xff]   ;;  %vm680_vm1 = vcmask 1046528  }
   0xd   : > { %446 = vst [vmem:[#allocation2 + $0xe8] sm:$0x3] %v4024_v3  ;;  %450 = vst [vmem:[#allocation2 + $0x148] sm:$0x3] %v4024_v3  ;;  %3365 = vmatpush3.bf16.msra.mxu0 %v3942_v1  ;;  %3924 = vmatpush3.bf16.msra.mxu1 %v3942_v1  ;;  %s5569_s19 = smov (!%p4074_p3, %s2942_s19), 1  ;;  %v3946_v6 = vld [vmem:[%s5436_s1 + $0xe8] sm:$0xff]  }
   0xe   : > { %453 = vst [vmem:[#allocation2 + $0x180] sm:$0x3] %v4024_v3  ;;  %454 = vst [vmem:[#allocation2 + $0x88] sm:$0x3] %v4024_v3  ;;  %3366 = vmatprep.subr.bf16.mxu0 %v3943_v2  ;;  %3917 = vmatprep.subr.bf16.mxu1 %v3943_v2  ;;  %v3947_v7 = vld [vmem:[%s5436_s1 + $0x120] sm:$0xff]   ;;  %s3156_s10 = sshll.u32 %s5569_s19, 7 }
   0xf   : > { %455 = vst [vmem:[#allocation2 + $0x60] sm:$0x3] %v4024_v3  ;;  %456 = vst [vmem:[#allocation2 + $0x188] sm:$0x3] %v4024_v3  ;;  %v3948_v8 = vld [vmem:[%s5436_s1 + $0xe0] sm:$0xff]   ;;  %v3949_v9 = vld [vmem:[%s5436_s1 + $0x118] sm:$0xff]   ;;  %s4108_s17 = scalar_lea.vmem %s5435_s0, %s3156_s10  ;;  %s5305_s27 = scalar_lea.vmem %s5439_s4, %s3156_s10 }
  0x10   : > { %457 = vst [vmem:[#allocation2 + $0x38] sm:$0x3] %v4024_v3  ;;  %458 = vst [vmem:[#allocation2 + $0x20] sm:$0x3] %v4024_v3  ;;  %v3950_v10 = vld [vmem:[%s5436_s1 + $0xd8] sm:$0xff]   ;;  %v3951_v11 = vld [vmem:[%s5436_s1 + $0x110] sm:$0xff]  }
  0x11   : > { %459 = vst [vmem:[#allocation2 + $0xa8] sm:$0x3] %v4024_v3  ;;  %460 = vst [vmem:[#allocation2 + $0xc0] sm:$0x3] %v4024_v3  ;;  %3367 = vmatpush3.bf16.msra.mxu0 %v3944_v4  ;;  %3925 = vmatpush3.bf16.msra.mxu1 %v3944_v4  ;;  %v3191_v12 = vld [vmem:[%s4108_s17] sm:$0xff]   ;;  %v3952_v20 = vld [vmem:[%s5436_s1 + $0xd0] sm:$0xff]  }
  0x12   : > { %461 = vst [vmem:[#allocation2 + $0xb0] sm:$0x3] %v4024_v3  ;;  %462 = vst [vmem:[#allocation2 + $0x68] sm:$0x3] %v4024_v3  ;;  %3368 = vmatprep.subr.bf16.mxu0 %v3945_v5  ;;  %3918 = vmatprep.subr.bf16.mxu1 %v3945_v5  ;;  %v4120_v13 = vld [vmem:[%s5437_s2] ss:$0 sm:$0xff]  ;;  %v3192_v14 = vunpack.c.l.bf16 %v3191_v12  ;;  %v3193_v15 = vunpack.c.h.bf16 %v3191_v12 }
  0x13   : > { %463 = vst [vmem:[#allocation2 + $0x48] sm:$0x3] %v4024_v3  ;;  %464 = vst [vmem:[#allocation2 + $0xe0] sm:$0x3] %v4024_v3  ;;  %v3345_v16 = vld [vmem:[%s4108_s17 + $0x60] sm:$0xff]   ;;  %v3953_v23 = vld [vmem:[%s5436_s1 + $0x108] sm:$0xff]  }
  0x14   : > { %465 = vst [vmem:[#allocation2 + $0x168] sm:$0x3] %v4024_v3  ;;  %466 = vst [vmem:[#allocation2 + $0x1a0] sm:$0x3] %v4024_v3  ;;  %v4126_v17 = vld [vmem:[%s5438_s3] ss:$0 sm:$0xff]  ;;  %v3240_v18 = vunpack.c.l.bf16 %v3345_v16  ;;  %v3241_v19 = vunpack.c.h.bf16 %v3345_v16  ;;  %v308_v21 = vmul.f32 %v3192_v14, %v4120_v13  ;;  %v309_v22 = vmul.f32 %v3193_v15, %v4120_v13 }
  0x15   : > { %467 = vst [vmem:[#allocation2 + $0x130] sm:$0x3] %v4024_v3  ;;  %451 = vst [vmem:[#allocation2 + $0xe8] sm:$0x3] %v4024_v3  ;;  %3369 = vmatpush3.bf16.msra.mxu0 %v3946_v6  ;;  %3926 = vmatpush3.bf16.msra.mxu1 %v3946_v6  ;;  %v3954_v26 = vld [vmem:[%s5436_s1 + $0xc8] sm:$0xff]   ;;  %v3955_v31 = vld [vmem:[%s5436_s1 + $0x100] sm:$0xff]  }
  0x16   : > { %468 = vst [vmem:[#allocation2 + $0x148] sm:$0x3] %v4024_v3  ;;  %3370 = vmatprep.subr.bf16.mxu0 %v3947_v7  ;;  %3919 = vmatprep.subr.bf16.mxu1 %v3947_v7  ;;  %v332_v24 = vmul.f32 %v3240_v18, %v4120_v13  ;;  %v333_v25 = vmul.f32 %v3241_v19, %v4120_v13  ;;  %v3334_v29 = vld [vmem:[%s4108_s17 + $0x8] sm:$0xff]   ;;  %v474_v38 = vld [vmem:[#allocation2 + $0x140] sm:$0x3]  ;;  %v3957_v57 = vld [vmem:[%s5436_s1 + $0x178] sm:$0xff]  }
  0x17   : > { %v347_v27 = vadd.f32 %v4126_v17, %v308_v21  ;;  %v348_v28 = vadd.f32 %v4126_v17, %v309_v22  ;;  %v4145_v30 = vld [vmem:[%s4108_s17 + $0x68] sm:$0xff]   ;;  %v3196_v34 = vunpack.c.l.bf16 %v3334_v29  ;;  %v3197_v35 = vunpack.c.h.bf16 %v3334_v29  ;;  %v3956_v52 = vld [vmem:[%s5436_s1 + $0xc0] sm:$0xff]   ;;  %v3958_v62 = vld [vmem:[%s5436_s1 + $0xb8] sm:$0xff]   ;;  %s2951_s10 = sshll.u32 %s5569_s19, 1 }
  0x18   : > { %v371_v32 = vadd.f32 %v4126_v17, %v332_v24  ;;  %v372_v33 = vadd.f32 %v4126_v17, %v333_v25  ;;  %v3244_v41 = vunpack.c.l.bf16 %v4145_v30  ;;  %v3245_v42 = vunpack.c.h.bf16 %v4145_v30  ;;  %v3335_v22 = vld [vmem:[%s4108_s17 + $0x10] sm:$0xff]   ;;  %s235_s30 = scalar_lea.vmem %s5440_s5, %s2951_s10 }
  0x19   : > { %3371 = vmatpush3.bf16.msra.mxu0 %v3948_v8  ;;  %3927 = vmatpush3.bf16.msra.mxu1 %v3948_v8  ;;  %v4152_v36 = vmax.f32 %v347_v27, 0.0  ;;  %v4154_v37 = vmax.f32 %v348_v28, 0.0  ;;  %v310_v46 = vmul.f32 %v3196_v34, %v4120_v13  ;;  %v311_v47 = vmul.f32 %v3197_v35, %v4120_v13  ;;  %v3959_v28 = vld [vmem:[%s5436_s1 + $0x170] sm:$0xff]  }
  0x1a   : > { %3372 = vmatprep.subr.bf16.mxu0 %v3949_v9  ;;  %3920 = vmatprep.subr.bf16.mxu1 %v3949_v9  ;;  %v4156_v39 = vmax.f32 %v371_v32, 0.0  ;;  %v4158_v40 = vmax.f32 %v372_v33, 0.0  ;;  %v510_v45 = vld [vmem:[#allocation2 + $0xe0] sm:$0x3]  ;;  %v335_v16 = vmul.f32 %v3245_v42, %v4120_v13  ;;  %v3962_v32 = vld [vmem:[%s5436_s1 + $0xb0] sm:$0xff]   ;;  %vm2853_vm2 = vcmask 1040384  }
  0x1b   : > { %v526_v43 = vrot.slane %v4152_v36, 6  ;;  %v561_v44 = vrot.slane %v4154_v37, 6  ;;  %v829_v48 = vrot.slane %v4152_v36, 1  ;;  %v4169_v49 = vpack.c.bf16 %v4154_v37, %v4152_v36  ;;  %v513_v35 = vld [vmem:[#allocation2 + $0x168] sm:$0x3]  ;;  %v3986_v42 = vld [vmem:[%s5436_s1 + $0x80] sm:$0xff]  }
  0x1c   : > { %v550_v50 = vrot.slane %v4156_v39, 6  ;;  %v573_v51 = vrot.slane %v4158_v40, 6  ;;  %v830_v53 = vrot.slane %v4154_v37, 1  ;;  %v4179_v54 = vpack.c.bf16 %v4158_v40, %v4156_v39  ;;  %v486_v37 = vld [vmem:[#allocation2 + $0x188] sm:$0x3] }
  0x1d   : > { %3373 = vmatpush3.bf16.msra.mxu0 %v3950_v10  ;;  %3928 = vmatpush3.bf16.msra.mxu1 %v3950_v10  ;;  %v4182_v55 = vsel %vm523_vm0, %v526_v43, %v474_v38  ;;  %v597_v56 = vsel %vm523_vm0, %v561_v44, %v526_v43  ;;  %v349_v2 = vadd.f32 %v4126_v17, %v310_v46  ;;  %v3200_v38 = vunpack.c.l.bf16 %v3335_v22  ;;  %v3960_v46 = vld [vmem:[%s5436_s1 + $0x168] sm:$0xff]  }
  0x1e   : > { %3374 = vmatprep.subr.bf16.mxu0 %v3951_v11  ;;  %3921 = vmatprep.subr.bf16.mxu1 %v3951_v11  ;;  %5475 = vst [vmem:[#allocation3_spill] sm:$0xff] %v4179_v54  ;;  %v579_v58 = vrot.slane %v4182_v55, 6  ;;  %v686_v59 = vrot.slane %v4182_v55, 1  ;;  %v687_v60 = vrot.slane %v597_v56, 1  ;;  %v4191_v61 = vsel %vm523_vm0, %v550_v50, %v510_v45  ;;  %v477_v11 = vld [vmem:[#allocation2 + $0x180] sm:$0x3] }
  0x1f   : > { %1263 = vmatprep.mubr.bf16.mxu0 %v4169_v49  ;;  %1359 = vmatprep.mubr.bf16.mxu1 %v4179_v54  ;;  %v591_v63 = vrot.slane %v4191_v61, 6  ;;  %v609_v0 = vsel %vm523_vm0, %v573_v51, %v550_v50  ;;  %v5442_v1 = vrot.slane %v4191_v61, 1  ;;  %v350_v6 = vadd.f32 %v4126_v17, %v311_v47  ;;  %v3347_v47 = vld [vmem:[%s4108_s17 + $0x70] sm:$0xff]   ;;  %v3966_v50 = vld [vmem:[%s5436_s1 + $0xa8] sm:$0xff]  }
  0x20   : > { %v615_v3 = vsel %vm523_vm0, %v579_v58, %v561_v44  ;;  %v688_v4 = vsel %vm680_vm1, %v686_v59, %v687_v60  ;;  %v747_v5 = vrot.slane %v609_v0, 1  ;;  %v4208_v9 = vmax.f32 %v349_v2, 0.0 }
  0x21   : > { %3375 = vmatpush3.bf16.msra.mxu0 %v3952_v20  ;;  %3929 = vmatpush3.bf16.msra.mxu1 %v3952_v20  ;;  %v689_v7 = vrot.slane %v615_v3, 1  ;;  %v627_v8 = vsel %vm523_vm0, %v591_v63, %v573_v51  ;;  %v334_v10 = vmul.f32 %v3244_v41, %v4120_v13  ;;  %v4214_v15 = vmax.f32 %v350_v6, 0.0 }
  0x22   : > { %3376 = vmatprep.subr.bf16.mxu0 %v3953_v23  ;;  %3922 = vmatprep.subr.bf16.mxu1 %v3953_v23  ;;  %v748_v12 = vsel %vm680_vm1, %v5442_v1, %v747_v5  ;;  %v749_v14 = vrot.slane %v627_v8, 1  ;;  %v528_v20 = vrot.slane %v4208_v9, 6  ;;  %v374_v30 = vadd.f32 %v4126_v17, %v335_v16 }
  0x23   : > { %v690_v19 = vsel %vm680_vm1, %v687_v60, %v689_v7  ;;  %v373_v21 = vadd.f32 %v4126_v17, %v334_v10  ;;  %v4234_v29 = vpack.c.bf16 %v4214_v15, %v4208_v9  ;;  %v3201_v41 = vunpack.c.h.bf16 %v3335_v22 }
  0x24   : > { %v4223_v24 = vpack.c.bf16 %v690_v19, %v688_v4  ;;  %v750_v25 = vsel %vm680_vm1, %v747_v5, %v749_v14  ;;  %v4244_v33 = vsel %vm523_vm0, %v528_v20, %v477_v11  ;;  %v4249_v43 = vmax.f32 %v374_v30, 0.0 }
  0x25   : > { %3377 = vmatpush3.bf16.msra.mxu0 %v3954_v26  ;;  %3930 = vmatpush3.bf16.msra.mxu1 %v3954_v26  ;;  %v562_v26 = vrot.slane %v4214_v15, 6  ;;  %v4227_v27 = vpack.c.bf16 %v750_v25, %v748_v12  ;;  %v580_v45 = vrot.slane %v4244_v33, 6  ;;  %v5446_v51 = vrot.slane %v4244_v33, 1  ;;  %v3961_v12 = vld [vmem:[%s5436_s1 + $0x160] sm:$0xff]   ;;  %v480_v25 = vld [vmem:[#allocation2 + $0x88] sm:$0x3] }
  0x26   : > { %3378 = vmatprep.subr.bf16.mxu0 %v3955_v31  ;;  %3923 = vmatprep.subr.bf16.mxu1 %v3955_v31  ;;  %v4237_v31 = vmax.f32 %v373_v21, 0.0  ;;  %v312_v56 = vmul.f32 %v3200_v38, %v4120_v13  ;;  %v313_v58 = vmul.f32 %v3201_v41, %v4120_v13  ;;  %v834_v60 = vrot.slane %v4214_v15, 1  ;;  %v3990_v15 = vld [vmem:[%s5436_s1 + $0x1f8] sm:$0xff]  }
  0x27   : > { %5476 = vst [vmem:[#allocation4_spill] sm:$0xff] %v4227_v27  ;;  %v598_v34 = vsel %vm523_vm0, %v562_v26, %v528_v20  ;;  %v3248_v16 = vunpack.c.l.bf16 %v3347_v47  ;;  %v3249_v22 = vunpack.c.h.bf16 %v3347_v47 }
  0x28   : > { %v552_v44 = vrot.slane %v4237_v31, 6  ;;  %v4268_v63 = vpack.c.bf16 %v4249_v43, %v4237_v31  ;;  %v351_v4 = vadd.f32 %v4126_v17, %v312_v56  ;;  %v352_v8 = vadd.f32 %v4126_v17, %v313_v58 }
  0x29   : > { %3379 = vmatpush3.bf16.msra.mxu0 %v3956_v52  ;;  %3931 = vmatpush3.bf16.msra.mxu1 %v3956_v52  ;;  %v692_v52 = vrot.slane %v598_v34, 1 }
  0x2a   : > { %3772 = vmatprep.subr.bf16.mxu1 %v3957_v57  ;;  %3820 = vmatprep.subr.bf16.mxu0 %v3958_v62  ;;  %5477 = vst [vmem:[#allocation5_spill] sm:$0xff] %v4268_v63  ;;  %v4275_v3 = vsel %vm523_vm0, %v552_v44, %v513_v35  ;;  %v4287_v14 = vmax.f32 %v351_v4, 0.0  ;;  %v4292_v21 = vmax.f32 %v352_v8, 0.0  ;;  %v3970_v35 = vld [vmem:[%s5436_s1 + $0xa0] sm:$0xff]  }
  0x2b   : > { %v693_v0 = vsel %vm680_vm1, %v5446_v51, %v692_v52  ;;  %v592_v5 = vrot.slane %v4275_v3, 6  ;;  %v5441_v7 = vrot.slane %v4275_v3, 1  ;;  %v3338_v51 = vld [vmem:[%s4108_s17 + $0x28] sm:$0xff]  }
  0x2c   : > { %1264 = vmatmul.mubr.bf16.vlgmr.msra.gmra.mxu0 %v4223_v24  ;;  %1360 = vmatmul.mubr.bf16.vlgmr.msra.gmra.mxu1 %v4227_v27  ;;  %v530_v34 = vrot.slane %v4287_v14, 6  ;;  %v563_v41 = vrot.slane %v4292_v21, 6 }
  0x2d   : > { %3821 = vmatpush3.bf16.msra.mxu0 %v3958_v62  ;;  %3773 = vmatpush3.bf16.msra.mxu1 %v3957_v57  ;;  %v574_v62 = vrot.slane %v4249_v43, 6  ;;  %v616_v57 = vsel %vm523_vm0, %v580_v45, %v562_v26  ;;  %v3336_v26 = vld [vmem:[%s4108_s17 + $0x18] sm:$0xff]   ;;  %v336_v45 = vmul.f32 %v3248_v16, %v4120_v13 }
  0x2e   : > { %1271 = vmatprep.mubr.bf16.mxu0 %v4234_v29  ;;  %3774 = vmatprep.subr.bf16.mxu1 %v3959_v28  ;;  %v694_v2 = vrot.slane %v616_v57, 1  ;;  %v4314_v56 = vsel %vm523_vm0, %v530_v34, %v480_v25  ;;  %v3204_v58 = vunpack.c.l.bf16 %v3336_v26  ;;  %v599_v4 = vsel %vm523_vm0, %v563_v41, %v530_v34 }
  0x2f   : > { %3822 = vmatprep.subr.bf16.mxu0 %v3962_v32  ;;  %1367 = vmatprep.mubr.bf16.mxu1 %v4268_v63  ;;  %v610_v6 = vsel %vm523_vm0, %v574_v62, %v552_v44  ;;  %v628_v20 = vsel %vm523_vm0, %v592_v5, %v574_v62  ;;  %v4308_v44 = vpack.c.bf16 %v4292_v21, %v4287_v14  ;;  %v3348_v62 = vld [vmem:[%s4108_s17 + $0x78] sm:$0xff]   ;;  %v697_v8 = vrot.slane %v599_v4, 1 }
  0x30   : > { %v695_v10 = vsel %vm680_vm1, %v692_v52, %v694_v2  ;;  %v752_v11 = vrot.slane %v610_v6, 1  ;;  %v337_v52 = vmul.f32 %v3249_v22, %v4120_v13  ;;  %v581_v2 = vrot.slane %v4314_v56, 6  ;;  %v3975_v5 = vld [vmem:[%s5436_s1 + $0x98] sm:$0xff]  }
  0x31   : > { %3823 = vmatpush3.bf16.msra.mxu0 %v3962_v32  ;;  %3775 = vmatpush3.bf16.msra.mxu1 %v3959_v28  ;;  %v4289_v19 = vpack.c.bf16 %v695_v10, %v693_v0  ;;  %v754_v32 = vrot.slane %v628_v20, 1  ;;  %v375_v0 = vadd.f32 %v4126_v17, %v336_v45  ;;  %v5444_v6 = vrot.slane %v4314_v56, 1  ;;  %v516_v10 = vld [vmem:[#allocation2 + $0x1a0] sm:$0x3] }
  0x32   : > { %3824 = vmatprep.subr.bf16.mxu0 %v3966_v50  ;;  %3776 = vmatprep.subr.bf16.mxu1 %v3960_v46  ;;  %v753_v30 = vsel %vm680_vm1, %v5441_v7, %v752_v11  ;;  %v617_v20 = vsel %vm523_vm0, %v581_v2, %v563_v41  ;;  %v314_v22 = vmul.f32 %v3204_v58, %v4120_v13  ;;  %v3252_v25 = vunpack.c.l.bf16 %v3348_v62  ;;  %v3337_v7 = vld [vmem:[%s4108_s17 + $0x20] sm:$0xff]  }
  0x33   : > { %v755_v47 = vsel %vm680_vm1, %v752_v11, %v754_v32  ;;  %v3205_v11 = vunpack.c.h.bf16 %v3336_v26  ;;  %v4332_v16 = vmax.f32 %v375_v0, 0.0  ;;  %v698_v32 = vsel %vm680_vm1, %v5444_v6, %v697_v8  ;;  %v3964_v26 = vld [vmem:[%s5436_s1 + $0x150] sm:$0xff]  }
  0x34   : > { %1272 = vmatmul.mubr.bf16.gmra.mxu0 %v4289_v19  ;;  %v4317_v57 = vpack.c.bf16 %v755_v47, %v753_v30  ;;  %v699_v34 = vrot.slane %v617_v20, 1  ;;  %v3253_v2 = vunpack.c.h.bf16 %v3348_v62  ;;  %v483_v20 = vld [vmem:[#allocation2 + $0x60] sm:$0x3] }
  0x35   : > { %3777 = vmatpush3.bf16.msra.mxu1 %v3960_v46  ;;  %3825 = vmatpush3.bf16.msra.mxu0 %v3966_v50  ;;  %v3963_v46 = vld [vmem:[%s5436_s1 + $0x158] sm:$0xff]   ;;  %v376_v50 = vadd.f32 %v4126_v17, %v337_v52  ;;  %v315_v45 = vmul.f32 %v3205_v11, %v4120_v13  ;;  %v554_v47 = vrot.slane %v4332_v16, 6 }
  0x36   : > { %5478 = vst [vmem:[#allocation6_spill] sm:$0xff] %v4317_v57  ;;  %3778 = vmatprep.subr.bf16.mxu1 %v3961_v12  ;;  %1279 = vmatprep.mubr.bf16.mxu0 %v4308_v44  ;;  %v700_v0 = vsel %vm680_vm1, %v697_v8, %v699_v34  ;;  %v3978_v8 = vld [vmem:[%s5436_s1 + $0x90] sm:$0xff]   ;;  %v338_v34 = vmul.f32 %v3252_v25, %v4120_v13 }
  0x37   : > { %3826 = vmatprep.subr.bf16.mxu0 %v3970_v35  ;;  %1368 = vmatmul.mubr.bf16.gmra.mxu1 %v4317_v57  ;;  %v4336_v30 = vmax.f32 %v376_v50, 0.0  ;;  %v4354_v4 = vpack.c.bf16 %v700_v0, %v698_v32  ;;  %v354_v50 = vadd.f32 %v4126_v17, %v315_v45 }
  0x39   : > { %3779 = vmatpush3.bf16.msra.mxu1 %v3961_v12  ;;  %3827 = vmatpush3.bf16.msra.mxu0 %v3970_v35  ;;  %v353_v12 = vadd.f32 %v4126_v17, %v314_v22  ;;  %v575_v52 = vrot.slane %v4336_v30, 6  ;;  %v4351_v58 = vpack.c.bf16 %v4336_v30, %v4332_v16  ;;  %v4357_v35 = vsel %vm523_vm0, %v554_v47, %v516_v10  ;;  %v3965_v22 = vld [vmem:[%s5436_s1 + $0x148] sm:$0xff]  }
  0x3a   : > { %3780 = vmatprep.subr.bf16.mxu1 %v3963_v46  ;;  %3828 = vmatprep.subr.bf16.mxu0 %v3975_v5  ;;  %v593_v62 = vrot.slane %v4357_v35, 6  ;;  %v5443_v32 = vrot.slane %v4357_v35, 1  ;;  %v4376_v0 = vmax.f32 %v354_v50, 0.0  ;;  %v3208_v50 = vunpack.c.l.bf16 %v3337_v7 }
  0x3b   : > { %5479 = vst [vmem:[#allocation7_spill] sm:$0xff] %v4351_v58  ;;  %v4360_v11 = vmax.f32 %v353_v12, 0.0  ;;  %1375 = vmatprep.mubr.bf16.mxu1 %v4351_v58  ;;  %v611_v10 = vsel %vm523_vm0, %v575_v52, %v554_v47  ;;  %v339_v47 = vmul.f32 %v3253_v2, %v4120_v13 }
  0x3c   : > { %1280 = vmatmul.mubr.bf16.gmra.mxu0 %v4354_v4  ;;  %v757_v12 = vrot.slane %v611_v10, 1  ;;  %v629_v1 = vsel %vm523_vm0, %v593_v62, %v575_v52  ;;  %v564_v10 = vrot.slane %v4376_v0, 6  ;;  %v519_v62 = vld [vmem:[#allocation2 + $0x130] sm:$0x3] }
  0x3d   : > { %3781 = vmatpush3.bf16.msra.mxu1 %v3963_v46  ;;  %v532_v28 = vrot.slane %v4360_v11, 6  ;;  %v377_v46 = vadd.f32 %v4126_v17, %v338_v34  ;;  %3829 = vmatpush3.bf16.msra.mxu0 %v3975_v5  ;;  %v759_v18 = vrot.slane %v629_v1, 1  ;;  %v4389_v38 = vpack.c.bf16 %v4376_v0, %v4360_v11 }
  0x3e   : > { %3782 = vmatprep.subr.bf16.mxu1 %v3964_v26  ;;  %v758_v25 = vsel %vm680_vm1, %v5443_v32, %v757_v12  ;;  %3830 = vmatprep.subr.bf16.mxu0 %v3978_v8  ;;  %v378_v52 = vadd.f32 %v4126_v17, %v339_v47 }
  0x3f   : > { %v4392_v2 = vmax.f32 %v377_v46, 0.0  ;;  %v4395_v5 = vsel %vm523_vm0, %v532_v28, %v483_v20  ;;  %v760_v34 = vsel %vm680_vm1, %v757_v12, %v759_v18  ;;  %v600_v32 = vsel %vm523_vm0, %v564_v10, %v532_v28  ;;  %1287 = vmatprep.mubr.bf16.mxu0 %v4389_v38  ;;  %v3967_v18 = vld [vmem:[%s5436_s1 + $0x140] sm:$0xff]  }
  0x40   : > { %v582_v1 = vrot.slane %v4395_v5, 6  ;;  %v4401_v23 = vpack.c.bf16 %v760_v34, %v758_v25  ;;  %v4405_v47 = vmax.f32 %v378_v52, 0.0  ;;  %v702_v12 = vrot.slane %v600_v32, 1  ;;  %v3983_v34 = vld [vmem:[%s5436_s1 + $0x88] sm:$0xff]  }
  0x41   : > { %3783 = vmatpush3.bf16.msra.mxu1 %v3964_v26  ;;  %v5445_v26 = vrot.slane %v4395_v5, 1  ;;  %v556_v20 = vrot.slane %v4392_v2, 6  ;;  %3831 = vmatpush3.bf16.msra.mxu0 %v3978_v8  ;;  %v3209_v46 = vunpack.c.h.bf16 %v3337_v7  ;;  %v316_v25 = vmul.f32 %v3208_v50, %v4120_v13 }
  0x42   : > { %3784 = vmatprep.subr.bf16.mxu1 %v3965_v22  ;;  %5480 = vst [vmem:[#allocation8_spill] sm:$0xff] %v4401_v23  ;;  %v618_v28 = vsel %vm523_vm0, %v582_v1, %v564_v10  ;;  %1376 = vmatmul.mubr.bf16.gmra.mxu1 %v4401_v23  ;;  %v576_v6 = vrot.slane %v4405_v47, 6  ;;  %v4421_v41 = vpack.c.bf16 %v4405_v47, %v4392_v2  ;;  %v3968_v1 = vld [vmem:[%s5436_s1 + $0x78] sm:$0xff]  }
  0x43   : > { %v704_v8 = vrot.slane %v618_v28, 1  ;;  %v703_v7 = vsel %vm680_vm1, %v5445_v26, %v702_v12  ;;  %v4427_v32 = vsel %vm523_vm0, %v556_v20, %v519_v62  ;;  %v317_v10 = vmul.f32 %v3209_v46, %v4120_v13  ;;  %3832 = vmatprep.subr.bf16.mxu0 %v3983_v34 }
  0x44   : > { %5481 = vst [vmem:[#allocation9_spill] sm:$0xff] %v4421_v41  ;;  %v355_v50 = vadd.f32 %v4126_v17, %v316_v25  ;;  %1383 = vmatprep.mubr.bf16.mxu1 %v4421_v41  ;;  %v594_v52 = vrot.slane %v4427_v32, 6  ;;  %v612_v26 = vsel %vm523_vm0, %v576_v6, %v556_v20  ;;  %v5447_v62 = vrot.slane %v4427_v32, 1 }
  0x45   : > { %3785 = vmatpush3.bf16.msra.mxu1 %v3965_v22  ;;  %v705_v28 = vsel %vm680_vm1, %v702_v12, %v704_v8  ;;  %v1021_v46 = vrot.slane %v612_v26, 1  ;;  %v356_v25 = vadd.f32 %v4126_v17, %v317_v10  ;;  %v831_v20 = vsel %vm680_vm1, %v829_v48, %v830_v53  ;;  %3833 = vmatpush3.bf16.msra.mxu0 %v3983_v34 }
  0x46   : > { %3786 = vmatprep.subr.bf16.mxu1 %v3967_v18  ;;  %v4439_v22 = vpack.c.bf16 %v705_v28, %v703_v7  ;;  %v387_v45 = vmax.f32 %v355_v50, 0.0  ;;  %v630_v12 = vsel %vm523_vm0, %v594_v52, %v576_v6  ;;  %v832_v26 = vsel %vm680_vm1, %v830_v53, %v686_v59  ;;  %3834 = vmatprep.subr.bf16.mxu0 %v3986_v42 }
  0x47   : > { %v5482_v8 = vrot.slane %v4208_v9, 1  ;;  %v1022_v36 = vsel %vm680_vm1, %v5447_v62, %v1021_v46  ;;  %v1023_v48 = vrot.slane %v630_v12, 1  ;;  %v388_v55 = vmax.f32 %v356_v25, 0.0 }
  0x48   : > { %1288 = vmatmul.mubr.bf16.gmra.mxu0 %v4439_v22  ;;  %v534_v6 = vrot.slane %v387_v45, 6  ;;  %v845_v52 = vrot.slane %v387_v45, 1  ;;  %v4466_v53 = vpack.c.bf16 %v832_v26, %v831_v20  ;;  %v5483_v59 = vrot.slane %v4244_v33, 1 }
  0x49   : > { %v835_v7 = vsel %vm680_vm1, %v5482_v8, %v834_v60  ;;  %3787 = vmatpush3.bf16.msra.mxu1 %v3967_v18  ;;  %v3212_v34 = vunpack.c.l.bf16 %v3338_v51  ;;  %v1024_v10 = vsel %vm680_vm1, %v1021_v46, %v1023_v48  ;;  %v565_v50 = vrot.slane %v388_v55, 6  ;;  %3835 = vmatpush3.bf16.msra.mxu0 %v3986_v42 }
  0x4a   : > { %v836_v9 = vsel %vm680_vm1, %v834_v60, %v5483_v59  ;;  %3500 = vmatprep.subr.bf16.mxu1 %v3968_v1  ;;  %v846_v28 = vrot.slane %v388_v55, 1  ;;  %v4474_v18 = vpack.c.bf16 %v388_v55, %v387_v45  ;;  %v4476_v25 = vpack.c.bf16 %v1024_v10, %v1022_v36  ;;  %3636 = vmatprep.subr.bf16.mxu0 %v3990_v15 }
  0x4b   : > { %v535_v12 = vsel %vm523_vm0, %v534_v6, %v486_v37  ;;  %v4479_v20 = vpack.c.bf16 %v836_v9, %v835_v7  ;;  %v3213_v33 = vunpack.c.h.bf16 %v3338_v51  ;;  %v601_v1 = vsel %vm523_vm0, %v565_v50, %v534_v6  ;;  %v3339_v6 = vld [vmem:[%s4108_s17 + $0x30] sm:$0xff]  }
  0x4c   : > { %5484 = vst [vmem:[#allocation10_spill] sm:$0xff] %v4476_v25  ;;  %1295 = vmatprep.mubr.bf16.mxu0 %v4474_v18  ;;  %v583_v60 = vrot.slane %v535_v12, 6  ;;  %v706_v45 = vrot.slane %v535_v12, 1  ;;  %v318_v46 = vmul.f32 %v3212_v34, %v4120_v13  ;;  %1384 = vmatmul.mubr.bf16.gmra.mxu1 %v4476_v25  ;;  %v707_v26 = vrot.slane %v601_v1, 1 }
  0x4d   : > { %v319_v8 = vmul.f32 %v3213_v33, %v4120_v13  ;;  %v5485_v51 = vrot.slane %v4292_v21, 1  ;;  %v5486_v42 = vrot.slane %v4287_v14, 1  ;;  %v5487_v36 = vrot.slane %v4314_v56, 1  ;;  %3788 = vmatprep.mubr.bf16.mxu1 %v4466_v53  ;;  %v489_v33 = vld [vmem:[#allocation2 + $0x38] sm:$0x3] }
  0x4e   : > { %v619_v37 = vsel %vm523_vm0, %v583_v60, %v565_v50  ;;  %v357_v59 = vadd.f32 %v4126_v17, %v318_v46  ;;  %v5489_v14 = vrot.slane %v4376_v0, 1  ;;  %v5490_v34 = vrot.slane %v4360_v11, 1  ;;  %v3969_v0 = vld [vmem:[%s5436_s1 + $0x38] sm:$0xff]  }
  0x4f   : > { %v839_v7 = vsel %vm680_vm1, %v5486_v42, %v5485_v51  ;;  %v5488_v48 = vmov %v5485_v51  ;;  %v708_v21 = vsel %vm680_vm1, %v706_v45, %v707_v26  ;;  %v709_v10 = vrot.slane %v619_v37, 1 }
  0x50   : > { %v840_v55 = vsel %vm680_vm1, %v5488_v48, %v5487_v36  ;;  %v843_v56 = vsel %vm680_vm1, %v5490_v34, %v5489_v14  ;;  %v358_v12 = vadd.f32 %v4126_v17, %v319_v8  ;;  %v5491_v15 = vrot.slane %v4395_v5, 1  ;;  %v3340_v8 = vld [vmem:[%s4108_s17 + $0x38] sm:$0xff]   ;;  %v3972_v34 = vld [vmem:[%s5436_s1 + $0x30] sm:$0xff]  }
  0x51   : > { %v4503_v9 = vpack.c.bf16 %v840_v55, %v839_v7  ;;  %v5492_v50 = vmov %v5489_v14  ;;  %v389_v1 = vmax.f32 %v357_v59, 0.0  ;;  %v3216_v51 = vunpack.c.l.bf16 %v3339_v6 }
  0x52   : > { %v844_v60 = vsel %vm680_vm1, %v5492_v50, %v5491_v15  ;;  %v3217_v42 = vunpack.c.h.bf16 %v3339_v6  ;;  %v710_v11 = vsel %vm680_vm1, %v707_v26, %v709_v10  ;;  %v390_v7 = vmax.f32 %v358_v12, 0.0  ;;  %v3971_v6 = vld [vmem:[%s5436_s1 + $0x70] sm:$0xff]  }
  0x53   : > { %v4517_v46 = vpack.c.bf16 %v844_v60, %v843_v56  ;;  %v847_v36 = vsel %vm680_vm1, %v845_v52, %v846_v28  ;;  %v848_v48 = vsel %vm680_vm1, %v846_v28, %v706_v45  ;;  %v4523_v55 = vpack.c.bf16 %v710_v11, %v708_v21 }
  0x54   : > { %v536_v5 = vrot.slane %v389_v1, 6  ;;  %v849_v37 = vrot.slane %v389_v1, 1  ;;  %v320_v26 = vmul.f32 %v3216_v51, %v4120_v13  ;;  %v566_v59 = vrot.slane %v390_v7, 6  ;;  %3789 = vmatmul.mubr.bf16.vlgmr.msra.gmra.mxu1 %v4479_v20 }
  0x55   : > { %v850_v14 = vrot.slane %v390_v7, 1  ;;  %v4532_v52 = vpack.c.bf16 %v390_v7, %v389_v1  ;;  %v321_v28 = vmul.f32 %v3217_v42, %v4120_v13  ;;  %1296 = vmatmul.mubr.bf16.gmra.mxu0 %v4523_v55  ;;  %v4541_v21 = vpack.c.bf16 %v848_v48, %v847_v36  ;;  %3501 = vmatpush3.bf16.msra.mxu1 %v3969_v0 }
  0x56   : > { %v537_v45 = vsel %vm523_vm0, %v536_v5, %v489_v33  ;;  %v359_v56 = vadd.f32 %v4126_v17, %v320_v26  ;;  %v3220_v10 = vunpack.c.l.bf16 %v3340_v8  ;;  %v602_v15 = vsel %vm523_vm0, %v566_v59, %v536_v5  ;;  %v492_v33 = vld [vmem:[#allocation2 + $0x20] sm:$0x3]  ;;  %3792 = vmatprep.mubr.bf16.mxu1 %v4503_v9  ;;  %3502 = vmatprep.subr.bf16.mxu1 %v3971_v6  ;;  %v3973_v5 = vld [vmem:[%s5436_s1 + $0x68] sm:$0xff]  }
  0x57   : > { %1303 = vmatprep.mubr.bf16.mxu0 %v4532_v52  ;;  %v584_v12 = vrot.slane %v537_v45, 6  ;;  %v711_v50 = vrot.slane %v537_v45, 1  ;;  %v360_v60 = vadd.f32 %v4126_v17, %v321_v28  ;;  %v712_v1 = vrot.slane %v602_v15, 1 }
  0x58   : > { %v391_v51 = vmax.f32 %v359_v56, 0.0  ;;  %v851_v42 = vsel %vm680_vm1, %v849_v37, %v850_v14  ;;  %v3221_v11 = vunpack.c.h.bf16 %v3340_v8  ;;  %v322_v0 = vmul.f32 %v3220_v10, %v4120_v13 }
  0x59   : > { %v620_v7 = vsel %vm523_vm0, %v584_v12, %v566_v59  ;;  %v392_v36 = vmax.f32 %v360_v60, 0.0  ;;  %v852_v48 = vsel %vm680_vm1, %v850_v14, %v711_v50  ;;  %v713_v26 = vsel %vm680_vm1, %v711_v50, %v712_v1  ;;  %3503 = vmatpush3.bf16.msra.mxu1 %v3972_v34  ;;  %v3341_v60 = vld [vmem:[%s4108_s17 + $0x40] sm:$0xff]  }
  0x5a   : > { %v714_v28 = vrot.slane %v620_v7, 1  ;;  %v538_v45 = vrot.slane %v391_v51, 6  ;;  %v853_v56 = vrot.slane %v391_v51, 1  ;;  %v4558_v6 = vpack.c.bf16 %v852_v48, %v851_v42  ;;  %3504 = vmatprep.subr.bf16.mxu1 %v3973_v5  ;;  %v3976_v34 = vld [vmem:[%s5436_s1 + $0x60] sm:$0xff]  }
  0x5b   : > { %v567_v37 = vrot.slane %v392_v36, 6  ;;  %v854_v8 = vrot.slane %v392_v36, 1  ;;  %v4556_v15 = vpack.c.bf16 %v392_v36, %v391_v51  ;;  %v323_v12 = vmul.f32 %v3221_v11, %v4120_v13  ;;  %v3974_v51 = vld [vmem:[%s5436_s1 + $0x28] sm:$0xff]   ;;  %v4577_v13 = vld [vmem:[%s5438_s3] ss:$0 sm:$0xff] }
  0x5c   : > { %v715_v59 = vsel %vm680_vm1, %v712_v1, %v714_v28  ;;  %v539_v14 = vsel %vm523_vm0, %v538_v45, %v492_v33  ;;  %v361_v10 = vadd.f32 %v4126_v17, %v322_v0  ;;  %v495_v11 = vld [vmem:[#allocation2 + $0xa8] sm:$0x3]  ;;  %3793 = vmatmul.mubr.bf16.gmra.mxu1 %v4517_v46  ;;  %v3977_v48 = vld [vmem:[%s5436_s1 + $0x20] sm:$0xff]   ;;  %v3224_v5 = vunpack.c.l.bf16 %v3341_v60 }
  0x5d   : > { %5493 = vst [vmem:[#allocation11_spill] sm:$0xff] %v4556_v15  ;;  %v4565_v50 = vpack.c.bf16 %v715_v59, %v713_v26  ;;  %v585_v7 = vrot.slane %v539_v14, 6  ;;  %v603_v62 = vsel %vm523_vm0, %v567_v37, %v538_v45  ;;  %v716_v25 = vrot.slane %v539_v14, 1  ;;  %3796 = vmatprep.mubr.bf16.mxu1 %v4541_v21  ;;  %v3342_v59 = vld [vmem:[%s4108_s17 + $0x48] sm:$0xff]   ;;  %3505 = vmatpush3.bf16.msra.mxu1 %v3974_v51 }
  0x5e   : > { %v717_v33 = vrot.slane %v603_v62, 1  ;;  %v362_v17 = vadd.f32 %v4577_v13, %v323_v12  ;;  %v393_v1 = vmax.f32 %v361_v10, 0.0  ;;  %v855_v42 = vsel %vm680_vm1, %v853_v56, %v854_v8  ;;  %v4600_v12 = vld [vmem:[%s5437_s2] ss:$0 sm:$0xff]  ;;  %3506 = vmatprep.subr.bf16.mxu1 %v3976_v34  ;;  %v3980_v34 = vld [vmem:[%s5436_s1 + $0x18] sm:$0xff]  }
  0x5f   : > { %5494 = vst [vmem:[#allocation12_spill] sm:$0xff] %v4565_v50  ;;  %1304 = vmatmul.mubr.bf16.gmra.mxu0 %v4565_v50  ;;  %v621_v36 = vsel %vm523_vm0, %v585_v7, %v567_v37  ;;  %v856_v62 = vsel %vm680_vm1, %v854_v8, %v716_v25  ;;  %v3225_v0 = vunpack.c.h.bf16 %v3341_v60  ;;  %v3979_v37 = vld [vmem:[%s5436_s1 + $0x58] sm:$0xff]   ;;  %v324_v10 = vmul.f32 %v4600_v12, %v3224_v5  ;;  %v4605_v60 = vld [vmem:[%s4108_s17 + $0x50] sm:$0xff]  }
  0x60   : > { %1311 = vmatprep.mubr.bf16.mxu0 %v4556_v15  ;;  %v718_v26 = vsel %vm680_vm1, %v716_v25, %v717_v33  ;;  %v719_v28 = vrot.slane %v621_v36, 1  ;;  %v394_v45 = vmax.f32 %v362_v17, 0.0  ;;  %v540_v56 = vrot.slane %v393_v1, 6 }
  0x61   : > { %v857_v8 = vrot.slane %v393_v1, 1  ;;  %v4595_v14 = vpack.c.bf16 %v856_v62, %v855_v42  ;;  %v325_v25 = vmul.f32 %v4600_v12, %v3225_v0  ;;  %v363_v62 = vadd.f32 %v4577_v13, %v324_v10  ;;  %3507 = vmatpush3.bf16.msra.mxu1 %v3977_v48  ;;  %v498_v10 = vld [vmem:[#allocation2 + $0xc0] sm:$0x3]  ;;  %v3981_v48 = vld [vmem:[%s5436_s1 + $0x50] sm:$0xff]  }
  0x62   : > { %v720_v7 = vsel %vm680_vm1, %v717_v33, %v719_v28  ;;  %v568_v17 = vrot.slane %v394_v45, 6  ;;  %v858_v36 = vrot.slane %v394_v45, 1  ;;  %v4608_v41 = vpack.c.bf16 %v394_v45, %v393_v1  ;;  %3508 = vmatprep.subr.bf16.mxu1 %v3979_v37 }
  0x63   : > { %v4610_v51 = vpack.c.bf16 %v720_v7, %v718_v26  ;;  %v541_v42 = vsel %vm523_vm0, %v540_v56, %v495_v11  ;;  %v364_v23 = vadd.f32 %v4577_v13, %v325_v25  ;;  %v395_v28 = vmax.f32 %v363_v62, 0.0 }
  0x64   : > { %5495 = vst [vmem:[#allocation13_spill] sm:$0xff] %v4608_v41  ;;  %v586_v5 = vrot.slane %v541_v42, 6  ;;  %v604_v0 = vsel %vm523_vm0, %v568_v17, %v540_v56  ;;  %v721_v58 = vrot.slane %v541_v42, 1  ;;  %v859_v57 = vsel %vm680_vm1, %v857_v8, %v858_v36  ;;  %3797 = vmatmul.mubr.bf16.gmra.mxu1 %v4558_v6 }
  0x65   : > { %5496 = vst [vmem:[#allocation14_spill] sm:$0xff] %v4610_v51  ;;  %v722_v33 = vrot.slane %v604_v0, 1  ;;  %v396_v1 = vmax.f32 %v364_v23, 0.0  ;;  %v3228_v45 = vunpack.c.l.bf16 %v3342_v59  ;;  %v3229_v25 = vunpack.c.h.bf16 %v3342_v59  ;;  %3800 = vmatprep.mubr.bf16.mxu1 %v4595_v14  ;;  %3509 = vmatpush3.bf16.msra.mxu1 %v3980_v34  ;;  %v3982_v0 = vld [vmem:[%s5436_s1 + $0x10] sm:$0xff]  }
  0x66   : > { %v622_v11 = vsel %vm523_vm0, %v586_v5, %v568_v17  ;;  %v860_v26 = vsel %vm680_vm1, %v858_v36, %v721_v58  ;;  %v3232_v56 = vunpack.c.l.bf16 %v4605_v60  ;;  %v542_v17 = vrot.slane %v395_v28, 6  ;;  %3510 = vmatprep.subr.bf16.mxu1 %v3981_v48 }
  0x67   : > { %1312 = vmatmul.mubr.bf16.gmra.mxu0 %v4610_v51  ;;  %v723_v23 = vsel %vm680_vm1, %v721_v58, %v722_v33  ;;  %v724_v8 = vrot.slane %v622_v11, 1  ;;  %v4629_v7 = vpack.c.bf16 %v860_v26, %v859_v57  ;;  %v569_v59 = vrot.slane %v396_v1, 6 }
  0x68   : > { %1319 = vmatprep.mubr.bf16.mxu0 %v4608_v41  ;;  %v861_v37 = vrot.slane %v395_v28, 1  ;;  %v862_v36 = vrot.slane %v396_v1, 1  ;;  %v4633_v42 = vpack.c.bf16 %v396_v1, %v395_v28  ;;  %v543_v5 = vsel %vm523_vm0, %v542_v17, %v498_v10 }
  0x69   : > { %v725_v62 = vsel %vm680_vm1, %v722_v33, %v724_v8  ;;  %v326_v58 = vmul.f32 %v4600_v12, %v3228_v45  ;;  %v327_v57 = vmul.f32 %v4600_v12, %v3229_v25  ;;  %v587_v26 = vrot.slane %v543_v5, 6  ;;  %v3984_v33 = vld [vmem:[%s5436_s1 + $0x48] sm:$0xff]   ;;  %v3344_v25 = vld [vmem:[%s4108_s17 + $0x58] sm:$0xff]   ;;  %3511 = vmatpush3.bf16.msra.mxu1 %v3982_v0 }
  0x6a   : > { %5497 = vst [vmem:[#allocation15_spill] sm:$0xff] %v4633_v42  ;;  %v4642_v11 = vpack.c.bf16 %v725_v62, %v723_v23  ;;  %v726_v63 = vrot.slane %v543_v5, 1  ;;  %v863_v28 = vsel %vm680_vm1, %v861_v37, %v862_v36  ;;  %v605_v1 = vsel %vm523_vm0, %v569_v59, %v542_v17  ;;  %v3985_v17 = vld [vmem:[%s5436_s1 + $0x8] sm:$0xff]   ;;  %3512 = vmatprep.subr.bf16.mxu1 %v3984_v33 }
  0x6b   : > { %v365_v45 = vadd.f32 %v4577_v13, %v326_v58  ;;  %v366_v34 = vadd.f32 %v4577_v13, %v327_v57  ;;  %v3233_v10 = vunpack.c.h.bf16 %v4605_v60  ;;  %v623_v8 = vsel %vm523_vm0, %v587_v26, %v569_v59  ;;  %v501_v58 = vld [vmem:[#allocation2 + $0xb0] sm:$0x3] }
  0x6c   : > { %5498 = vst [vmem:[#allocation16_spill] sm:$0xff] %v4642_v11  ;;  %v864_v23 = vsel %vm680_vm1, %v862_v36, %v726_v63  ;;  %v727_v62 = vrot.slane %v605_v1, 1  ;;  %v328_v48 = vmul.f32 %v4600_v12, %v3232_v56  ;;  %v729_v5 = vrot.slane %v623_v8, 1  ;;  %v3987_v56 = vld [vmem:[%s5436_s1 + $0x40] sm:$0xff]   ;;  %3801 = vmatmul.mubr.bf16.gmra.mxu1 %v4629_v7 }
  0x6d   : > { %v4656_v37 = vpack.c.bf16 %v864_v23, %v863_v28  ;;  %v397_v27 = vmax.f32 %v365_v45, 0.0  ;;  %v398_v54 = vmax.f32 %v366_v34, 0.0  ;;  %v329_v36 = vmul.f32 %v4600_v12, %v3233_v10  ;;  %3513 = vmatpush3.bf16.msra.mxu1 %v3985_v17 }
  0x6e   : > { %v728_v60 = vsel %vm680_vm1, %v726_v63, %v727_v62  ;;  %v367_v59 = vadd.f32 %v4577_v13, %v328_v48  ;;  %v3236_v57 = vunpack.c.l.bf16 %v3344_v25  ;;  %v730_v0 = vsel %vm680_vm1, %v727_v62, %v729_v5  ;;  %v3988_v48 = vld [vmem:[%s5436_s1] sm:$0xff]   ;;  %3514 = vmatprep.subr.bf16.mxu1 %v3987_v56 }
  0x6f   : > { %1320 = vmatmul.mubr.bf16.gmra.mxu0 %v4642_v11  ;;  %v544_v26 = vrot.slane %v397_v27, 6  ;;  %v570_v28 = vrot.slane %v398_v54, 6  ;;  %v865_v63 = vrot.slane %v397_v27, 1  ;;  %3804 = vmatprep.mubr.bf16.mxu1 %v4656_v37  ;;  %v4673_v33 = vpack.c.bf16 %v730_v0, %v728_v60  ;;  %v504_v0 = vld [vmem:[#allocation2 + $0x68] sm:$0x3] }
  0x70   : > { %1327 = vmatprep.mubr.bf16.mxu0 %v4633_v42  ;;  %v866_v45 = vrot.slane %v398_v54, 1  ;;  %v368_v34 = vadd.f32 %v4577_v13, %v329_v36  ;;  %v399_v23 = vmax.f32 %v367_v59, 0.0  ;;  %v3237_v62 = vunpack.c.h.bf16 %v3344_v25 }
  0x71   : > { %v545_v10 = vsel %vm523_vm0, %v544_v26, %v501_v58  ;;  %v606_v8 = vsel %vm523_vm0, %v570_v28, %v544_v26  ;;  %v4685_v58 = vld [vmem:[%s5436_s1 + $0x238] sm:$0xff]   ;;  %v330_v17 = vmul.f32 %v4600_v12, %v3236_v57  ;;  %v4689_v11 = vpack.c.bf16 %v398_v54, %v397_v27  ;;  %3515 = vmatpush3.bf16.msra.mxu1 %v3988_v48 }
  0x72   : > { %v588_v5 = vrot.slane %v545_v10, 6  ;;  %v731_v1 = vrot.slane %v545_v10, 1  ;;  %v867_v42 = vsel %vm680_vm1, %v865_v63, %v866_v45  ;;  %v400_v60 = vmax.f32 %v368_v34, 0.0  ;;  %3868 = vmatprep.subr.bf16.mxu1 %v4685_v58 }
  0x73   : > { %v546_v36 = vrot.slane %v399_v23, 6  ;;  %v869_v59 = vrot.slane %v399_v23, 1  ;;  %v732_v25 = vrot.slane %v606_v8, 1  ;;  %v331_v57 = vmul.f32 %v4600_v12, %v3237_v62 }
  0x74   : > { %v868_v26 = vsel %vm680_vm1, %v866_v45, %v731_v1  ;;  %v870_v10 = vrot.slane %v400_v60, 1  ;;  %v624_v63 = vsel %vm523_vm0, %v588_v5, %v570_v28  ;;  %v571_v41 = vrot.slane %v400_v60, 6 }
  0x75   : > { %v4692_v34 = vpack.c.bf16 %v868_v26, %v867_v42  ;;  %v547_v56 = vsel %vm523_vm0, %v546_v36, %v504_v0  ;;  %v734_v51 = vrot.slane %v624_v63, 1  ;;  %v1029_v54 = vrot.slane %v4392_v2, 1 }
  0x76   : > { %v589_v15 = vrot.slane %v547_v56, 6  ;;  %v736_v50 = vrot.slane %v547_v56, 1  ;;  %v871_v8 = vsel %vm680_vm1, %v869_v59, %v870_v10  ;;  %v1030_v27 = vrot.slane %v4405_v47, 1 }
  0x77   : > { %1328 = vmatmul.mubr.bf16.gmra.mxu0 %v4673_v33  ;;  %3805 = vmatmul.mubr.bf16.gmra.mxu1 %v4692_v34  ;;  %v733_v42 = vsel %vm680_vm1, %v731_v1, %v732_v25  ;;  %v369_v28 = vadd.f32 %v4577_v13, %v330_v17  ;;  %v735_v12 = vsel %vm680_vm1, %v732_v25, %v734_v51  ;;  %v5499_v2 = vrot.slane %v4158_v40, 1  ;;  %v507_v25 = vld [vmem:[#allocation2 + $0x48] sm:$0x3] }
  0x78   : > { %1335 = vmatprep.mubr.bf16.mxu0 %v4689_v11  ;;  %v872_v45 = vsel %vm680_vm1, %v870_v10, %v736_v50  ;;  %v370_v62 = vadd.f32 %v4577_v13, %v331_v57  ;;  %v5500_v47 = vrot.slane %v4156_v39, 1  ;;  %v5501_v1 = vrot.slane %v4191_v61, 1 }
  0x79   : > { %v4713_v5 = vpack.c.bf16 %v872_v45, %v871_v8  ;;  %v401_v0 = vmax.f32 %v369_v28, 0.0  ;;  %v5502_v59 = vmov %v5499_v2  ;;  %v607_v26 = vsel %vm523_vm0, %v571_v41, %v546_v36 }
  0x7a   : > { %v879_v48 = vsel %vm680_vm1, %v5500_v47, %v5499_v2  ;;  %v880_v17 = vsel %vm680_vm1, %v5502_v59, %v5501_v1  ;;  %v402_v51 = vmax.f32 %v370_v62, 0.0  ;;  %v4721_v13 = vpack.c.bf16 %v400_v60, %v399_v23 }
  0x7b   : > { %v4723_v10 = vpack.c.bf16 %v880_v17, %v879_v48  ;;  %v625_v39 = vsel %vm523_vm0, %v589_v15, %v571_v41  ;;  %3808 = vmatprep.mubr.bf16.mxu1 %v4713_v5  ;;  %v4727_v63 = vpack.c.bf16 %v735_v12, %v733_v42  ;;  %v548_v56 = vrot.slane %v401_v0, 6 }
  0x7c   : > { %v873_v61 = vrot.slane %v401_v0, 1  ;;  %v5503_v40 = vrot.slane %v4249_v43, 1  ;;  %v5504_v8 = vrot.slane %v4237_v31, 1  ;;  %v874_v57 = vrot.slane %v402_v51, 1 }
  0x7d   : > { %v737_v28 = vrot.slane %v607_v26, 1  ;;  %v739_v23 = vrot.slane %v625_v39, 1  ;;  %v5505_v60 = vrot.slane %v4275_v3, 1  ;;  %v549_v15 = vsel %vm523_vm0, %v548_v56, %v507_v25  ;;  %v4015_v26 = vld [vmem:[#allocation2 + $0x90] sm:$0xff] }
  0x7e   : > { %v883_v36 = vsel %vm680_vm1, %v5504_v8, %v5503_v40  ;;  %v5506_v45 = vmov %v5503_v40  ;;  %v572_v42 = vrot.slane %v402_v51, 6  ;;  %v590_v62 = vrot.slane %v549_v15, 6 }
  0x7f   : > { %v884_v41 = vsel %vm680_vm1, %v5506_v45, %v5505_v60  ;;  %v741_v2 = vrot.slane %v549_v15, 1  ;;  %v875_v31 = vsel %vm680_vm1, %v873_v61, %v874_v57  ;;  %1336 = vmatmul.mubr.bf16.gmra.mxu0 %v4727_v63  ;;  %v5507_v47 = vrot.slane %v4336_v30, 1  ;;  %v471_v60 = vld [vmem:[#allocation2 + $0xe8] sm:$0x3] }
  0x80   : > { %v4740_v12 = vpack.c.bf16 %v884_v41, %v883_v36  ;;  %v5508_v48 = vrot.slane %v4332_v16, 1  ;;  %v5509_v43 = vrot.slane %v4357_v35, 1  ;;  %v1031_v17 = vsel %vm680_vm1, %v1029_v54, %v1030_v27  ;;  %1343 = vmatprep.mubr.bf16.mxu0 %v4721_v13 }
  0x81   : > { %v5510_v1 = vmov %v5507_v47  ;;  %v4755_v25 = vrot.slane %v4015_v26, 6  ;;  %v876_v39 = vsel %vm680_vm1, %v874_v57, %v741_v2  ;;  %v738_v61 = vsel %vm680_vm1, %v736_v50, %v737_v28 }
  0x82   : > { %v887_v3 = vsel %vm680_vm1, %v5508_v48, %v5507_v47  ;;  %v888_v59 = vsel %vm680_vm1, %v5510_v1, %v5509_v43  ;;  %v740_v16 = vsel %vm680_vm1, %v737_v28, %v739_v23  ;;  %v4763_v35 = vpack.c.bf16 %v876_v39, %v875_v31  ;;  %v3991_v1 = vld [vmem:[%s5436_s1 + $0x1b8] sm:$0xff]   ;;  %v3994_v39 = vld [vmem:[%s5436_s1 + $0x230] sm:$0xff]  }
  0x83   : > { %v4761_v40 = vpack.c.bf16 %v888_v59, %v887_v3  ;;  %v608_v30 = vsel %vm523_vm0, %v572_v42, %v548_v56  ;;  %v626_v8 = vsel %vm523_vm0, %v590_v62, %v572_v42  ;;  %v5511_v54 = vrot.slane %v4427_v32, 1  ;;  %v3992_v59 = vld [vmem:[%s5436_s1 + $0x1f0] sm:$0xff]  }
  0x84   : > { %3809 = vmatmul.mubr.bf16.gmra.mxu1 %v4763_v35  ;;  %v4773_v50 = vpack.c.bf16 %v740_v16, %v738_v61  ;;  %v4776_v28 = vpack.c.bf16 %v402_v51, %v401_v0  ;;  %v742_v23 = vrot.slane %v608_v30, 1  ;;  %v744_v45 = vrot.slane %v626_v8, 1  ;;  %v3995_v61 = vld [vmem:[%s5436_s1 + $0x1e8] sm:$0xff]   ;;  %v3997_v30 = vld [vmem:[%s5436_s1 + $0x1e0] sm:$0xff]   ;;  %v4000_v8 = vld [vmem:[%s5436_s1 + $0x1d8] sm:$0xff]  }
  0x85   : > { %v1032_v36 = vsel %vm680_vm1, %v1030_v27, %v5511_v54  ;;  %3812 = vmatprep.mubr.bf16.mxu1 %v4723_v10  ;;  %v525_v56 = vsel %vm523_vm0, %v4755_v25, %v471_v60  ;;  %v4780_v41 = vrot.slane %v4015_v26, 1  ;;  %v4799_v47 = vpack.c.bf16 %v4015_v26, %v4015_v26  ;;  %v3993_v26 = vld [vmem:[%s5436_s1 + $0x1b0] sm:$0xff]   ;;  %v3999_v16 = vld [vmem:[%s5436_s1 + $0x228] sm:$0xff]   ;;  %v4001_v54 = vld [vmem:[%s5436_s1 + $0x198] sm:$0xff]  }
  0x86   : > { %v4770_v57 = vpack.c.bf16 %v1032_v36, %v1031_v17  ;;  %v681_v32 = vrot.slane %v525_v56, 1  ;;  %v743_v27 = vsel %vm680_vm1, %v741_v2, %v742_v23  ;;  %v745_v15 = vsel %vm680_vm1, %v742_v23, %v744_v45  ;;  %v4009_v36 = vld [vmem:[%s5436_s1 + $0x218] sm:$0xff]   ;;  %v4002_v60 = vld [vmem:[%s5436_s1 + $0x1d0] sm:$0xff]   ;;  %v4005_v45 = vld [vmem:[%s5436_s1 + $0x1c8] sm:$0xff]  }
  0x87   : > { %1344 = vmatmul.mubr.bf16.gmra.mxu0 %v4773_v50  ;;  %v578_v42 = vrot.slane %v525_v56, 6  ;;  %v4789_v51 = vpack.c.bf16 %v745_v15, %v743_v27  ;;  %v4797_v2 = vrot.slane %v4755_v25, 1  ;;  %v4010_v23 = vld [vmem:[%s5436_s1 + $0x210] sm:$0xff]   ;;  %v4006_v56 = vld [vmem:[%s5436_s1 + $0x188] sm:$0xff]   ;;  %v4007_v27 = vld [vmem:[%s5436_s1 + $0x1c0] sm:$0xff]  }
  0x88   : > { %1351 = vmatprep.mubr.bf16.mxu0 %v4776_v28  ;;  %v828_v0 = vsel %vm680_vm1, %v4780_v41, %v681_v32  ;;  %v4008_v15 = vld [vmem:[%s5436_s1 + $0x180] sm:$0xff]  }
  0x89   : > { %v923_v62 = vpack.c.bf16 %v828_v0, %v4780_v41  ;;  %v614_v31 = vsel %vm523_vm0, %v578_v42, %v4755_v25  ;;  %v683_v3 = vsel %vm680_vm1, %v681_v32, %v4797_v2  ;;  %v4011_v32 = vld [vmem:[%s5436_s1 + $0x208] sm:$0xff]   ;;  %v4012_v42 = vld [vmem:[%s5436_s1 + $0x200] sm:$0xff]   ;;  %v5512_v0 = vld [vmem:[#allocation12_spill] sm:$0xff] }
  0x8a   : > { %v684_v48 = vrot.slane %v614_v31, 1  ;;  %v5514_v31 = vld [vmem:[#allocation14_spill] sm:$0xff] }
  0x8c   : > { %3813 = vmatmul.mubr.bf16.gmra.mxu1 %v4740_v12  ;;  %v685_v43 = vsel %vm680_vm1, %v4797_v2, %v684_v48  ;;  %v5515_v48 = vld [vmem:[#allocation13_spill] sm:$0xff] }
  0x8d   : > { %3816 = vmatprep.mubr.bf16.mxu1 %v4761_v40  ;;  %v921_v17 = vpack.c.bf16 %v685_v43, %v683_v3  ;;  %v5516_v3 = vld [vmem:[#allocation16_spill] sm:$0xff]  ;;  %v5517_v43 = vld [vmem:[#allocation15_spill] sm:$0xff] }
  0x8f   : > { %1352 = vmatmul.mubr.bf16.gmra.mxu0 %v4789_v51 }
  0x90   : > { %3836 = vmatprep.mubr.bf16.mxu0 %v923_v62  ;;  %v5513_v62 = vld [vmem:[#allocation11_spill] sm:$0xff] }
  0x94   : > { %3817 = vmatmul.mubr.bf16.gmra.mxu1 %v4770_v57 }
  0x95   : > { %1729 = vmatprep.mubr.bf16.mxu1 %v4799_v47 }
  0x97   : > { %3837 = vmatmul.mubr.bf16.vlgmr.msra.gmra.mxu0 %v4466_v53  ;;  %v3996_v53 = vld [vmem:[%s5436_s1 + $0x1a8] sm:$0xff]  }
  0x98   : > { %3637 = vmatpush3.bf16.msra.mxu0 %v3991_v1  ;;  %3840 = vmatprep.mubr.bf16.mxu0 %v4479_v20 }
  0x99   : > { %3638 = vmatprep.subr.bf16.mxu0 %v3992_v59 }
  0x9c   : > { %1730 = vmatmul.mubr.bf16.vlgmr.msra.gmra.mxu1 %v921_v17  ;;  %3639 = vmatpush3.bf16.msra.mxu0 %v3993_v26 }
  0x9d   : > { %3869 = vmatpush3.bf16.msra.mxu1 %v4685_v58  ;;  %1737 = vmatprep.mubr.bf16.mxu1 %v4169_v49  ;;  %v3998_v49 = vld [vmem:[%s5436_s1 + $0x1a0] sm:$0xff]  }
  0x9e   : > { %3870 = vmatprep.subr.bf16.mxu1 %v3994_v39  ;;  %3640 = vmatprep.subr.bf16.mxu0 %v3995_v61  ;;  %v4004_v58 = vld [vmem:[%s5436_s1 + $0x220] sm:$0xff]  }
  0x9f   : > { %3841 = vmatmul.mubr.bf16.gmra.mxu0 %v4503_v9 }
  0xa0   : > { %3844 = vmatprep.mubr.bf16.mxu0 %v4517_v46  ;;  %3641 = vmatpush3.bf16.msra.mxu0 %v3996_v53 }
  0xa1   : > { %3871 = vmatpush3.bf16.msra.mxu1 %v3994_v39  ;;  %3642 = vmatprep.subr.bf16.mxu0 %v3997_v30 }
  0xa2   : > { %3872 = vmatprep.subr.bf16.mxu1 %v3999_v16 }
  0xa4   : > { %1738 = vmatmul.mubr.bf16.gmra.mxu1 %v4223_v24  ;;  %3643 = vmatpush3.bf16.msra.mxu0 %v3998_v49  ;;  %v4003_v24 = vld [vmem:[%s5436_s1 + $0x190] sm:$0xff]  }
  0xa5   : > { %1745 = vmatprep.mubr.bf16.mxu1 %v4234_v29  ;;  %3873 = vmatpush3.bf16.msra.mxu1 %v3999_v16 }
  0xa6   : > { %3874 = vmatprep.subr.bf16.mxu1 %v4004_v58  ;;  %3644 = vmatprep.subr.bf16.mxu0 %v4000_v8 }
  0xa7   : > { %3845 = vmatmul.mubr.bf16.gmra.mxu0 %v4541_v21 }
  0xa8   : > { %3848 = vmatprep.mubr.bf16.mxu0 %v4558_v6  ;;  %3645 = vmatpush3.bf16.msra.mxu0 %v4001_v54  ;;  %v5518_v54 = vld [vmem:[#allocation3_spill] sm:$0xff] }
  0xa9   : > { %3875 = vmatpush3.bf16.msra.mxu1 %v4004_v58  ;;  %3646 = vmatprep.subr.bf16.mxu0 %v4002_v60 }
  0xaa   : > { %3876 = vmatprep.subr.bf16.mxu1 %v4009_v36 }
  0xac   : > { %1746 = vmatmul.mubr.bf16.gmra.mxu1 %v4289_v19  ;;  %3647 = vmatpush3.bf16.msra.mxu0 %v4003_v24 }
  0xad   : > { %1753 = vmatprep.mubr.bf16.mxu1 %v4308_v44  ;;  %3877 = vmatpush3.bf16.msra.mxu1 %v4009_v36 }
  0xae   : > { %3878 = vmatprep.subr.bf16.mxu1 %v4010_v23  ;;  %3648 = vmatprep.subr.bf16.mxu0 %v4005_v45 }
  0xaf   : > { %3849 = vmatmul.mubr.bf16.gmra.mxu0 %v4595_v14 }
  0xb0   : > { %3852 = vmatprep.mubr.bf16.mxu0 %v4629_v7  ;;  %3649 = vmatpush3.bf16.msra.mxu0 %v4006_v56 }
  0xb1   : > { %3879 = vmatpush3.bf16.msra.mxu1 %v4010_v23  ;;  %3650 = vmatprep.subr.bf16.mxu0 %v4007_v27  ;;  %v5519_v27 = vld [vmem:[#allocation4_spill] sm:$0xff] }
  0xb2   : > { %3880 = vmatprep.subr.bf16.mxu1 %v4011_v32 }
  0xb4   : > { %1754 = vmatmul.mubr.bf16.gmra.mxu1 %v4354_v4  ;;  %3651 = vmatpush3.bf16.msra.mxu0 %v4008_v15  ;;  %v5520_v15 = vld [vmem:[#allocation5_spill] sm:$0xff] }
  0xb5   : > { %1761 = vmatprep.mubr.bf16.mxu1 %v4389_v38  ;;  %3881 = vmatpush3.bf16.msra.mxu1 %v4011_v32 }
  0xb6   : > { %3882 = vmatprep.subr.bf16.mxu1 %v4012_v42 }
  0xb7   : > { %3853 = vmatmul.mubr.bf16.gmra.mxu0 %v4656_v37 }
  0xb8   : > { %3856 = vmatprep.mubr.bf16.mxu0 %v4692_v34 }
  0xb9   : > { %3883 = vmatpush3.bf16.msra.mxu1 %v4012_v42 }
  0xbc   : > { %1762 = vmatmul.mubr.bf16.gmra.mxu1 %v4439_v22 }
  0xbd   : > { %1769 = vmatprep.mubr.bf16.mxu1 %v4474_v18 }
  0xbf   : > { %3857 = vmatmul.mubr.bf16.gmra.mxu0 %v4713_v5 }
  0xc0   : > { %3860 = vmatprep.mubr.bf16.mxu0 %v4763_v35 }
  0xc4   : > { %1770 = vmatmul.mubr.bf16.gmra.mxu1 %v4523_v55 }
  0xc5   : > { %1777 = vmatprep.mubr.bf16.mxu1 %v4532_v52 }
  0xc7   : > { %3861 = vmatmul.mubr.bf16.gmra.mxu0 %v4723_v10 }
  0xc8   : > { %3864 = vmatprep.mubr.bf16.mxu0 %v4740_v12 }
  0xcc   : > { %1778 = vmatmul.mubr.bf16.gmra.mxu1 %v5512_v0 }
  0xcd   : > { %1785 = vmatprep.mubr.bf16.mxu1 %v5513_v62 }
  0xcf   : > { %3865 = vmatmul.mubr.bf16.gmra.mxu0 %v4761_v40 }
  0xd0   : > { %2265 = vmatprep.mubr.bf16.mxu0 %v4234_v29 }
  0xd4   : > { %1786 = vmatmul.mubr.bf16.gmra.mxu1 %v5514_v31 }
  0xd5   : > { %1793 = vmatprep.mubr.bf16.mxu1 %v5515_v48 }
  0xd7   : > { %2266 = vmatmul.mubr.bf16.vlgmr.msra.gmra.mxu0 %v4289_v19 }
  0xd8   : > { %2273 = vmatprep.mubr.bf16.mxu0 %v4308_v44 }
  0xdc   : > { %1794 = vmatmul.mubr.bf16.gmra.mxu1 %v5516_v3 }
  0xdd   : > { %1801 = vmatprep.mubr.bf16.mxu1 %v5517_v43 }
  0xdf   : > { %2274 = vmatmul.mubr.bf16.gmra.mxu0 %v4354_v4 }
  0xe0   : > { %2281 = vmatprep.mubr.bf16.mxu0 %v4389_v38 }
  0xe4   : > { %1802 = vmatmul.mubr.bf16.gmra.mxu1 %v4673_v33 }
  0xe5   : > { %1809 = vmatprep.mubr.bf16.mxu1 %v4689_v11 }
  0xe7   : > { %2282 = vmatmul.mubr.bf16.gmra.mxu0 %v4439_v22 }
  0xe8   : > { %2289 = vmatprep.mubr.bf16.mxu0 %v4474_v18 }
  0xec   : > { %1810 = vmatmul.mubr.bf16.gmra.mxu1 %v4727_v63  ;;  %v3380_v29 = vpop.f32.mrf.mxu0  ;;  %v3452_v19 = vpop.f32.mrf.mxu1 }
  0xed   : > { %1817 = vmatprep.mubr.bf16.mxu1 %v4721_v13 }
  0xee   : > { %v3381_v44 = vpop.f32.mrf.mxu0  ;;  %v3453_v4 = vpop.f32.mrf.mxu1 }
  0xef   : > { %v4917_v1 = vadd.f32 %v3381_v44, %v3380_v29  ;;  %2290 = vmatmul.mubr.bf16.gmra.mxu0 %v4523_v55  ;;  %v4920_v38 = vadd.f32 %v3453_v4, %v3452_v19 }
  0xf0   : > { %v3383_v59 = vpop.f32.mrf.mxu0  ;;  %2297 = vmatprep.mubr.bf16.mxu0 %v4532_v52  ;;  %v3455_v22 = vpop.f32.mrf.mxu1 }
  0xf2   : > { %v3384_v17 = vpop.f32.mrf.mxu0  ;;  %v3456_v26 = vpop.f32.mrf.mxu1 }
  0xf3   : > { %v4923_v18 = vadd.f32 %v3384_v17, %v3383_v59  ;;  %v4926_v39 = vadd.f32 %v3456_v26, %v3455_v22  ;;  %v5522_v22 = vld [vmem:[#allocation7_spill] sm:$0xff] }
  0xf4   : > { %1818 = vmatmul.mubr.bf16.gmra.mxu1 %v4773_v50  ;;  %v3386_v61 = vpop.f32.mrf.mxu0 }
  0xf5   : > { %1825 = vmatprep.mubr.bf16.mxu1 %v4776_v28 }
  0xf6   : > { %v3387_v53 = vpop.f32.mrf.mxu0 }
  0xf7   : > { %2298 = vmatmul.mubr.bf16.gmra.mxu0 %v5512_v0  ;;  %v3388_v55 = vadd.f32 %v3387_v53, %v3386_v61  ;;  %v3458_v16 = vpop.f32.mrf.mxu1 }
  0xf8   : > { %2305 = vmatprep.mubr.bf16.mxu0 %v5513_v62  ;;  %v3389_v52 = vpop.f32.mrf.mxu0 }
  0xf9   : > { %v3459_v30 = vpop.f32.mrf.mxu1 }
  0xfa   : > { %v3390_v49 = vpop.f32.mrf.mxu0  ;;  %v4932_v58 = vadd.f32 %v3459_v30, %v3458_v16  ;;  %v5523_v30 = vld [vmem:[#allocation8_spill] sm:$0xff] }
  0xfb   : > { %v3391_v8 = vadd.f32 %v3390_v49, %v3389_v52  ;;  %v3461_v36 = vpop.f32.mrf.mxu1 }
  0xfc   : > { %1826 = vmatmul.mubr.bf16.gmra.mxu1 %v4789_v51  ;;  %v3392_v24 = vpop.f32.mrf.mxu0 }
  0xfd   : > { %1833 = vmatprep.mubr.bf16.mxu1 %v5518_v54  ;;  %v3462_v60 = vpop.f32.mrf.mxu1 }
  0xfe   : > { %v4936_v23 = vadd.f32 %v3462_v60, %v3461_v36  ;;  %v3393_v45 = vpop.f32.mrf.mxu0 }
  0xff   : > { %2306 = vmatmul.mubr.bf16.gmra.mxu0 %v5514_v31  ;;  %v3394_v56 = vadd.f32 %v3393_v45, %v3392_v24 }
 0x100   : > { %2313 = vmatprep.mubr.bf16.mxu0 %v5515_v48  ;;  %v3395_v32 = vpop.f32.mrf.mxu0  ;;  %v5521_v48 = vld [vmem:[#allocation6_spill] sm:$0xff] }
 0x102   : > { %v3396_v42 = vpop.f32.mrf.mxu0  ;;  %v3464_v0 = vpop.f32.mrf.mxu1 }
 0x103   : > { %v3397_v62 = vadd.f32 %v3396_v42, %v3395_v32 }
 0x104   : > { %1834 = vmatmul.mubr.bf16.gmra.mxu1 %v5519_v27  ;;  %v3465_v29 = vpop.f32.mrf.mxu1 }
 0x105   : > { %1841 = vmatprep.mubr.bf16.mxu1 %v5520_v15  ;;  %v4942_v19 = vadd.f32 %v3465_v29, %v3464_v0 }
 0x106   : > { %v3467_v31 = vpop.f32.mrf.mxu1 }
 0x107   : > { %2314 = vmatmul.mubr.bf16.gmra.mxu0 %v5516_v3 }
 0x108   : > { %2321 = vmatprep.mubr.bf16.mxu0 %v5517_v43  ;;  %v3398_v44 = vpop.f32.mrf.mxu0  ;;  %v3468_v4 = vpop.f32.mrf.mxu1 }
 0x109   : > { %v4946_v59 = vadd.f32 %v3468_v4, %v3467_v31 }
 0x10a   : > { %v3399_v17 = vpop.f32.mrf.mxu0 }
 0x10b   : > { %v3400_v26 = vadd.f32 %v3399_v17, %v3398_v44 }
 0x10c   : > { %1842 = vmatmul.mubr.bf16.gmra.mxu1 %v5521_v48  ;;  %v3401_v61 = vpop.f32.mrf.mxu0  ;;  %v3470_v53 = vpop.f32.mrf.mxu1 }
 0x10d   : > { %1849 = vmatprep.mubr.bf16.mxu1 %v5522_v22 }
 0x10e   : > { %v3402_v3 = vpop.f32.mrf.mxu0  ;;  %v3471_v16 = vpop.f32.mrf.mxu1 }
 0x10f   : > { %2322 = vmatmul.mubr.bf16.gmra.mxu0 %v4673_v33  ;;  %v3403_v43 = vadd.f32 %v3402_v3, %v3401_v61  ;;  %v4951_v52 = vadd.f32 %v3471_v16, %v3470_v53 }
 0x110   : > { %2329 = vmatprep.mubr.bf16.mxu0 %v4689_v11  ;;  %v3473_v49 = vpop.f32.mrf.mxu1 }
 0x112   : > { %v3474_v36 = vpop.f32.mrf.mxu1 }
 0x113   : > { %v4955_v60 = vadd.f32 %v3474_v36, %v3473_v49 }
 0x114   : > { %1850 = vmatmul.mubr.bf16.gmra.mxu1 %v5523_v30  ;;  %v3790_v45 = vpop.f32.mrf.mxu1 }
 0x115   : > { %3884 = vmatprep.mubr.bf16.mxu1 %v4479_v20  ;;  %v3404_v24 = vpop.f32.mrf.mxu0  ;;  %v4958_v33 = vadd.f32 %v3790_v45, %v3388_v55 }
 0x116   : > { %v1426_v42 = vpop.f32.mrf.mxu1 }
 0x117   : > { %2330 = vmatmul.mubr.bf16.gmra.mxu0 %v4727_v63  ;;  %v3405_v32 = vpop.f32.mrf.mxu0  ;;  %v4962_v0 = vadd.f32 %v4917_v1, %v1426_v42 }
 0x118   : > { %2337 = vmatprep.mubr.bf16.mxu0 %v4721_v13  ;;  %v3406_v11 = vadd.f32 %v3405_v32, %v3404_v24  ;;  %v3791_v20 = vpop.f32.mrf.mxu1 }
 0x119   : > { %v3407_v29 = vpop.f32.mrf.mxu0  ;;  %v4965_v31 = vadd.f32 %v3791_v20, %v3391_v8 }
 0x11a   : > { %v1429_v55 = vpop.f32.mrf.mxu1 }
 0x11b   : > { %v3408_v44 = vpop.f32.mrf.mxu0  ;;  %v4969_v4 = vadd.f32 %v4923_v18, %v1429_v55 }
 0x11c   : > { %3885 = vmatmul.mubr.bf16.vlgmr.msra.gmra.mxu1 %v4503_v9  ;;  %v3409_v63 = vadd.f32 %v3408_v44, %v3407_v29  ;;  %v3794_v17 = vpop.f32.mrf.mxu1 }
 0x11d   : > { %3888 = vmatprep.mubr.bf16.mxu1 %v4517_v46  ;;  %v4972_v1 = vadd.f32 %v3794_v17, %v3400_v26 }
 0x11e   : > { %v1442_v61 = vpop.f32.mrf.mxu1 }
 0x11f   : > { %v3410_v13 = vpop.f32.mrf.mxu0  ;;  %2338 = vmatmul.mubr.bf16.gmra.mxu0 %v4773_v50  ;;  %v4975_v53 = vadd.f32 %v3394_v56, %v1442_v61 }
 0x120   : > { %2345 = vmatprep.mubr.bf16.mxu0 %v4776_v28  ;;  %v3795_v3 = vpop.f32.mrf.mxu1 }
 0x121   : > { %v3411_v9 = vpop.f32.mrf.mxu0  ;;  %v4978_v16 = vadd.f32 %v3795_v3, %v3403_v43  ;;  %v522_v3 = vld [vmem:[#allocation2 + $0x148] sm:$0x3] }
 0x122   : > { %v3412_v8 = vadd.f32 %v3411_v9, %v3410_v13  ;;  %v1445_v49 = vpop.f32.mrf.mxu1 }
 0x123   : > { %v3413_v46 = vpop.f32.mrf.mxu0  ;;  %v4981_v26 = vadd.f32 %v3397_v62, %v1445_v49 }
 0x124   : > { %3889 = vmatmul.mubr.bf16.gmra.mxu1 %v4541_v21  ;;  %v3798_v28 = vpop.f32.mrf.mxu1 }
 0x125   : > { %3892 = vmatprep.mubr.bf16.mxu1 %v4558_v6  ;;  %v3414_v18 = vpop.f32.mrf.mxu0  ;;  %v4984_v24 = vadd.f32 %v3798_v28, %v3412_v8 }
 0x126   : > { %v3415_v50 = vadd.f32 %v3414_v18, %v3413_v46  ;;  %v1458_v56 = vpop.f32.mrf.mxu1 }
 0x127   : > { %v3416_v36 = vpop.f32.mrf.mxu0  ;;  %2346 = vmatmul.mubr.bf16.gmra.mxu0 %v4789_v51  ;;  %v4987_v43 = vadd.f32 %v3406_v11, %v1458_v56 }
 0x128   : > { %2353 = vmatprep.mubr.bf16.mxu0 %v5518_v54  ;;  %v3799_v32 = vpop.f32.mrf.mxu1 }
 0x129   : > { %v3417_v21 = vpop.f32.mrf.mxu0  ;;  %v4990_v42 = vadd.f32 %v3799_v32, %v3415_v50 }
 0x12a   : > { %v3418_v45 = vadd.f32 %v3417_v21, %v3416_v36  ;;  %v1461_v29 = vpop.f32.mrf.mxu1 }
 0x12b   : > { %v3419_v6 = vpop.f32.mrf.mxu0  ;;  %v4993_v20 = vadd.f32 %v3409_v63, %v1461_v29 }
 0x12c   : > { %3893 = vmatmul.mubr.bf16.gmra.mxu1 %v4595_v14  ;;  %v3802_v54 = vpop.f32.mrf.mxu1 }
 0x12d   : > { %3896 = vmatprep.mubr.bf16.mxu1 %v4629_v7  ;;  %v3420_v62 = vpop.f32.mrf.mxu0 }
 0x12e   : > { %v3421_v51 = vadd.f32 %v3420_v62, %v3419_v6  ;;  %v1474_v55 = vpop.f32.mrf.mxu1  ;;  %v5524_v62 = vld [vmem:[#allocation9_spill] sm:$0xff] }
 0x12f   : > { %v3422_v44 = vpop.f32.mrf.mxu0  ;;  %2354 = vmatmul.mubr.bf16.gmra.mxu0 %v5519_v27  ;;  %v4997_v13 = vadd.f32 %v3418_v45, %v1474_v55 }
 0x130   : > { %2361 = vmatprep.mubr.bf16.mxu0 %v5520_v15  ;;  %v3803_v7 = vpop.f32.mrf.mxu1 }
 0x131   : > { %v3423_v11 = vpop.f32.mrf.mxu0 }
 0x132   : > { %v3424_v14 = vadd.f32 %v3423_v11, %v3422_v44  ;;  %v1477_v61 = vpop.f32.mrf.mxu1 }
 0x133   : > { %v3425_v17 = vpop.f32.mrf.mxu0  ;;  %v5003_v46 = vadd.f32 %v3421_v51, %v1477_v61  ;;  %v5525_v61 = vld [vmem:[#allocation10_spill] sm:$0xff] }
 0x134   : > { %3897 = vmatmul.mubr.bf16.gmra.mxu1 %v4656_v37  ;;  %v5000_v9 = vadd.f32 %v3802_v54, %v3424_v14 }
 0x135   : > { %3900 = vmatprep.mubr.bf16.mxu1 %v4692_v34  ;;  %v3426_v63 = vpop.f32.mrf.mxu0  ;;  %v559_v34 = vsel %vm523_vm0, %v4755_v25, %v522_v3 }
 0x136   : > { %v3427_v8 = vadd.f32 %v3426_v63, %v3425_v17  ;;  %v595_v56 = vrot.slane %v559_v34, 6  ;;  %v2022_v11 = vrot.slane %v559_v34, 1 }
 0x137   : > { %v3428_v27 = vpop.f32.mrf.mxu0  ;;  %v3806_v15 = vpop.f32.mrf.mxu1  ;;  %2362 = vmatmul.mubr.bf16.gmra.mxu0 %v5521_v48 }
 0x138   : > { %v5006_v18 = vadd.f32 %v3803_v7, %v3427_v8  ;;  %2369 = vmatprep.mubr.bf16.mxu0 %v5522_v22 }
 0x139   : > { %v3429_v37 = vpop.f32.mrf.mxu0  ;;  %v1490_v49 = vpop.f32.mrf.mxu1 }
 0x13a   : > { %v3430_v50 = vadd.f32 %v3429_v37, %v3428_v27 }
 0x13b   : > { %v3431_v36 = vpop.f32.mrf.mxu0  ;;  %v3807_v28 = vpop.f32.mrf.mxu1 }
 0x13c   : > { %3901 = vmatmul.mubr.bf16.gmra.mxu1 %v4713_v5  ;;  %v5012_v21 = vadd.f32 %v3430_v50, %v1490_v49  ;;  %v631_v5 = vsel %vm523_vm0, %v595_v56, %v4755_v25 }
 0x13d   : > { %3904 = vmatprep.mubr.bf16.mxu1 %v4763_v35  ;;  %v3432_v48 = vpop.f32.mrf.mxu0  ;;  %v1493_v6 = vpop.f32.mrf.mxu1  ;;  %v2025_v55 = vrot.slane %v631_v5, 1 }
 0x13e   : > { %v3433_v45 = vadd.f32 %v3432_v48, %v3431_v36 }
 0x13f   : > { %v3434_v32 = vpop.f32.mrf.mxu0  ;;  %2370 = vmatmul.mubr.bf16.gmra.mxu0 %v5523_v30  ;;  %v2026_v25 = vsel %vm680_vm1, %v4797_v2, %v2025_v55 }
 0x140   : > { %v5016_v22 = vadd.f32 %v3433_v45, %v1493_v6  ;;  %2377 = vmatprep.mubr.bf16.mxu0 %v5524_v62 }
 0x141   : > { %v3435_v29 = vpop.f32.mrf.mxu0 }
 0x142   : > { %v3436_v51 = vadd.f32 %v3435_v29, %v3434_v32 }
 0x143   : > { %v3437_v35 = vpop.f32.mrf.mxu0 }
 0x144   : > { %v3810_v44 = vpop.f32.mrf.mxu1  ;;  %3905 = vmatmul.mubr.bf16.gmra.mxu1 %v4723_v10  ;;  %v5022_v54 = vadd.f32 %v3806_v15, %v3436_v51  ;;  %v2024_v10 = vsel %vm680_vm1, %v2022_v11, %v4797_v2 }
 0x145   : > { %3908 = vmatprep.mubr.bf16.mxu1 %v4740_v12  ;;  %v3438_v14 = vpop.f32.mrf.mxu0  ;;  %v2037_v49 = vpack.c.bf16 %v2026_v25, %v2024_v10 }
 0x146   : > { %v1506_v30 = vpop.f32.mrf.mxu1  ;;  %v3439_v17 = vadd.f32 %v3438_v14, %v3437_v35 }
 0x147   : > { %v3440_v63 = vpop.f32.mrf.mxu0  ;;  %2378 = vmatmul.mubr.bf16.gmra.mxu0 %v5525_v61 }
 0x148   : > { %v3811_v7 = vpop.f32.mrf.mxu1  ;;  %v5026_v8 = vadd.f32 %v3807_v28, %v3439_v17  ;;  %2385 = vmatprep.mubr.bf16.mxu0 %v4799_v47  ;;  %v2034_v47 = vsel %vm680_vm1, %v4780_v41, %v2022_v11 }
 0x149   : > { %v3441_v27 = vpop.f32.mrf.mxu0  ;;  %v2039_v45 = vpack.c.bf16 %v2034_v47, %v4780_v41 }
 0x14a   : > { %v1509_v12 = vpop.f32.mrf.mxu1  ;;  %v3442_v15 = vadd.f32 %v3441_v27, %v3440_v63 }
 0x14b   : > { %v3443_v37 = vpop.f32.mrf.mxu0 }
 0x14c   : > { %v3814_v3 = vpop.f32.mrf.mxu1  ;;  %3909 = vmatmul.mubr.bf16.gmra.mxu1 %v4761_v40  ;;  %v5037_v34 = vadd.f32 %v3442_v15, %v1506_v30 }
 0x14d   : > { %v5035_v50 = vadd.f32 %v3814_v3, %v4932_v58  ;;  %3912 = vmatprep.mubr.bf16.mxu1 %v4770_v57  ;;  %v3444_v2 = vpop.f32.mrf.mxu0 }
 0x14e   : > { %v1522_v36 = vpop.f32.mrf.mxu1  ;;  %v3445_v48 = vadd.f32 %v3444_v2, %v3443_v37 }
 0x14f   : > { %v5043_v28 = vadd.f32 %v4920_v38, %v1522_v36  ;;  %v3446_v40 = vpop.f32.mrf.mxu0  ;;  %2386 = vmatmul.mubr.bf16.gmra.mxu0 %v2037_v49 }
 0x150   : > { %v3815_v56 = vpop.f32.mrf.mxu1  ;;  %v5049_v6 = vadd.f32 %v3445_v48, %v1509_v12 }
 0x151   : > { %v5047_v58 = vadd.f32 %v3815_v56, %v4936_v23  ;;  %v3447_v32 = vpop.f32.mrf.mxu0 }
 0x152   : > { %v1525_v57 = vpop.f32.mrf.mxu1  ;;  %v3448_v29 = vadd.f32 %v3447_v32, %v3446_v40 }
 0x153   : > { %v5052_v62 = vadd.f32 %v4926_v39, %v1525_v57  ;;  %v3449_v38 = vpop.f32.mrf.mxu0 }
 0x154   : > { %v3818_v5 = vpop.f32.mrf.mxu1  ;;  %3913 = vmatmul.mubr.bf16.gmra.mxu1 %v2039_v45  ;;  %v5057_v35 = vadd.f32 %v3810_v44, %v3448_v29 }
 0x155   : > { %v5055_v51 = vadd.f32 %v3818_v5, %v4951_v52  ;;  %v3450_v11 = vpop.f32.mrf.mxu0 }
 0x156   : > { %v1538_v41 = vpop.f32.mrf.mxu1  ;;  %v3451_v55 = vadd.f32 %v3450_v11, %v3449_v38 }
 0x157   : > { %v5060_v23 = vadd.f32 %v4942_v19, %v1538_v41  ;;  %v3838_v14 = vpop.f32.mrf.mxu0 }
 0x158   : > { %v3819_v30 = vpop.f32.mrf.mxu1  ;;  %v5065_v17 = vadd.f32 %v3811_v7, %v3451_v55 }
 0x159   : > { %v5063_v39 = vadd.f32 %v3819_v30, %v4955_v60  ;;  %v1892_v61 = vpop.f32.mrf.mxu0 }
 0x15a   : > { %v1541_v63 = vpop.f32.mrf.mxu1 }
 0x15b   : > { %5526 = vst [vmem:[#allocation12_spill] sm:$0xff] %v5063_v39  ;;  %v5068_v52 = vadd.f32 %v4946_v59, %v1541_v63  ;;  %v3839_v10 = vpop.f32.mrf.mxu0 }
 0x15c   : > { %v3516_v44 = vpop.f32.mrf.mxu1 }
 0x15d   : > { %v1895_v12 = vpop.f32.mrf.mxu0 }
 0x15e   : > { %v3517_v25 = vpop.f32.mrf.mxu1 }
 0x15f   : > { %v3518_v27 = vadd.f32 %v3517_v25, %v3516_v44  ;;  %v3842_v15 = vpop.f32.mrf.mxu0 }
 0x160   : > { %v3519_v19 = vpop.f32.mrf.mxu1 }
 0x161   : > { %v1732_v3 = vadd.f32 %v3518_v27, %v4962_v0  ;;  %v1908_v49 = vpop.f32.mrf.mxu0 }
 0x162   : > { %v3520_v37 = vpop.f32.mrf.mxu1 }
 0x163   : > { %v5071_v60 = vadd.f32 %v1892_v61, %v1732_v3  ;;  %v3521_v7 = vadd.f32 %v3520_v37, %v3519_v19  ;;  %v3843_v36 = vpop.f32.mrf.mxu0 }
 0x164   : > { %v3522_v47 = vpop.f32.mrf.mxu1 }
 0x165   : > { %v1735_v2 = vadd.f32 %v3521_v7, %v4969_v4  ;;  %v1911_v48 = vpop.f32.mrf.mxu0 }
 0x166   : > { %v3523_v59 = vpop.f32.mrf.mxu1 }
 0x167   : > { %v5074_v56 = vadd.f32 %v1895_v12, %v1735_v2  ;;  %v3524_v40 = vadd.f32 %v3523_v59, %v3522_v47  ;;  %v3846_v57 = vpop.f32.mrf.mxu0 }
 0x168   : > { %v3525_v45 = vpop.f32.mrf.mxu1 }
 0x169   : > { %v1740_v32 = vadd.f32 %v3524_v40, %v4958_v33  ;;  %v1924_v0 = vpop.f32.mrf.mxu0 }
 0x16a   : > { %v3526_v29 = vpop.f32.mrf.mxu1 }
 0x16b   : > { %v3527_v5 = vadd.f32 %v3526_v29, %v3525_v45  ;;  %v5077_v38 = vadd.f32 %v3838_v14, %v1740_v32  ;;  %v3847_v11 = vpop.f32.mrf.mxu0 }
 0x16c   : > { %v3528_v41 = vpop.f32.mrf.mxu1 }
 0x16d   : > { %v1743_v55 = vadd.f32 %v3527_v5, %v4965_v31  ;;  %v1927_v4 = vpop.f32.mrf.mxu0 }
 0x16e   : > { %v3529_v30 = vpop.f32.mrf.mxu1 }
 0x16f   : > { %v3530_v63 = vadd.f32 %v3529_v30, %v3528_v41  ;;  %v5080_v61 = vadd.f32 %v3839_v10, %v1743_v55  ;;  %v5082_v25 = vpop.f32.mrf.mxu0 }
 0x170   : > { %v3531_v44 = vpop.f32.mrf.mxu1 }
 0x171   : > { %v1748_v12 = vadd.f32 %v3530_v63, %v4975_v53  ;;  %v1940_v27 = vpop.f32.mrf.mxu0 }
 0x172   : > { %v3532_v33 = vpop.f32.mrf.mxu1 }
 0x173   : > { %v3533_v19 = vadd.f32 %v3532_v33, %v3531_v44  ;;  %v5085_v3 = vadd.f32 %v1908_v49, %v1748_v12  ;;  %v5087_v37 = vpop.f32.mrf.mxu0 }
 0x174   : > { %v3534_v14 = vpop.f32.mrf.mxu1 }
 0x175   : > { %v1751_v31 = vadd.f32 %v3533_v19, %v4981_v26  ;;  %v1943_v47 = vpop.f32.mrf.mxu0 }
 0x176   : > { %v3535_v7 = vpop.f32.mrf.mxu1 }
 0x177   : > { %v3536_v2 = vadd.f32 %v3535_v7, %v3534_v14  ;;  %v5090_v10 = vadd.f32 %v1911_v48, %v1751_v31  ;;  %v5092_v40 = vpop.f32.mrf.mxu0 }
 0x178   : > { %v3537_v59 = vpop.f32.mrf.mxu1 }
 0x179   : > { %v1756_v53 = vadd.f32 %v3536_v2, %v4972_v1  ;;  %v5095_v32 = vpop.f32.mrf.mxu0 }
 0x17a   : > { %v3538_v45 = vpop.f32.mrf.mxu1 }
 0x17b   : > { %v3539_v49 = vadd.f32 %v3538_v45, %v3537_v59  ;;  %v5097_v29 = vadd.f32 %v3842_v15, %v1756_v53  ;;  %v5099_v41 = vpop.f32.mrf.mxu0 }
 0x17c   : > { %v3540_v5 = vpop.f32.mrf.mxu1 }
 0x17d   : > { %v1759_v26 = vadd.f32 %v3539_v49, %v4978_v16  ;;  %v5102_v30 = vpop.f32.mrf.mxu0 }
 0x17e   : > { %v3541_v55 = vpop.f32.mrf.mxu1 }
 0x17f   : > { %v3542_v48 = vadd.f32 %v3541_v55, %v3540_v5  ;;  %v5104_v63 = vadd.f32 %v3843_v36, %v1759_v26  ;;  %v5106_v12 = vpop.f32.mrf.mxu0 }
 0x180   : > { %v3543_v44 = vpop.f32.mrf.mxu1 }
 0x181   : > { %v1764_v1 = vadd.f32 %v3542_v48, %v4987_v43  ;;  %v5109_v19 = vpop.f32.mrf.mxu0 }
 0x182   : > { %v3544_v33 = vpop.f32.mrf.mxu1 }
 0x183   : > { %v3545_v15 = vadd.f32 %v3544_v33, %v3543_v44  ;;  %v5111_v14 = vadd.f32 %v1924_v0, %v1764_v1  ;;  %v5113_v7 = vpop.f32.mrf.mxu0 }
 0x184   : > { %v3546_v31 = vpop.f32.mrf.mxu1 }
 0x185   : > { %v1767_v16 = vadd.f32 %v3545_v15, %v4993_v20  ;;  %v5116_v59 = vpop.f32.mrf.mxu0 }
 0x186   : > { %v3547_v2 = vpop.f32.mrf.mxu1 }
 0x187   : > { %v3548_v36 = vadd.f32 %v3547_v2, %v3546_v31  ;;  %v5118_v53 = vadd.f32 %v1927_v4, %v1767_v16  ;;  %v5120_v49 = vpop.f32.mrf.mxu0 }
 0x188   : > { %v3549_v45 = vpop.f32.mrf.mxu1  ;;  %5527 = vst [vmem:[#allocation11_spill] sm:$0xff] %v5120_v49 }
 0x189   : > { %v1772_v43 = vadd.f32 %v3548_v36, %v4984_v24  ;;  %v5123_v26 = vpop.f32.mrf.mxu0 }
 0x18a   : > { %v3550_v5 = vpop.f32.mrf.mxu1 }
 0x18b   : > { %v3551_v0 = vadd.f32 %v3550_v5, %v3549_v45  ;;  %v5125_v55 = vadd.f32 %v3846_v57, %v1772_v43  ;;  %v5127_v44 = vpop.f32.mrf.mxu0 }
 0x18c   : > { %v3552_v48 = vpop.f32.mrf.mxu1  ;;  %5528 = vst [vmem:[#allocation14_spill] sm:$0xff] %v5127_v44 }
 0x18d   : > { %v1775_v20 = vadd.f32 %v3551_v0, %v4990_v42  ;;  %v5130_v33 = vpop.f32.mrf.mxu0 }
 0x18e   : > { %v3553_v1 = vpop.f32.mrf.mxu1 }
 0x18f   : > { %v3554_v4 = vadd.f32 %v3553_v1, %v3552_v48  ;;  %v5132_v15 = vadd.f32 %v3847_v11, %v1775_v20  ;;  %v5134_v16 = vpop.f32.mrf.mxu0 }
 0x190   : > { %v3555_v31 = vpop.f32.mrf.mxu1  ;;  %5529 = vst [vmem:[#allocation13_spill] sm:$0xff] %v5134_v16 }
 0x191   : > { %v1780_v24 = vadd.f32 %v3554_v4, %v4997_v13  ;;  %v5137_v36 = vpop.f32.mrf.mxu0 }
 0x192   : > { %v3556_v2 = vpop.f32.mrf.mxu1 }
 0x193   : > { %v3557_v57 = vadd.f32 %v3556_v2, %v3555_v31  ;;  %v5139_v45 = vadd.f32 %v1940_v27, %v1780_v24  ;;  %v5141_v5 = vpop.f32.mrf.mxu0 }
 0x194   : > { %v3558_v43 = vpop.f32.mrf.mxu1  ;;  %5530 = vst [vmem:[#allocation16_spill] sm:$0xff] %v5141_v5 }
 0x195   : > { %v1783_v42 = vadd.f32 %v3557_v57, %v5003_v46  ;;  %v5144_v48 = vpop.f32.mrf.mxu0 }
 0x196   : > { %v3559_v0 = vpop.f32.mrf.mxu1 }
 0x197   : > { %v3560_v11 = vadd.f32 %v3559_v0, %v3558_v43  ;;  %v5146_v20 = vadd.f32 %v1943_v47, %v1783_v42  ;;  %v3652_v16 = vpop.f32.mrf.mxu0 }
 0x198   : > { %v3561_v1 = vpop.f32.mrf.mxu1 }
 0x199   : > { %v1788_v13 = vadd.f32 %v3560_v11, %v5000_v9  ;;  %v3653_v39 = vpop.f32.mrf.mxu0 }
 0x19a   : > { %v3562_v4 = vpop.f32.mrf.mxu1  ;;  %v5149_v27 = vadd.f32 %v3653_v39, %v3652_v16 }
 0x19b   : > { %v3563_v31 = vadd.f32 %v3562_v4, %v3561_v1  ;;  %v5152_v24 = vadd.f32 %v5082_v25, %v1788_v13  ;;  %v3655_v46 = vpop.f32.mrf.mxu0 }
 0x19c   : > { %v3564_v2 = vpop.f32.mrf.mxu1 }
 0x19d   : > { %v1791_v57 = vadd.f32 %v3563_v31, %v5006_v18  ;;  %v3656_v43 = vpop.f32.mrf.mxu0 }
 0x19e   : > { %v3565_v5 = vpop.f32.mrf.mxu1  ;;  %v5155_v42 = vadd.f32 %v3656_v43, %v3655_v46 }
 0x19f   : > { %v3566_v47 = vadd.f32 %v3565_v5, %v3564_v2  ;;  %v5158_v0 = vadd.f32 %v5087_v37, %v1791_v57  ;;  %v5160_v11 = vpop.f32.mrf.mxu0 }
 0x1a0   : > { %v3567_v9 = vpop.f32.mrf.mxu1 }
 0x1a1   : > { %v1796_v39 = vadd.f32 %v3566_v47, %v5012_v21  ;;  %v5163_v25 = vpop.f32.mrf.mxu0 }
 0x1a2   : > { %v3568_v16 = vpop.f32.mrf.mxu1 }
 0x1a3   : > { %v3569_v1 = vadd.f32 %v3568_v16, %v3567_v9  ;;  %v5166_v13 = vadd.f32 %v5095_v32, %v1796_v39  ;;  %v5168_v4 = vpop.f32.mrf.mxu0 }
 0x1a4   : > { %v3570_v18 = vpop.f32.mrf.mxu1 }
 0x1a5   : > { %v1799_v5 = vadd.f32 %v3569_v1, %v5016_v22  ;;  %v5171_v37 = vpop.f32.mrf.mxu0 }
 0x1a6   : > { %v3571_v31 = vpop.f32.mrf.mxu1 }
 0x1a7   : > { %v3572_v2 = vadd.f32 %v3571_v31, %v3570_v18  ;;  %v5174_v46 = vadd.f32 %v5102_v30, %v1799_v5  ;;  %v5176_v57 = vpop.f32.mrf.mxu0 }
 0x1a8   : > { %v3573_v21 = vpop.f32.mrf.mxu1 }
 0x1a9   : > { %5531 = vst [vmem:[#allocation15_spill] sm:$0xff] %v5174_v46  ;;  %v1804_v43 = vadd.f32 %v3572_v2, %v5022_v54  ;;  %v5179_v32 = vpop.f32.mrf.mxu0 }
 0x1aa   : > { %v3574_v47 = vpop.f32.mrf.mxu1 }
 0x1ab   : > { %v3575_v9 = vadd.f32 %v3574_v47, %v3573_v21  ;;  %v5182_v39 = vadd.f32 %v5092_v40, %v1804_v43  ;;  %v5184_v16 = vpop.f32.mrf.mxu0 }
 0x1ac   : > { %v3576_v22 = vpop.f32.mrf.mxu1 }
 0x1ad   : > { %5532 = vst [vmem:[#allocation3_spill] sm:$0xff] %v5182_v39  ;;  %v1807_v1 = vadd.f32 %v3575_v9, %v5026_v8  ;;  %v5187_v30 = vpop.f32.mrf.mxu0 }
 0x1ae   : > { %v3577_v18 = vpop.f32.mrf.mxu1 }
 0x1af   : > { %v3578_v5 = vadd.f32 %v3577_v18, %v3576_v22  ;;  %v5190_v31 = vadd.f32 %v5099_v41, %v1807_v1  ;;  %v5192_v2 = vpop.f32.mrf.mxu0 }
 0x1b0   : > { %v3579_v54 = vpop.f32.mrf.mxu1 }
 0x1b1   : > { %5533 = vst [vmem:[#allocation4_spill] sm:$0xff] %v5190_v31  ;;  %v1812_v21 = vadd.f32 %v3578_v5, %v5037_v34  ;;  %v5195_v40 = vpop.f32.mrf.mxu0 }
 0x1b2   : > { %v3580_v47 = vpop.f32.mrf.mxu1 }
 0x1b3   : > { %v3581_v43 = vadd.f32 %v3580_v47, %v3579_v54  ;;  %v5198_v44 = vadd.f32 %v5109_v19, %v1812_v21  ;;  %v5200_v9 = vpop.f32.mrf.mxu0 }
 0x1b4   : > { %v3582_v8 = vpop.f32.mrf.mxu1 }
 0x1b5   : > { %5534 = vst [vmem:[#allocation5_spill] sm:$0xff] %v5198_v44  ;;  %v1815_v22 = vadd.f32 %v3581_v43, %v5049_v6  ;;  %v5203_v41 = vpop.f32.mrf.mxu0 }
 0x1b6   : > { %v3583_v18 = vpop.f32.mrf.mxu1 }
 0x1b7   : > { %v3584_v1 = vadd.f32 %v3583_v18, %v3582_v8  ;;  %v5206_v49 = vadd.f32 %v5116_v59, %v1815_v22  ;;  %v5208_v5 = vpop.f32.mrf.mxu0 }
 0x1b8   : > { %v3585_v34 = vpop.f32.mrf.mxu1 }
 0x1b9   : > { %5535 = vst [vmem:[#allocation6_spill] sm:$0xff] %v5206_v49  ;;  %v1820_v54 = vadd.f32 %v3584_v1, %v5057_v35  ;;  %v5211_v19 = vpop.f32.mrf.mxu0 }
 0x1ba   : > { %v3586_v47 = vpop.f32.mrf.mxu1 }
 0x1bb   : > { %v3587_v21 = vadd.f32 %v3586_v47, %v3585_v34  ;;  %v5214_v44 = vadd.f32 %v5106_v12, %v1820_v54  ;;  %v5216_v43 = vpop.f32.mrf.mxu0 }
 0x1bc   : > { %v3588_v6 = vpop.f32.mrf.mxu1 }
 0x1bd   : > { %5536 = vst [vmem:[#allocation7_spill] sm:$0xff] %v5214_v44  ;;  %v1823_v8 = vadd.f32 %v3587_v21, %v5065_v17  ;;  %v5219_v59 = vpop.f32.mrf.mxu0 }
 0x1be   : > { %v3589_v18 = vpop.f32.mrf.mxu1 }
 0x1bf   : > { %v3590_v22 = vadd.f32 %v3589_v18, %v3588_v6  ;;  %v5222_v49 = vadd.f32 %v5113_v7, %v1823_v8  ;;  %v5224_v1 = vpop.f32.mrf.mxu0 }
 0x1c0   : > { %v3591_v35 = vpop.f32.mrf.mxu1 }
 0x1c1   : > { %5537 = vst [vmem:[#allocation8_spill] sm:$0xff] %v5222_v49  ;;  %v1828_v34 = vadd.f32 %v3590_v22, %v5043_v28  ;;  %v5227_v12 = vpop.f32.mrf.mxu0 }
 0x1c2   : > { %v3592_v47 = vpop.f32.mrf.mxu1 }
 0x1c3   : > { %v3593_v54 = vadd.f32 %v3592_v47, %v3591_v35  ;;  %v5230_v44 = vadd.f32 %v5123_v26, %v1828_v34  ;;  %v5232_v21 = vpop.f32.mrf.mxu0 }
 0x1c4   : > { %v3594_v17 = vpop.f32.mrf.mxu1 }
 0x1c5   : > { %5538 = vst [vmem:[#allocation9_spill] sm:$0xff] %v5230_v44  ;;  %v1831_v6 = vadd.f32 %v3593_v54, %v5052_v62  ;;  %v5235_v7 = vpop.f32.mrf.mxu0 }
 0x1c6   : > { %v3595_v18 = vpop.f32.mrf.mxu1 }
 0x1c7   : > { %v3596_v8 = vadd.f32 %v3595_v18, %v3594_v17  ;;  %v5238_v49 = vadd.f32 %v5130_v33, %v1831_v6  ;;  %v5240_v22 = vpop.f32.mrf.mxu0 }
 0x1c8   : > { %v3597_v28 = vpop.f32.mrf.mxu1 }
 0x1c9   : > { %5539 = vst [vmem:[#allocation10_spill] sm:$0xff] %v5238_v49  ;;  %v5243_v35 = vadd.f32 %v3596_v8, %v5035_v50  ;;  %v5245_v34 = vpop.f32.mrf.mxu0 }
 0x1ca   : > { %v3598_v26 = vpop.f32.mrf.mxu1 }
 0x1cb   : > { %5540 = vst [vmem:[#allocation17_spill] sm:$0xff] %v5243_v35  ;;  %v3599_v47 = vadd.f32 %v3598_v26, %v3597_v28  ;;  %v5247_v46 = vpop.f32.mrf.mxu0 }
 0x1cc   : > { %v3600_v44 = vpop.f32.mrf.mxu1 }
 0x1cd   : > { %v5250_v62 = vadd.f32 %v3599_v47, %v5047_v58  ;;  %v5252_v17 = vpop.f32.mrf.mxu0 }
 0x1ce   : > { %v3601_v54 = vpop.f32.mrf.mxu1 }
 0x1cf   : > { %5541 = vst [vmem:[#allocation18_spill] sm:$0xff] %v5250_v62  ;;  %v3602_v33 = vadd.f32 %v3601_v54, %v3600_v44  ;;  %v5254_v18 = vpop.f32.mrf.mxu0 }
 0x1d0   : > { %v3603_v6 = vpop.f32.mrf.mxu1 }
 0x1d1   : > { %v1844_v50 = vadd.f32 %v3602_v33, %v5060_v23  ;;  %v5257_v49 = vpop.f32.mrf.mxu0 }
 0x1d2   : > { %v3604_v8 = vpop.f32.mrf.mxu1 }
 0x1d3   : > { %v3605_v35 = vadd.f32 %v3604_v8, %v3603_v6  ;;  %v5260_v28 = vadd.f32 %v5137_v36, %v1844_v50  ;;  %v5262_v31 = vpop.f32.mrf.mxu0 }
 0x1d4   : > { %v3606_v26 = vpop.f32.mrf.mxu1 }
 0x1d5   : > { %5542 = vst [vmem:[#allocation19_spill] sm:$0xff] %v5260_v28  ;;  %v1847_v58 = vadd.f32 %v3605_v35, %v5068_v52  ;;  %v5265_v62 = vpop.f32.mrf.mxu0  ;;  %v3660_v35 = vadd.f32 %v5163_v25, %v5160_v11 }
 0x1d6   : > { %v3607_v47 = vpop.f32.mrf.mxu1 }
 0x1d7   : > { %v3608_v44 = vadd.f32 %v3607_v47, %v3606_v26  ;;  %v5268_v54 = vadd.f32 %v5144_v48, %v1847_v58  ;;  %v5272_v33 = vpop.f32.mrf.mxu0  ;;  %v3663_v58 = vadd.f32 %v5171_v37, %v5168_v4  ;;  %v3672_v4 = vadd.f32 %v5195_v40, %v5192_v2 }
 0x1d8   : > { %v5270_v23 = vpop.f32.mrf.mxu1 }
 0x1d9   : > { %5543 = vst [vmem:[#allocation20_spill] sm:$0xff] %v5268_v54  ;;  %5544 = vst [vmem:[#allocation21_spill] sm:$0xff] %v5270_v23  ;;  %v5275_v6 = vadd.f32 %v3608_v44, %v5055_v51  ;;  %v5279_v50 = vpop.f32.mrf.mxu0 }
 0x1da   : > { %v5277_v36 = vpop.f32.mrf.mxu1 }
 0x1db   : > { %5545 = vst [vmem:[#allocation22_spill] sm:$0xff] %v5275_v6  ;;  %5546 = vst [vmem:[#allocation23_spill] sm:$0xff] %v5277_v36  ;;  %v5281_v52 = vpop.f32.mrf.mxu0 }
 0x1dc   : > { %v3886_v8 = vpop.f32.mrf.mxu1 }
 0x1dd   : > { %v5285_v26 = vpop.f32.mrf.mxu0  ;;  %v2437_v47 = vadd.f32 %v3886_v8, %v3660_v35 }
 0x1de   : > { %v2428_v48 = vpop.f32.mrf.mxu1 }
 0x1df   : > { %v2429_v51 = vadd.f32 %v5149_v27, %v2428_v48  ;;  %v5290_v54 = vpop.f32.mrf.mxu0  ;;  %v2557_v11 = vadd.f32 %v2437_v47, %v5077_v38 }
 0x1e0   : > { %v3887_v44 = vpop.f32.mrf.mxu1 }
 0x1e1   : > { %v2555_v28 = vadd.f32 %v2429_v51, %v5071_v60  ;;  %v2440_v6 = vadd.f32 %v3887_v44, %v3663_v58  ;;  %v5293_v23 = vpop.f32.mrf.mxu0  ;;  %v3669_v58 = vadd.f32 %v5187_v30, %v5184_v16 }
 0x1e2   : > { %v2431_v36 = vpop.f32.mrf.mxu1 }
 0x1e3   : > { %v2558_v25 = vadd.f32 %v2440_v6, %v5080_v61  ;;  %v2432_v39 = vadd.f32 %v5155_v42, %v2431_v36  ;;  %v5307_v27 = vpop.f32.mrf.mxu0  ;;  %v3666_v61 = vadd.f32 %v5179_v32, %v5176_v57  ;;  %v3675_v42 = vadd.f32 %v5203_v41, %v5200_v9 }
 0x1e4   : > { %v3890_v60 = vpop.f32.mrf.mxu1  ;;  %v2784_v36 = vmul.f32 %v2555_v28, %v2555_v28  ;;  %v2786_v57 = vmul.f32 %v2557_v11, %v2557_v11 }
 0x1e5   : > { %v3262_v37 = vpack.c.bf16 %v2558_v25, %v2557_v11  ;;  %v2556_v38 = vadd.f32 %v2432_v39, %v5074_v56  ;;  %v2453_v2 = vadd.f32 %v3890_v60, %v3672_v4  ;;  %v5314_v6 = vpop.f32.mrf.mxu0  ;;  %v2787_v51 = vmul.f32 %v2558_v25, %v2558_v25 }
 0x1e6   : > { %v2444_v40 = vpop.f32.mrf.mxu1 }
 0x1e7   : > { %3349 = vst [vmem:[%s5305_s27 + $0x8] sm:$0xff] %v3262_v37   ;;  %v3257_v8 = vpack.c.bf16 %v2556_v38, %v2555_v28  ;;  %v2747_v35 = vadd.f32 %v2556_v38, %v2555_v28  ;;  %v2785_v48 = vmul.f32 %v2556_v38, %v2556_v38  ;;  %v2445_v56 = vadd.f32 %v3666_v61, %v2444_v40  ;;  %v5319_v47 = vpop.f32.mrf.mxu0 }
 0x1e8   : > { %v3891_v39 = vpop.f32.mrf.mxu1  ;;  %v2561_v44 = vadd.f32 %v2453_v2, %v5097_v29  ;;  %v3678_v61 = vadd.f32 %v5211_v19, %v5208_v5 }
 0x1e9   : > { %3258 = vst [vmem:[%s5305_s27] sm:$0xff] %v3257_v8   ;;  %v2748_v32 = vadd.f32 %v2747_v35, %v2557_v11  ;;  %v2816_v9 = vadd.f32 %v2785_v48, %v2784_v36  ;;  %v2456_v41 = vadd.f32 %v3891_v39, %v3675_v42  ;;  %v2559_v4 = vadd.f32 %v2445_v56, %v5085_v3  ;;  %v5324_v28 = vpop.f32.mrf.mxu0 }
 0x1ea   : > { %v2447_v60 = vpop.f32.mrf.mxu1  ;;  %v3684_v11 = vadd.f32 %v5227_v12, %v5224_v1 }
 0x1eb   : > { %v2817_v37 = vadd.f32 %v2816_v9, %v2786_v57  ;;  %v2749_v38 = vadd.f32 %v2748_v32, %v2558_v25  ;;  %v2562_v16 = vadd.f32 %v2456_v41, %v5104_v63  ;;  %v2448_v30 = vadd.f32 %v3669_v58, %v2447_v60  ;;  %v5331_v40 = vpop.f32.mrf.mxu0 }
 0x1ec   : > { %v3894_v42 = vpop.f32.mrf.mxu1  ;;  %v2788_v3 = vmul.f32 %v2559_v4, %v2559_v4  ;;  %v3687_v63 = vadd.f32 %v5235_v7, %v5232_v21  ;;  %v2790_v32 = vmul.f32 %v2561_v44, %v2561_v44 }
 0x1ed   : > { %v2750_v29 = vadd.f32 %v2749_v38, %v2559_v4  ;;  %v2818_v2 = vadd.f32 %v2817_v37, %v2787_v51  ;;  %v3272_v36 = vpack.c.bf16 %v2562_v16, %v2561_v44  ;;  %v2560_v8 = vadd.f32 %v2448_v30, %v5090_v10  ;;  %v5334_v35 = vpop.f32.mrf.mxu0 }
 0x1ee   : > { %v2460_v25 = vpop.f32.mrf.mxu1  ;;  %v2469_v19 = vadd.f32 %v3894_v42, %v3684_v11  ;;  %v3681_v10 = vadd.f32 %v5219_v59, %v5216_v43  ;;  %v2791_v38 = vmul.f32 %v2562_v16, %v2562_v16 }
 0x1ef   : > { %v2819_v5 = vadd.f32 %v2818_v2, %v2788_v3  ;;  %3351 = vst [vmem:[%s5305_s27 + $0x18] sm:$0xff] %v3272_v36   ;;  %v2461_v1 = vadd.f32 %v3678_v61, %v2460_v25  ;;  %v3267_v12 = vpack.c.bf16 %v2560_v8, %v2559_v4  ;;  %v2751_v48 = vadd.f32 %v2750_v29, %v2560_v8  ;;  %v5339_v39 = vpop.f32.mrf.mxu0 }
 0x1f0   : > { %v2789_v58 = vmul.f32 %v2560_v8, %v2560_v8  ;;  %v3895_v56 = vpop.f32.mrf.mxu1  ;;  %v2565_v4 = vadd.f32 %v2469_v19, %v5125_v55  ;;  %v3699_v55 = vadd.f32 %v5265_v62, %v5262_v31 }
 0x1f1   : > { %v2472_v57 = vadd.f32 %v3895_v56, %v3687_v63  ;;  %3350 = vst [vmem:[%s5305_s27 + $0x10] sm:$0xff] %v3267_v12   ;;  %v2752_v9 = vadd.f32 %v2751_v48, %v2561_v44  ;;  %v2563_v21 = vadd.f32 %v2461_v1, %v5111_v14  ;;  %v5345_v51 = vpop.f32.mrf.mxu0  ;;  %v3690_v44 = vadd.f32 %v5245_v34, %v5240_v22 }
 0x1f2   : > { %v2820_v41 = vadd.f32 %v2819_v5, %v2789_v58  ;;  %v2463_v7 = vpop.f32.mrf.mxu1  ;;  %v3696_v14 = vadd.f32 %v5257_v49, %v5254_v18  ;;  %v2794_v62 = vmul.f32 %v2565_v4, %v2565_v4 }
 0x1f3   : > { %v2566_v60 = vadd.f32 %v2472_v57, %v5132_v15  ;;  %v2464_v37 = vadd.f32 %v3681_v10, %v2463_v7  ;;  %v2753_v61 = vadd.f32 %v2752_v9, %v2562_v16  ;;  %v5349_v59 = vpop.f32.mrf.mxu0  ;;  %v2792_v29 = vmul.f32 %v2563_v21, %v2563_v21 }
 0x1f4   : > { %v2821_v30 = vadd.f32 %v2820_v41, %v2790_v32  ;;  %v3898_v43 = vpop.f32.mrf.mxu1  ;;  %v3702_v41 = vadd.f32 %v5279_v50, %v5272_v33 }
 0x1f5   : > { %v3282_v11 = vpack.c.bf16 %v2566_v60, %v2565_v4  ;;  %v2564_v42 = vadd.f32 %v2464_v37, %v5118_v53  ;;  %v2754_v15 = vadd.f32 %v2753_v61, %v2563_v21  ;;  %v5358_v2 = vpop.f32.mrf.mxu0  ;;  %v2485_v22 = vadd.f32 %v3898_v43, %v3696_v14 }
 0x1f6   : > { %v2822_v3 = vadd.f32 %v2821_v30, %v2791_v38  ;;  %v2476_v16 = vpop.f32.mrf.mxu1  ;;  %v3693_v53 = vadd.f32 %v5252_v17, %v5247_v46  ;;  %v2795_v57 = vmul.f32 %v2566_v60, %v2566_v60 }
 0x1f7   : > { %3353 = vst [vmem:[%s5305_s27 + $0x28] sm:$0xff] %v3282_v11   ;;  %v3277_v36 = vpack.c.bf16 %v2564_v42, %v2563_v21  ;;  %v2793_v8 = vmul.f32 %v2564_v42, %v2564_v42  ;;  %v2477_v34 = vadd.f32 %v3690_v44, %v2476_v16  ;;  %v2755_v49 = vadd.f32 %v2754_v15, %v2564_v42  ;;  %v5361_v63 = vpop.f32.mrf.mxu0  ;;  %v5548_v16 = vld [vmem:[#allocation4_spill] sm:$0xff] }
 0x1f8   : > { %v2823_v25 = vadd.f32 %v2822_v3, %v2792_v29  ;;  %v3899_v18 = vpop.f32.mrf.mxu1  ;;  %v2569_v58 = vadd.f32 %v2485_v22, %v5152_v24  ;;  %v3711_v24 = vadd.f32 %v5314_v6, %v5307_v27  ;;  %v5547_v29 = vld [vmem:[#allocation3_spill] sm:$0xff] }
 0x1f9   : > { %3352 = vst [vmem:[%s5305_s27 + $0x20] sm:$0xff] %v3277_v36   ;;  %v2488_v31 = vadd.f32 %v3899_v18, %v3699_v55  ;;  %v2756_v5 = vadd.f32 %v2755_v49, %v2565_v4  ;;  %v2567_v1 = vadd.f32 %v2477_v34, %v5139_v45  ;;  %v5367_v48 = vpop.f32.mrf.mxu0  ;;  %v3708_v45 = vadd.f32 %v5293_v23, %v5290_v54 }
 0x1fa   : > { %v2824_v19 = vadd.f32 %v2823_v25, %v2793_v8  ;;  %v2479_v12 = vpop.f32.mrf.mxu1  ;;  %v2798_v6 = vmul.f32 %v2569_v58, %v2569_v58  ;;  %v3720_v18 = vadd.f32 %v5345_v51, %v5339_v39 }
 0x1fb   : > { %v2570_v56 = vadd.f32 %v2488_v31, %v5158_v0  ;;  %v2480_v10 = vadd.f32 %v3693_v53, %v2479_v12  ;;  %v2757_v9 = vadd.f32 %v2756_v5, %v2566_v60  ;;  %v5371_v17 = vpop.f32.mrf.mxu0  ;;  %v2796_v4 = vmul.f32 %v2567_v1, %v2567_v1  ;;  %v5549_v53 = vld [vmem:[#allocation15_spill] sm:$0xff] }
 0x1fc   : > { %v2825_v32 = vadd.f32 %v2824_v19, %v2794_v62  ;;  %v3902_v46 = vpop.f32.mrf.mxu1  ;;  %v3723_v62 = vadd.f32 %v5358_v2, %v5349_v59 }
 0x1fd   : > { %v3292_v21 = vpack.c.bf16 %v2570_v56, %v2569_v58  ;;  %v2568_v7 = vadd.f32 %v2480_v10, %v5146_v20  ;;  %v2758_v0 = vadd.f32 %v2757_v9, %v2567_v1  ;;  %v5380_v38 = vpop.f32.mrf.mxu0  ;;  %v2501_v33 = vadd.f32 %v3902_v46, %v3708_v45  ;;  %v5550_v45 = vld [vmem:[#allocation5_spill] sm:$0xff] }
 0x1fe   : > { %v2826_v37 = vadd.f32 %v2825_v32, %v2795_v57  ;;  %v2492_v60 = vpop.f32.mrf.mxu1  ;;  %v3705_v20 = vadd.f32 %v5285_v26, %v5281_v52  ;;  %v2799_v22 = vmul.f32 %v2570_v56, %v2570_v56  ;;  %v3714_v26 = vadd.f32 %v5324_v28, %v5319_v47 }
 0x1ff   : > { %3355 = vst [vmem:[%s5305_s27 + $0x38] sm:$0xff] %v3292_v21   ;;  %v3287_v30 = vpack.c.bf16 %v2568_v7, %v2567_v1  ;;  %v2797_v61 = vmul.f32 %v2568_v7, %v2568_v7  ;;  %v2493_v50 = vadd.f32 %v3702_v41, %v2492_v60  ;;  %v2759_v54 = vadd.f32 %v2758_v0, %v2568_v7  ;;  %v3730_v44 = vpop.f32.mrf.mxu0  ;;  %v5551_v0 = vld [vmem:[#allocation7_spill] sm:$0xff] }
 0x200   : > { %v2827_v43 = vadd.f32 %v2826_v37, %v2796_v4  ;;  %v3903_v23 = vpop.f32.mrf.mxu1  ;;  %v2573_v3 = vadd.f32 %v2501_v33, %v5547_v29  ;;  %v3717_v9 = vadd.f32 %v5334_v35, %v5331_v40  ;;  %v5552_v37 = vld [vmem:[#allocation8_spill] sm:$0xff]  ;;  %v3726_v35 = vadd.f32 %v5367_v48, %v5361_v63  ;;  %v5555_v63 = vld [vmem:[#allocation11_spill] sm:$0xff] }
 0x201   : > { %3354 = vst [vmem:[%s5305_s27 + $0x30] sm:$0xff] %v3287_v30   ;;  %v2504_v27 = vadd.f32 %v3903_v23, %v3711_v24  ;;  %v2760_v14 = vadd.f32 %v2759_v54, %v2569_v58  ;;  %v2571_v42 = vadd.f32 %v2493_v50, %v5166_v13  ;;  %v3731_v15 = vpop.f32.mrf.mxu0 }
 0x202   : > { %v2828_v11 = vadd.f32 %v2827_v43, %v2797_v61  ;;  %v2495_v55 = vpop.f32.mrf.mxu1  ;;  %v2802_v2 = vmul.f32 %v2573_v3, %v2573_v3  ;;  %v3732_v54 = vadd.f32 %v3731_v15, %v3730_v44 }
 0x203   : > { %v2574_v36 = vadd.f32 %v2504_v27, %v5548_v16  ;;  %v2496_v8 = vadd.f32 %v3705_v20, %v2495_v55  ;;  %v2761_v25 = vadd.f32 %v2760_v14, %v2570_v56  ;;  %v3733_v52 = vpop.f32.mrf.mxu0  ;;  %v2800_v19 = vmul.f32 %v2571_v42, %v2571_v42  ;;  %v5553_v20 = vld [vmem:[#allocation6_spill] sm:$0xff] }
 0x204   : > { %v2829_v34 = vadd.f32 %v2828_v11, %v2798_v6  ;;  %v3906_v49 = vpop.f32.mrf.mxu1 }
 0x205   : > { %v3302_v13 = vpack.c.bf16 %v2574_v36, %v2573_v3  ;;  %v2572_v31 = vadd.f32 %v2496_v8, %v5549_v53  ;;  %v2762_v5 = vadd.f32 %v2761_v25, %v2571_v42  ;;  %v3734_v58 = vpop.f32.mrf.mxu0  ;;  %v2517_v57 = vadd.f32 %v3906_v49, %v3720_v18  ;;  %v5554_v25 = vld [vmem:[#allocation17_spill] sm:$0xff]  ;;  %v5559_v53 = vld [vmem:[#allocation14_spill] sm:$0xff] }
 0x206   : > { %v2830_v1 = vadd.f32 %v2829_v34, %v2799_v22  ;;  %v2508_v12 = vpop.f32.mrf.mxu1  ;;  %v2803_v61 = vmul.f32 %v2574_v36, %v2574_v36  ;;  %v1997_v48 = vadd.f32 %v5555_v63, %v5554_v25  ;;  %v5556_v49 = vld [vmem:[#allocation21_spill] sm:$0xff] }
 0x207   : > { %3357 = vst [vmem:[%s5305_s27 + $0x48] sm:$0xff] %v3302_v13   ;;  %v3297_v56 = vpack.c.bf16 %v2572_v31, %v2571_v42  ;;  %v2801_v10 = vmul.f32 %v2572_v31, %v2572_v31  ;;  %v2509_v47 = vadd.f32 %v3714_v26, %v2508_v12  ;;  %v2763_v32 = vadd.f32 %v2762_v5, %v2572_v31  ;;  %v3736_v51 = vpop.f32.mrf.mxu0  ;;  %v5557_v26 = vld [vmem:[#allocation23_spill] sm:$0xff]  ;;  %v5558_v13 = vld [vmem:[#allocation18_spill] sm:$0xff]  ;;  %v5560_v12 = vld [vmem:[#allocation9_spill] sm:$0xff] }
 0x208   : > { %v2831_v28 = vadd.f32 %v2830_v1, %v2800_v19  ;;  %v3907_v39 = vpop.f32.mrf.mxu1  ;;  %v2577_v4 = vadd.f32 %v2517_v57, %v5551_v0  ;;  %v3735_v42 = vadd.f32 %v3734_v58, %v3733_v52  ;;  %v3611_v18 = vadd.f32 %v5557_v26, %v5556_v49  ;;  %v5567_v49 = vld [vmem:[#allocation20_spill] sm:$0xff] }
 0x209   : > { %3356 = vst [vmem:[%s5305_s27 + $0x40] sm:$0xff] %v3297_v56   ;;  %v2520_v59 = vadd.f32 %v3907_v39, %v3723_v62  ;;  %v2764_v46 = vadd.f32 %v2763_v32, %v2573_v3  ;;  %v2575_v21 = vadd.f32 %v2509_v47, %v5550_v45  ;;  %v3737_v24 = vpop.f32.mrf.mxu0  ;;  %v3729_v52 = vadd.f32 %v5380_v38, %v5371_v17 }
 0x20a   : > { %v2832_v41 = vadd.f32 %v2831_v28, %v2801_v10  ;;  %v2511_v7 = vpop.f32.mrf.mxu1  ;;  %v2000_v31 = vadd.f32 %v5559_v53, %v5558_v13  ;;  %v2806_v5 = vmul.f32 %v2577_v4, %v2577_v4 }
 0x20b   : > { %v2578_v60 = vadd.f32 %v2520_v59, %v5552_v37  ;;  %v2512_v30 = vadd.f32 %v3717_v9, %v2511_v7  ;;  %v2765_v50 = vadd.f32 %v2764_v46, %v2574_v36  ;;  %v3739_v40 = vpop.f32.mrf.mxu0  ;;  %v2804_v14 = vmul.f32 %v2575_v21, %v2575_v21 }
 0x20c   : > { %v2833_v33 = vadd.f32 %v2832_v41, %v2802_v2  ;;  %v3910_v43 = vpop.f32.mrf.mxu1  ;;  %v5561_v2 = vld [vmem:[#allocation12_spill] sm:$0xff]  ;;  %v3738_v41 = vadd.f32 %v3737_v24, %v3736_v51  ;;  %v5564_v51 = vld [vmem:[#allocation13_spill] sm:$0xff] }
 0x20d   : > { %v3312_v23 = vpack.c.bf16 %v2578_v60, %v2577_v4  ;;  %v2576_v27 = vadd.f32 %v2512_v30, %v5553_v20  ;;  %v2766_v6 = vadd.f32 %v2765_v50, %v2575_v21  ;;  %v3740_v29 = vpop.f32.mrf.mxu0  ;;  %v2533_v36 = vadd.f32 %v3910_v43, %v3732_v54 }
 0x20e   : > { %v2834_v11 = vadd.f32 %v2833_v33, %v2803_v61  ;;  %v2524_v55 = vpop.f32.mrf.mxu1  ;;  %v2807_v32 = vmul.f32 %v2578_v60, %v2578_v60  ;;  %v1855_v46 = vadd.f32 %v3611_v18, %v5561_v2 }
 0x20f   : > { %3359 = vst [vmem:[%s5305_s27 + $0x58] sm:$0xff] %v3312_v23   ;;  %v3307_v3 = vpack.c.bf16 %v2576_v27, %v2575_v21  ;;  %v2805_v16 = vmul.f32 %v2576_v27, %v2576_v27  ;;  %v2525_v8 = vadd.f32 %v3726_v35, %v2524_v55  ;;  %v2767_v34 = vadd.f32 %v2766_v6, %v2576_v27  ;;  %v3742_v15 = vpop.f32.mrf.mxu0  ;;  %v5562_v21 = vld [vmem:[#allocation10_spill] sm:$0xff]  ;;  %v5565_v6 = vld [vmem:[#allocation16_spill] sm:$0xff] }
 0x210   : > { %v2835_v22 = vadd.f32 %v2834_v11, %v2804_v14  ;;  %v3911_v44 = vpop.f32.mrf.mxu1  ;;  %v2581_v57 = vadd.f32 %v2533_v36, %v1997_v48  ;;  %v5563_v27 = vld [vmem:[#allocation22_spill] sm:$0xff]  ;;  %v2016_v14 = vadd.f32 %v5565_v6, %v1855_v46 }
 0x211   : > { %3358 = vst [vmem:[%s5305_s27 + $0x50] sm:$0xff] %v3307_v3   ;;  %v2536_v62 = vadd.f32 %v3911_v44, %v3735_v42  ;;  %v2768_v19 = vadd.f32 %v2767_v34, %v2577_v4  ;;  %v2579_v58 = vadd.f32 %v2525_v8, %v5560_v12  ;;  %v3743_v10 = vpop.f32.mrf.mxu0  ;;  %v2013_v24 = vadd.f32 %v5564_v51, %v5563_v27 }
 0x212   : > { %v2836_v1 = vadd.f32 %v2835_v22, %v2805_v16  ;;  %v2527_v56 = vpop.f32.mrf.mxu1  ;;  %v3744_v38 = vadd.f32 %v3743_v10, %v3742_v15  ;;  %v2810_v11 = vmul.f32 %v2581_v57, %v2581_v57  ;;  %v3741_v42 = vadd.f32 %v3740_v29, %v3739_v40  ;;  %v5566_v16 = vld [vmem:[#allocation19_spill] sm:$0xff] }
 0x213   : > { %v2582_v47 = vadd.f32 %v2536_v62, %v2000_v31  ;;  %v2528_v28 = vadd.f32 %v3729_v52, %v2527_v56  ;;  %v2769_v9 = vadd.f32 %v2768_v19, %v2578_v60  ;;  %v3745_v59 = vpop.f32.mrf.mxu0  ;;  %v2808_v4 = vmul.f32 %v2579_v58, %v2579_v58 }
 0x214   : > { %v2837_v39 = vadd.f32 %v2836_v1, %v2806_v5  ;;  %v3914_v17 = vpop.f32.mrf.mxu1 }
 0x215   : > { %v3322_v45 = vpack.c.bf16 %v2582_v47, %v2581_v57  ;;  %v2580_v7 = vadd.f32 %v2528_v28, %v5562_v21  ;;  %v2770_v0 = vadd.f32 %v2769_v9, %v2579_v58  ;;  %v3746_v61 = vpop.f32.mrf.mxu0  ;;  %v2549_v54 = vadd.f32 %v3914_v17, %v3744_v38 }
 0x216   : > { %v2838_v37 = vadd.f32 %v2837_v39, %v2807_v32  ;;  %v2540_v30 = vpop.f32.mrf.mxu1  ;;  %v3747_v20 = vadd.f32 %v3746_v61, %v3745_v59  ;;  %v2811_v34 = vmul.f32 %v2582_v47, %v2582_v47 }
 0x217   : > { %3361 = vst [vmem:[%s5305_s27 + $0x68] sm:$0xff] %v3322_v45   ;;  %v3317_v33 = vpack.c.bf16 %v2580_v7, %v2579_v58  ;;  %v2809_v50 = vmul.f32 %v2580_v7, %v2580_v7  ;;  %v2541_v43 = vadd.f32 %v3738_v41, %v2540_v30  ;;  %v2771_v35 = vadd.f32 %v2770_v0, %v2580_v7 }
 0x218   : > { %v2839_v60 = vadd.f32 %v2838_v37, %v2808_v4  ;;  %v3915_v23 = vpop.f32.mrf.mxu1  ;;  %v2585_v48 = vadd.f32 %v2549_v54, %v2013_v24 }
 0x219   : > { %3360 = vst [vmem:[%s5305_s27 + $0x60] sm:$0xff] %v3317_v33   ;;  %v2772_v55 = vadd.f32 %v2771_v35, %v2581_v57  ;;  %v2583_v36 = vadd.f32 %v2541_v43, %v5566_v16  ;;  %v2552_v8 = vadd.f32 %v3915_v23, %v3747_v20 }
 0x21a   : > { %v2840_v3 = vadd.f32 %v2839_v60, %v2809_v50  ;;  %v2543_v22 = vpop.f32.mrf.mxu1  ;;  %v2814_v5 = vmul.f32 %v2585_v48, %v2585_v48 }
 0x21b   : > { %v2544_v25 = vadd.f32 %v3741_v42, %v2543_v22  ;;  %v2773_v44 = vadd.f32 %v2772_v55, %v2582_v47  ;;  %v2586_v15 = vadd.f32 %v2552_v8, %v2016_v14  ;;  %v2812_v52 = vmul.f32 %v2583_v36, %v2583_v36 }
 0x21c   : > { %v2841_v63 = vadd.f32 %v2840_v3, %v2810_v11 }
 0x21d   : > { %v2584_v26 = vadd.f32 %v2544_v25, %v5567_v49  ;;  %v2774_v18 = vadd.f32 %v2773_v44, %v2583_v36  ;;  %v3332_v29 = vpack.c.bf16 %v2586_v15, %v2585_v48  ;;  %v2815_v12 = vmul.f32 %v2586_v15, %v2586_v15 }
 0x21e   : > { %v2842_v40 = vadd.f32 %v2841_v63, %v2811_v34 }
 0x21f   : > { %v3327_v13 = vpack.c.bf16 %v2584_v26, %v2583_v36  ;;  %v2813_v53 = vmul.f32 %v2584_v26, %v2584_v26  ;;  %3363 = vst [vmem:[%s5305_s27 + $0x78] sm:$0xff] %v3332_v29   ;;  %v2775_v62 = vadd.f32 %v2774_v18, %v2584_v26 }
 0x220   : > { %v2843_v31 = vadd.f32 %v2842_v40, %v2812_v52 }
 0x221   : > { %3362 = vst [vmem:[%s5305_s27 + $0x70] sm:$0xff] %v3327_v13   ;;  %v2776_v19 = vadd.f32 %v2775_v62, %v2585_v48 }
 0x222   : > { %v2844_v1 = vadd.f32 %v2843_v31, %v2813_v53 }
 0x223   : > { %v2777_v58 = vadd.f32 %v2776_v19, %v2586_v15 }
 0x224   : > { %v2845_v56 = vadd.f32 %v2844_v1, %v2814_v5 }
 0x225   : > { %v2778_v10 = vrot.slane %v2777_v58, 4 }
 0x226   : > { %v2846_v57 = vadd.f32 %v2845_v56, %v2815_v12 }
 0x227   : > { %v2779_v47 = vadd.f32 %v2778_v10, %v2777_v58 }
 0x228   : > { %v2847_v28 = vrot.slane %v2846_v57, 4 }
 0x229   : > { %v2780_v32 = vrot.slane %v2779_v47, 2 }
 0x22a   : > { %v2848_v39 = vadd.f32 %v2847_v28, %v2846_v57 }
 0x22b   : > { %v2781_v9 = vadd.f32 %v2780_v32, %v2779_v47 }
 0x22c   : > { %v2849_v17 = vrot.slane %v2848_v39, 2 }
 0x22d   : > { %v2782_v38 = vrot.slane %v2781_v9, 1 }
 0x22e   : > { %v2850_v59 = vadd.f32 %v2849_v17, %v2848_v39 }
 0x22f   : > { %v2783_v46 = vadd.f32 %v2782_v38, %v2781_v9 }
 0x230   : > { %v2851_v2 = vrot.slane %v2850_v59, 1 }
 0x232   : > { %v2852_v41 = vadd.f32 %v2851_v2, %v2850_v59 }
 0x234   : > { %v2854_v45 = vsel %vm2853_vm2, %v2783_v46, %v2852_v41 }
 0x235   : > { %2855 = vst [vmem:[%s235_s30] sm:$0x3] %v2854_v45 }
 0x236 PF: > { %s16_s18 = sadd.s32 1, %s4022_s18  }
 0x237   : > { %p13_p4 = scmp.ge.s32.totalorder %s16_s18, 4  }
 0x239   :  { %15 = sbr.rel (!%p13_p4) target bundleno = 1 (0x1), region = 82 }

</bundles_post_ra>
